<compile_context>
chip_gen: v6e
topology: v6e:2x2x1
jax: 0.10.0
libtpu: 0.0.40
codegen_flags: <defaults>
</compile_context>

<pallas_src>
import math

import jax
import jax.numpy as jnp
from jax.experimental import pallas as pl
from jax.experimental.pallas import tpu as pltpu


# Canvas widths (row stride of the flattened [H*Wc, C] activation matrices).
W0 = 8     # stages: input 8x8, conv1 out 7x7, conv2 out 5x5
WD = 16    # stages: dilated up-input 13x13, up out 11x11, conv3 out 7x7

R1 = 7 * W0     # 56  conv1 output canvas rows
R2 = 5 * W0     # 40  conv2 output canvas rows
R3 = 11 * WD    # 176 up output canvas rows
R4 = 7 * WD     # 112 conv3 output canvas rows

C1_ROWS = 8 * W0      # 64  conv1 canvas + zero slack rows read by conv2 taps
C3IN_ROWS = 14 * WD   # 224 13x13 dilated canvas + slack
C3_ROWS = 12 * WD     # 192 11x11 up canvas + slack rows read by conv3 taps

BN_EPS = 1e-5
# TODO(synk): BatchNorm2d is modelled in eval mode with default parameters
# (gamma=1, beta=0, running_mean=0, running_var=1) and folded into conv2;
# training-mode batch statistics are not reproduced.
BN_SCALE = 1.0 / math.sqrt(1.0 + BN_EPS)


# ---------------------------------------------------------------------------
# Fused Pallas kernel: conv1+relu -> conv2(+BN fold)+relu -> up+relu -> conv3
# ---------------------------------------------------------------------------

def _fused_forward_kernel(x_ref, w1_ref, b1_ref, w2_ref, b2_ref,
                          wup_ref, bup_ref, w3_ref, b3_ref,
                          out_ref,
                          c1_ref, c2_ref, c3in_ref, c3_ref):
    f32 = jnp.float32

    # ---- conv1 (1->16, k=2) + relu : 8x8 -> 7x7, canvas width W0 -----------
    acc = jnp.zeros((R1, 16), f32)
    for kh in range(2):
        for kw in range(2):
            t = kh * 2 + kw
            # Cin == 1: broadcast multiply on the VPU instead of a K=1 matmul.
            acc = acc + x_ref[pl.ds(kh * W0 + kw, R1), :] * w1_ref[t, :]
    c1_ref[pl.ds(0, R1), :] = jnp.maximum(acc + b1_ref[...], 0.0)
    c1_ref[pl.ds(R1, C1_ROWS - R1), :] = jnp.zeros((C1_ROWS - R1, 16), f32)

    # ---- conv2 (16->32, k=3) + folded BN + relu : 7x7 -> 5x5 ---------------
    acc = jnp.zeros((R2, 32), f32)
    for kh in range(3):
        for kw in range(3):
            t = kh * 3 + kw
            acc = acc + jnp.dot(c1_ref[pl.ds(kh * W0 + kw, R2), :], w2_ref[t],
                                preferred_element_type=f32)
    c2_ref[...] = jnp.maximum(acc + b2_ref[...], 0.0)

    # ---- up = ConvTranspose2d(32->64, k=3, s=2) + relu : 5x5 -> 11x11 ------
    # Zero-dilate + pad the 5x5 input onto a 13x13 canvas, then run a regular
    # k=3 conv with the (pre-)flipped kernel.
    c3in_ref[...] = jnp.zeros((C3IN_ROWS, 32), f32)
    for ih in range(5):
        for iw in range(5):
            src = ih * W0 + iw
            dst = (2 + 2 * ih) * WD + (2 + 2 * iw)
            c3in_ref[pl.ds(dst, 1), :] = c2_ref[pl.ds(src, 1), :]
    acc = jnp.zeros((R3, 64), f32)
    for kh in range(3):
        for kw in range(3):
            t = kh * 3 + kw
            acc = acc + jnp.dot(c3in_ref[pl.ds(kh * WD + kw, R3), :], wup_ref[t],
                                preferred_element_type=f32)
    c3_ref[pl.ds(0, R3), :] = jnp.maximum(acc + bup_ref[...], 0.0)
    c3_ref[pl.ds(R3, C3_ROWS - R3), :] = jnp.zeros((C3_ROWS - R3, 64), f32)

    # ---- conv3 (64->1, k=5) : 11x11 -> 7x7 ---------------------------------
    # Cout == 1: accumulate a weighted (rows, 64) slab on the VPU, reduce once.
    acc = jnp.zeros((R4, 64), f32)
    for kh in range(5):
        for kw in range(5):
            t = kh * 5 + kw
            acc = acc + c3_ref[pl.ds(kh * WD + kw, R4), :] * w3_ref[t, :]
    out_ref[...] = jnp.sum(acc, axis=1, keepdims=True) + b3_ref[...]


def _vmem_spec():
    return pl.BlockSpec(memory_space=pltpu.MemorySpace.VMEM)


_fused_forward = pl.pallas_call(
    _fused_forward_kernel,
    out_shape=jax.ShapeDtypeStruct((R4, 1), jnp.float32),
    in_specs=[_vmem_spec() for _ in range(9)],
    out_specs=_vmem_spec(),
    scratch_shapes=[
        pltpu.VMEM((C1_ROWS, 16), jnp.float32),     # conv1 output canvas
        pltpu.VMEM((R2, 32), jnp.float32),          # conv2 output canvas
        pltpu.VMEM((C3IN_ROWS, 32), jnp.float32),   # dilated up-conv input
        pltpu.VMEM((C3_ROWS, 64), jnp.float32),     # up output canvas
    ],
)


# ---------------------------------------------------------------------------
# Parameter construction / packing (done once, outside jit)
# ---------------------------------------------------------------------------

def build_torch_params():
    """Parameters exactly as BigPruningTestModel.__init__ constructs them."""
    def conv_weight(cout, cin, k, fill):
        return (jnp.full((cout, cin, k, k), float(fill), jnp.float32)
                + jnp.eye(k, dtype=jnp.float32))

    w1 = conv_weight(16, 1, 2, 0) + jnp.arange(16, dtype=jnp.float32)[:, None, None, None]
    b1 = jnp.ones((16,), jnp.float32)

    w2 = conv_weight(32, 16, 3, 20) + jnp.arange(32, dtype=jnp.float32)[:, None, None, None]
    b2 = jnp.zeros((32,), jnp.float32)

    # ConvTranspose2d weight layout: (Cin=32, Cout=64, kh, kw); up.weight[0][o] += o
    wup = jnp.full((32, 64, 3, 3), 3.0, jnp.float32) + jnp.eye(3, dtype=jnp.float32)
    wup = wup.at[0].add(jnp.arange(64, dtype=jnp.float32)[:, None, None])
    bup = jnp.ones((64,), jnp.float32)

    w3 = conv_weight(1, 64, 5, 5)
    b3 = jnp.ones((1,), jnp.float32)

    return dict(w1=w1, b1=b1, w2=w2, b2=b2, wup=wup, bup=bup, w3=w3, b3=b3)


def pack_params(p):
    """Pre-pack per-tap weight matrices / bias rows for the fused kernel."""
    # conv1 taps: (4, 16)   [kh*2+kw, cout]
    w1 = jnp.transpose(p["w1"][:, 0, :, :], (1, 2, 0)).reshape(4, 16)
    b1 = p["b1"].reshape(1, 16)
    # conv2 taps with BatchNorm folded in: (9, 16, 32)   [kh*3+kw, cin, cout]
    w2 = (jnp.transpose(p["w2"], (2, 3, 1, 0)) * BN_SCALE).reshape(9, 16, 32)
    b2 = (p["b2"] * BN_SCALE).reshape(1, 32)
    # up taps, spatially flipped (transpose conv == conv over dilated input):
    # (9, 32, 64)   [kh*3+kw, cin, cout] = wup[cin, cout, 2-kh, 2-kw]
    wup = jnp.transpose(p["wup"][:, :, ::-1, ::-1], (2, 3, 0, 1)).reshape(9, 32, 64)
    bup = p["bup"].reshape(1, 64)
    # conv3 taps: (25, 64)   [kh*5+kw, cin]   (cout == 1)
    w3 = jnp.transpose(p["w3"][0], (1, 2, 0)).reshape(25, 64)
    b3 = p["b3"].reshape(1, 1)
    return dict(w1=w1, b1=b1, w2=w2, b2=b2, wup=wup, bup=bup, w3=w3, b3=b3)


# ---------------------------------------------------------------------------
# Forward wrapper
# ---------------------------------------------------------------------------

@jax.jit
def forward(x_nchw, packed):
    # The module ends with x.view(1, -1)  ->  batch size 1.
    x_flat = x_nchw.reshape(8 * 8, 1).astype(jnp.float32)
    x_canvas = jnp.pad(x_flat, ((0, W0), (0, 0)))            # (72, 1), zero slack
    y = _fused_forward(x_canvas,
                       packed["w1"], packed["b1"],
                       packed["w2"], packed["b2"],
                       packed["wup"], packed["bup"],
                       packed["w3"], packed["b3"])
    # canvas (7*WD, 1) -> valid 7x7 -> (1, 49)   (== x.view(1, -1))
    return y.reshape(7, WD)[:, :7].reshape(1, 49)


# ---------------------------------------------------------------------------
# Pure-JAX reference (lax convs + direct ConvTranspose2d definition)
# ---------------------------------------------------------------------------

def forward_ref(x_nchw, p):
    dn = ("NCHW", "OIHW", "NCHW")
    hi = jax.lax.Precision.HIGHEST

    def conv(x, w, b):
        y = jax.lax.conv_general_dilated(x, w, (1, 1), "VALID",
                                         dimension_numbers=dn, precision=hi)
        return y + b[None, :, None, None]

    x = jnp.maximum(conv(x_nchw, p["w1"], p["b1"]), 0.0)
    x = conv(x, p["w2"], p["b2"]) * BN_SCALE                  # eval-mode BN
    x = jnp.maximum(x, 0.0)

    # ConvTranspose2d(32, 64, k=3, stride=2), directly from its definition.
    n, _, h, w = x.shape
    k, s = 3, 2
    co = p["wup"].shape[1]
    up = jnp.zeros((n, co, (h - 1) * s + k, (w - 1) * s + k), jnp.float32)
    for kh in range(k):
        for kw in range(k):
            contrib = jnp.einsum("nihw,io->nohw", x, p["wup"][:, :, kh, kw],
                                 precision=hi)
            up = up.at[:, :, kh:kh + s * h:s, kw:kw + s * w:s].add(contrib)
    x = jnp.maximum(up + p["bup"][None, :, None, None], 0.0)

    x = conv(x, p["w3"], p["b3"])
    return x.reshape(1, -1)


if __name__ == "__main__":
    key = jax.random.PRNGKey(0)
    x = jax.random.normal(key, (1, 1, 8, 8), dtype=jnp.float32)   # NCHW, batch 1

    torch_params = build_torch_params()
    packed = pack_params(torch_params)       # packed once, outside jit

    out = forward(x, packed)
    out = jax.block_until_ready(out)
    assert out.shape == (1, 49), out.shape

    ref = forward_ref(x, torch_params)
    rel_err = float(jnp.max(jnp.abs(out - ref) / (jnp.abs(ref) + 1.0)))
    assert rel_err < 2e-2, rel_err

    print("KERNEL_OK")
</pallas_src>

<mosaic_0001>
module attributes {stable_mosaic.version = 11 : i64} {
  func.func @_fused_forward_kernel(%arg0: memref<72x1xf32, #tpu.memory_space<vmem>>, %arg1: memref<4x16xf32, #tpu.memory_space<vmem>>, %arg2: memref<1x16xf32, #tpu.memory_space<vmem>>, %arg3: memref<9x16x32xf32, #tpu.memory_space<vmem>>, %arg4: memref<1x32xf32, #tpu.memory_space<vmem>>, %arg5: memref<9x32x64xf32, #tpu.memory_space<vmem>>, %arg6: memref<1x64xf32, #tpu.memory_space<vmem>>, %arg7: memref<25x64xf32, #tpu.memory_space<vmem>>, %arg8: memref<1x1xf32, #tpu.memory_space<vmem>>, %arg9: memref<112x1xf32, #tpu.memory_space<vmem>>, %arg10: memref<64x16xf32, #tpu.memory_space<vmem>>, %arg11: memref<40x32xf32, #tpu.memory_space<vmem>>, %arg12: memref<224x32xf32, #tpu.memory_space<vmem>>, %arg13: memref<192x64xf32, #tpu.memory_space<vmem>>) attributes {dimension_semantics = [], scalar_prefetch = 0 : i64, scratch_operands = 4 : i64, tpu.core_type = #tpu.core_type<tc>} {
    %cst = arith.constant 0.000000e+00 : f32
    %0 = vector.broadcast %cst : f32 to vector<56x16xf32>
    %c0 = arith.constant 0 : index
    %c0_0 = arith.constant 0 : index
    %1 = vector.load %arg0[%c0, %c0_0] : memref<72x1xf32, #tpu.memory_space<vmem>>, vector<56x1xf32>
    %c0_1 = arith.constant 0 : index
    %c0_2 = arith.constant 0 : index
    %2 = vector.load %arg1[%c0_1, %c0_2] : memref<4x16xf32, #tpu.memory_space<vmem>>, vector<1x16xf32>
    %3 = vector.shape_cast %2 : vector<1x16xf32> to vector<16xf32>
    %4 = vector.shape_cast %3 : vector<16xf32> to vector<1x16xf32>
    %5 = vector.broadcast %1 : vector<56x1xf32> to vector<56x16xf32>
    %6 = vector.broadcast %4 : vector<1x16xf32> to vector<56x16xf32>
    %7 = arith.mulf %5, %6 : vector<56x16xf32>
    %8 = arith.addf %0, %7 : vector<56x16xf32>
    %c1 = arith.constant 1 : index
    %c0_3 = arith.constant 0 : index
    %9 = vector.load %arg0[%c1, %c0_3] : memref<72x1xf32, #tpu.memory_space<vmem>>, vector<56x1xf32>
    %c1_4 = arith.constant 1 : index
    %c0_5 = arith.constant 0 : index
    %10 = vector.load %arg1[%c1_4, %c0_5] : memref<4x16xf32, #tpu.memory_space<vmem>>, vector<1x16xf32>
    %11 = vector.shape_cast %10 : vector<1x16xf32> to vector<16xf32>
    %12 = vector.shape_cast %11 : vector<16xf32> to vector<1x16xf32>
    %13 = vector.broadcast %9 : vector<56x1xf32> to vector<56x16xf32>
    %14 = vector.broadcast %12 : vector<1x16xf32> to vector<56x16xf32>
    %15 = arith.mulf %13, %14 : vector<56x16xf32>
    %16 = arith.addf %8, %15 : vector<56x16xf32>
    %c8 = arith.constant 8 : index
    %c0_6 = arith.constant 0 : index
    %17 = vector.load %arg0[%c8, %c0_6] : memref<72x1xf32, #tpu.memory_space<vmem>>, vector<56x1xf32>
    %c2 = arith.constant 2 : index
    %c0_7 = arith.constant 0 : index
    %18 = vector.load %arg1[%c2, %c0_7] : memref<4x16xf32, #tpu.memory_space<vmem>>, vector<1x16xf32>
    %19 = vector.shape_cast %18 : vector<1x16xf32> to vector<16xf32>
    %20 = vector.shape_cast %19 : vector<16xf32> to vector<1x16xf32>
    %21 = vector.broadcast %17 : vector<56x1xf32> to vector<56x16xf32>
    %22 = vector.broadcast %20 : vector<1x16xf32> to vector<56x16xf32>
    %23 = arith.mulf %21, %22 : vector<56x16xf32>
    %24 = arith.addf %16, %23 : vector<56x16xf32>
    %c9 = arith.constant 9 : index
    %c0_8 = arith.constant 0 : index
    %25 = vector.load %arg0[%c9, %c0_8] : memref<72x1xf32, #tpu.memory_space<vmem>>, vector<56x1xf32>
    %c3 = arith.constant 3 : index
    %c0_9 = arith.constant 0 : index
    %26 = vector.load %arg1[%c3, %c0_9] : memref<4x16xf32, #tpu.memory_space<vmem>>, vector<1x16xf32>
    %27 = vector.shape_cast %26 : vector<1x16xf32> to vector<16xf32>
    %28 = vector.shape_cast %27 : vector<16xf32> to vector<1x16xf32>
    %29 = vector.broadcast %25 : vector<56x1xf32> to vector<56x16xf32>
    %30 = vector.broadcast %28 : vector<1x16xf32> to vector<56x16xf32>
    %31 = arith.mulf %29, %30 : vector<56x16xf32>
    %32 = arith.addf %24, %31 : vector<56x16xf32>
    %c0_10 = arith.constant 0 : index
    %c0_11 = arith.constant 0 : index
    %33 = vector.load %arg2[%c0_10, %c0_11] : memref<1x16xf32, #tpu.memory_space<vmem>>, vector<1x16xf32>
    %34 = vector.broadcast %33 : vector<1x16xf32> to vector<56x16xf32>
    %35 = arith.addf %32, %34 : vector<56x16xf32>
    %cst_12 = arith.constant 0.000000e+00 : f32
    %36 = vector.broadcast %cst_12 : f32 to vector<56x16xf32>
    %37 = arith.maximumf %35, %36 : vector<56x16xf32>
    %c0_13 = arith.constant 0 : index
    %c0_14 = arith.constant 0 : index
    %38 = vector.load %arg10[%c0_13, %c0_14] : memref<64x16xf32, #tpu.memory_space<vmem>>, vector<56x16xf32>
    tpu.vector_store %arg10[%c0_13, %c0_14], %37 {strides = array<i32>} : memref<64x16xf32, #tpu.memory_space<vmem>>, vector<56x16xf32>,
    %cst_15 = arith.constant 0.000000e+00 : f32
    %39 = vector.broadcast %cst_15 : f32 to vector<8x16xf32>
    %c56 = arith.constant 56 : index
    %c0_16 = arith.constant 0 : index
    %40 = vector.load %arg10[%c56, %c0_16] : memref<64x16xf32, #tpu.memory_space<vmem>>, vector<8x16xf32>
    tpu.vector_store %arg10[%c56, %c0_16], %39 {strides = array<i32>} : memref<64x16xf32, #tpu.memory_space<vmem>>, vector<8x16xf32>,
    %cst_17 = arith.constant 0.000000e+00 : f32
    %41 = vector.broadcast %cst_17 : f32 to vector<40x32xf32>
    %c0_18 = arith.constant 0 : index
    %c0_19 = arith.constant 0 : index
    %42 = vector.load %arg10[%c0_18, %c0_19] : memref<64x16xf32, #tpu.memory_space<vmem>>, vector<40x16xf32>
    %c0_20 = arith.constant 0 : index
    %c0_21 = arith.constant 0 : index
    %c0_22 = arith.constant 0 : index
    %43 = vector.load %arg3[%c0_20, %c0_21, %c0_22] : memref<9x16x32xf32, #tpu.memory_space<vmem>>, vector<1x16x32xf32>
    %44 = vector.shape_cast %43 : vector<1x16x32xf32> to vector<16x32xf32>
    %cst_23 = arith.constant dense<0.000000e+00> : vector<40x32xf32>
    %45 = tpu.matmul %42, %44, %cst_23 {dimension_numbers = #tpu.dot_dimension_numbers<[1], [0], [0], [1], [0, 0, 1, 1], [], []>} : vector<40x16xf32>, vector<16x32xf32>, vector<40x32xf32> -> vector<40x32xf32>
    %46 = arith.addf %41, %45 : vector<40x32xf32>
    %c1_24 = arith.constant 1 : index
    %c0_25 = arith.constant 0 : index
    %47 = vector.load %arg10[%c1_24, %c0_25] : memref<64x16xf32, #tpu.memory_space<vmem>>, vector<40x16xf32>
    %c1_26 = arith.constant 1 : index
    %c0_27 = arith.constant 0 : index
    %c0_28 = arith.constant 0 : index
    %48 = vector.load %arg3[%c1_26, %c0_27, %c0_28] : memref<9x16x32xf32, #tpu.memory_space<vmem>>, vector<1x16x32xf32>
    %49 = vector.shape_cast %48 : vector<1x16x32xf32> to vector<16x32xf32>
    %cst_29 = arith.constant dense<0.000000e+00> : vector<40x32xf32>
    %50 = tpu.matmul %47, %49, %cst_29 {dimension_numbers = #tpu.dot_dimension_numbers<[1], [0], [0], [1], [0, 0, 1, 1], [], []>} : vector<40x16xf32>, vector<16x32xf32>, vector<40x32xf32> -> vector<40x32xf32>
    %51 = arith.addf %46, %50 : vector<40x32xf32>
    %c2_30 = arith.constant 2 : index
    %c0_31 = arith.constant 0 : index
    %52 = vector.load %arg10[%c2_30, %c0_31] : memref<64x16xf32, #tpu.memory_space<vmem>>, vector<40x16xf32>
    %c2_32 = arith.constant 2 : index
    %c0_33 = arith.constant 0 : index
    %c0_34 = arith.constant 0 : index
    %53 = vector.load %arg3[%c2_32, %c0_33, %c0_34] : memref<9x16x32xf32, #tpu.memory_space<vmem>>, vector<1x16x32xf32>
    %54 = vector.shape_cast %53 : vector<1x16x32xf32> to vector<16x32xf32>
    %cst_35 = arith.constant dense<0.000000e+00> : vector<40x32xf32>
    %55 = tpu.matmul %52, %54, %cst_35 {dimension_numbers = #tpu.dot_dimension_numbers<[1], [0], [0], [1], [0, 0, 1, 1], [], []>} : vector<40x16xf32>, vector<16x32xf32>, vector<40x32xf32> -> vector<40x32xf32>
    %56 = arith.addf %51, %55 : vector<40x32xf32>
    %c8_36 = arith.constant 8 : index
    %c0_37 = arith.constant 0 : index
    %57 = vector.load %arg10[%c8_36, %c0_37] : memref<64x16xf32, #tpu.memory_space<vmem>>, vector<40x16xf32>
    %c3_38 = arith.constant 3 : index
    %c0_39 = arith.constant 0 : index
    %c0_40 = arith.constant 0 : index
    %58 = vector.load %arg3[%c3_38, %c0_39, %c0_40] : memref<9x16x32xf32, #tpu.memory_space<vmem>>, vector<1x16x32xf32>
    %59 = vector.shape_cast %58 : vector<1x16x32xf32> to vector<16x32xf32>
    %cst_41 = arith.constant dense<0.000000e+00> : vector<40x32xf32>
    %60 = tpu.matmul %57, %59, %cst_41 {dimension_numbers = #tpu.dot_dimension_numbers<[1], [0], [0], [1], [0, 0, 1, 1], [], []>} : vector<40x16xf32>, vector<16x32xf32>, vector<40x32xf32> -> vector<40x32xf32>
    %61 = arith.addf %56, %60 : vector<40x32xf32>
    %c9_42 = arith.constant 9 : index
    %c0_43 = arith.constant 0 : index
    %62 = vector.load %arg10[%c9_42, %c0_43] : memref<64x16xf32, #tpu.memory_space<vmem>>, vector<40x16xf32>
    %c4 = arith.constant 4 : index
    %c0_44 = arith.constant 0 : index
    %c0_45 = arith.constant 0 : index
    %63 = vector.load %arg3[%c4, %c0_44, %c0_45] : memref<9x16x32xf32, #tpu.memory_space<vmem>>, vector<1x16x32xf32>
    %64 = vector.shape_cast %63 : vector<1x16x32xf32> to vector<16x32xf32>
    %cst_46 = arith.constant dense<0.000000e+00> : vector<40x32xf32>
    %65 = tpu.matmul %62, %64, %cst_46 {dimension_numbers = #tpu.dot_dimension_numbers<[1], [0], [0], [1], [0, 0, 1, 1], [], []>} : vector<40x16xf32>, vector<16x32xf32>, vector<40x32xf32> -> vector<40x32xf32>
    %66 = arith.addf %61, %65 : vector<40x32xf32>
    %c10 = arith.constant 10 : index
    %c0_47 = arith.constant 0 : index
    %67 = vector.load %arg10[%c10, %c0_47] : memref<64x16xf32, #tpu.memory_space<vmem>>, vector<40x16xf32>
    %c5 = arith.constant 5 : index
    %c0_48 = arith.constant 0 : index
    %c0_49 = arith.constant 0 : index
    %68 = vector.load %arg3[%c5, %c0_48, %c0_49] : memref<9x16x32xf32, #tpu.memory_space<vmem>>, vector<1x16x32xf32>
    %69 = vector.shape_cast %68 : vector<1x16x32xf32> to vector<16x32xf32>
    %cst_50 = arith.constant dense<0.000000e+00> : vector<40x32xf32>
    %70 = tpu.matmul %67, %69, %cst_50 {dimension_numbers = #tpu.dot_dimension_numbers<[1], [0], [0], [1], [0, 0, 1, 1], [], []>} : vector<40x16xf32>, vector<16x32xf32>, vector<40x32xf32> -> vector<40x32xf32>
    %71 = arith.addf %66, %70 : vector<40x32xf32>
    %c16 = arith.constant 16 : index
    %c0_51 = arith.constant 0 : index
    %72 = vector.load %arg10[%c16, %c0_51] : memref<64x16xf32, #tpu.memory_space<vmem>>, vector<40x16xf32>
    %c6 = arith.constant 6 : index
    %c0_52 = arith.constant 0 : index
    %c0_53 = arith.constant 0 : index
    %73 = vector.load %arg3[%c6, %c0_52, %c0_53] : memref<9x16x32xf32, #tpu.memory_space<vmem>>, vector<1x16x32xf32>
    %74 = vector.shape_cast %73 : vector<1x16x32xf32> to vector<16x32xf32>
    %cst_54 = arith.constant dense<0.000000e+00> : vector<40x32xf32>
    %75 = tpu.matmul %72, %74, %cst_54 {dimension_numbers = #tpu.dot_dimension_numbers<[1], [0], [0], [1], [0, 0, 1, 1], [], []>} : vector<40x16xf32>, vector<16x32xf32>, vector<40x32xf32> -> vector<40x32xf32>
    %76 = arith.addf %71, %75 : vector<40x32xf32>
    %c17 = arith.constant 17 : index
    %c0_55 = arith.constant 0 : index
    %77 = vector.load %arg10[%c17, %c0_55] : memref<64x16xf32, #tpu.memory_space<vmem>>, vector<40x16xf32>
    %c7 = arith.constant 7 : index
    %c0_56 = arith.constant 0 : index
    %c0_57 = arith.constant 0 : index
    %78 = vector.load %arg3[%c7, %c0_56, %c0_57] : memref<9x16x32xf32, #tpu.memory_space<vmem>>, vector<1x16x32xf32>
    %79 = vector.shape_cast %78 : vector<1x16x32xf32> to vector<16x32xf32>
    %cst_58 = arith.constant dense<0.000000e+00> : vector<40x32xf32>
    %80 = tpu.matmul %77, %79, %cst_58 {dimension_numbers = #tpu.dot_dimension_numbers<[1], [0], [0], [1], [0, 0, 1, 1], [], []>} : vector<40x16xf32>, vector<16x32xf32>, vector<40x32xf32> -> vector<40x32xf32>
    %81 = arith.addf %76, %80 : vector<40x32xf32>
    %c18 = arith.constant 18 : index
    %c0_59 = arith.constant 0 : index
    %82 = vector.load %arg10[%c18, %c0_59] : memref<64x16xf32, #tpu.memory_space<vmem>>, vector<40x16xf32>
    %c8_60 = arith.constant 8 : index
    %c0_61 = arith.constant 0 : index
    %c0_62 = arith.constant 0 : index
    %83 = vector.load %arg3[%c8_60, %c0_61, %c0_62] : memref<9x16x32xf32, #tpu.memory_space<vmem>>, vector<1x16x32xf32>
    %84 = vector.shape_cast %83 : vector<1x16x32xf32> to vector<16x32xf32>
    %cst_63 = arith.constant dense<0.000000e+00> : vector<40x32xf32>
    %85 = tpu.matmul %82, %84, %cst_63 {dimension_numbers = #tpu.dot_dimension_numbers<[1], [0], [0], [1], [0, 0, 1, 1], [], []>} : vector<40x16xf32>, vector<16x32xf32>, vector<40x32xf32> -> vector<40x32xf32>
    %86 = arith.addf %81, %85 : vector<40x32xf32>
    %c0_64 = arith.constant 0 : index
    %c0_65 = arith.constant 0 : index
    %87 = vector.load %arg4[%c0_64, %c0_65] : memref<1x32xf32, #tpu.memory_space<vmem>>, vector<1x32xf32>
    %88 = vector.broadcast %87 : vector<1x32xf32> to vector<40x32xf32>
    %89 = arith.addf %86, %88 : vector<40x32xf32>
    %cst_66 = arith.constant 0.000000e+00 : f32
    %90 = vector.broadcast %cst_66 : f32 to vector<40x32xf32>
    %91 = arith.maximumf %89, %90 : vector<40x32xf32>
    %c0_67 = arith.constant 0 : index
    %c0_68 = arith.constant 0 : index
    %92 = vector.load %arg11[%c0_67, %c0_68] : memref<40x32xf32, #tpu.memory_space<vmem>>, vector<40x32xf32>
    tpu.vector_store %arg11[%c0_67, %c0_68], %91 {strides = array<i32>} : memref<40x32xf32, #tpu.memory_space<vmem>>, vector<40x32xf32>,
    %cst_69 = arith.constant 0.000000e+00 : f32
    %93 = vector.broadcast %cst_69 : f32 to vector<224x32xf32>
    %c0_70 = arith.constant 0 : index
    %c0_71 = arith.constant 0 : index
    %94 = vector.load %arg12[%c0_70, %c0_71] : memref<224x32xf32, #tpu.memory_space<vmem>>, vector<224x32xf32>
    tpu.vector_store %arg12[%c0_70, %c0_71], %93 {strides = array<i32>} : memref<224x32xf32, #tpu.memory_space<vmem>>, vector<224x32xf32>,
    %c0_72 = arith.constant 0 : index
    %c0_73 = arith.constant 0 : index
    %95 = vector.load %arg11[%c0_72, %c0_73] : memref<40x32xf32, #tpu.memory_space<vmem>>, vector<1x32xf32>
    %c34 = arith.constant 34 : index
    %c0_74 = arith.constant 0 : index
    %96 = vector.load %arg12[%c34, %c0_74] : memref<224x32xf32, #tpu.memory_space<vmem>>, vector<1x32xf32>
    tpu.vector_store %arg12[%c34, %c0_74], %95 {strides = array<i32>} : memref<224x32xf32, #tpu.memory_space<vmem>>, vector<1x32xf32>,
    %c1_75 = arith.constant 1 : index
    %c0_76 = arith.constant 0 : index
    %97 = vector.load %arg11[%c1_75, %c0_76] : memref<40x32xf32, #tpu.memory_space<vmem>>, vector<1x32xf32>
    %c36 = arith.constant 36 : index
    %c0_77 = arith.constant 0 : index
    %98 = vector.load %arg12[%c36, %c0_77] : memref<224x32xf32, #tpu.memory_space<vmem>>, vector<1x32xf32>
    tpu.vector_store %arg12[%c36, %c0_77], %97 {strides = array<i32>} : memref<224x32xf32, #tpu.memory_space<vmem>>, vector<1x32xf32>,
    %c2_78 = arith.constant 2 : index
    %c0_79 = arith.constant 0 : index
    %99 = vector.load %arg11[%c2_78, %c0_79] : memref<40x32xf32, #tpu.memory_space<vmem>>, vector<1x32xf32>
    %c38 = arith.constant 38 : index
    %c0_80 = arith.constant 0 : index
    %100 = vector.load %arg12[%c38, %c0_80] : memref<224x32xf32, #tpu.memory_space<vmem>>, vector<1x32xf32>
    tpu.vector_store %arg12[%c38, %c0_80], %99 {strides = array<i32>} : memref<224x32xf32, #tpu.memory_space<vmem>>, vector<1x32xf32>,
    %c3_81 = arith.constant 3 : index
    %c0_82 = arith.constant 0 : index
    %101 = vector.load %arg11[%c3_81, %c0_82] : memref<40x32xf32, #tpu.memory_space<vmem>>, vector<1x32xf32>
    %c40 = arith.constant 40 : index
    %c0_83 = arith.constant 0 : index
    %102 = vector.load %arg12[%c40, %c0_83] : memref<224x32xf32, #tpu.memory_space<vmem>>, vector<1x32xf32>
    tpu.vector_store %arg12[%c40, %c0_83], %101 {strides = array<i32>} : memref<224x32xf32, #tpu.memory_space<vmem>>, vector<1x32xf32>,
    %c4_84 = arith.constant 4 : index
    %c0_85 = arith.constant 0 : index
    %103 = vector.load %arg11[%c4_84, %c0_85] : memref<40x32xf32, #tpu.memory_space<vmem>>, vector<1x32xf32>
    %c42 = arith.constant 42 : index
    %c0_86 = arith.constant 0 : index
    %104 = vector.load %arg12[%c42, %c0_86] : memref<224x32xf32, #tpu.memory_space<vmem>>, vector<1x32xf32>
    tpu.vector_store %arg12[%c42, %c0_86], %103 {strides = array<i32>} : memref<224x32xf32, #tpu.memory_space<vmem>>, vector<1x32xf32>,
    %c8_87 = arith.constant 8 : index
    %c0_88 = arith.constant 0 : index
    %105 = vector.load %arg11[%c8_87, %c0_88] : memref<40x32xf32, #tpu.memory_space<vmem>>, vector<1x32xf32>
    %c66 = arith.constant 66 : index
    %c0_89 = arith.constant 0 : index
    %106 = vector.load %arg12[%c66, %c0_89] : memref<224x32xf32, #tpu.memory_space<vmem>>, vector<1x32xf32>
    tpu.vector_store %arg12[%c66, %c0_89], %105 {strides = array<i32>} : memref<224x32xf32, #tpu.memory_space<vmem>>, vector<1x32xf32>,
    %c9_90 = arith.constant 9 : index
    %c0_91 = arith.constant 0 : index
    %107 = vector.load %arg11[%c9_90, %c0_91] : memref<40x32xf32, #tpu.memory_space<vmem>>, vector<1x32xf32>
    %c68 = arith.constant 68 : index
    %c0_92 = arith.constant 0 : index
    %108 = vector.load %arg12[%c68, %c0_92] : memref<224x32xf32, #tpu.memory_space<vmem>>, vector<1x32xf32>
    tpu.vector_store %arg12[%c68, %c0_92], %107 {strides = array<i32>} : memref<224x32xf32, #tpu.memory_space<vmem>>, vector<1x32xf32>,
    %c10_93 = arith.constant 10 : index
    %c0_94 = arith.constant 0 : index
    %109 = vector.load %arg11[%c10_93, %c0_94] : memref<40x32xf32, #tpu.memory_space<vmem>>, vector<1x32xf32>
    %c70 = arith.constant 70 : index
    %c0_95 = arith.constant 0 : index
    %110 = vector.load %arg12[%c70, %c0_95] : memref<224x32xf32, #tpu.memory_space<vmem>>, vector<1x32xf32>
    tpu.vector_store %arg12[%c70, %c0_95], %109 {strides = array<i32>} : memref<224x32xf32, #tpu.memory_space<vmem>>, vector<1x32xf32>,
    %c11 = arith.constant 11 : index
    %c0_96 = arith.constant 0 : index
    %111 = vector.load %arg11[%c11, %c0_96] : memref<40x32xf32, #tpu.memory_space<vmem>>, vector<1x32xf32>
    %c72 = arith.constant 72 : index
    %c0_97 = arith.constant 0 : index
    %112 = vector.load %arg12[%c72, %c0_97] : memref<224x32xf32, #tpu.memory_space<vmem>>, vector<1x32xf32>
    tpu.vector_store %arg12[%c72, %c0_97], %111 {strides = array<i32>} : memref<224x32xf32, #tpu.memory_space<vmem>>, vector<1x32xf32>,
    %c12 = arith.constant 12 : index
    %c0_98 = arith.constant 0 : index
    %113 = vector.load %arg11[%c12, %c0_98] : memref<40x32xf32, #tpu.memory_space<vmem>>, vector<1x32xf32>
    %c74 = arith.constant 74 : index
    %c0_99 = arith.constant 0 : index
    %114 = vector.load %arg12[%c74, %c0_99] : memref<224x32xf32, #tpu.memory_space<vmem>>, vector<1x32xf32>
    tpu.vector_store %arg12[%c74, %c0_99], %113 {strides = array<i32>} : memref<224x32xf32, #tpu.memory_space<vmem>>, vector<1x32xf32>,
    %c16_100 = arith.constant 16 : index
    %c0_101 = arith.constant 0 : index
    %115 = vector.load %arg11[%c16_100, %c0_101] : memref<40x32xf32, #tpu.memory_space<vmem>>, vector<1x32xf32>
    %c98 = arith.constant 98 : index
    %c0_102 = arith.constant 0 : index
    %116 = vector.load %arg12[%c98, %c0_102] : memref<224x32xf32, #tpu.memory_space<vmem>>, vector<1x32xf32>
    tpu.vector_store %arg12[%c98, %c0_102], %115 {strides = array<i32>} : memref<224x32xf32, #tpu.memory_space<vmem>>, vector<1x32xf32>,
    %c17_103 = arith.constant 17 : index
    %c0_104 = arith.constant 0 : index
    %117 = vector.load %arg11[%c17_103, %c0_104] : memref<40x32xf32, #tpu.memory_space<vmem>>, vector<1x32xf32>
    %c100 = arith.constant 100 : index
    %c0_105 = arith.constant 0 : index
    %118 = vector.load %arg12[%c100, %c0_105] : memref<224x32xf32, #tpu.memory_space<vmem>>, vector<1x32xf32>
    tpu.vector_store %arg12[%c100, %c0_105], %117 {strides = array<i32>} : memref<224x32xf32, #tpu.memory_space<vmem>>, vector<1x32xf32>,
    %c18_106 = arith.constant 18 : index
    %c0_107 = arith.constant 0 : index
    %119 = vector.load %arg11[%c18_106, %c0_107] : memref<40x32xf32, #tpu.memory_space<vmem>>, vector<1x32xf32>
    %c102 = arith.constant 102 : index
    %c0_108 = arith.constant 0 : index
    %120 = vector.load %arg12[%c102, %c0_108] : memref<224x32xf32, #tpu.memory_space<vmem>>, vector<1x32xf32>
    tpu.vector_store %arg12[%c102, %c0_108], %119 {strides = array<i32>} : memref<224x32xf32, #tpu.memory_space<vmem>>, vector<1x32xf32>,
    %c19 = arith.constant 19 : index
    %c0_109 = arith.constant 0 : index
    %121 = vector.load %arg11[%c19, %c0_109] : memref<40x32xf32, #tpu.memory_space<vmem>>, vector<1x32xf32>
    %c104 = arith.constant 104 : index
    %c0_110 = arith.constant 0 : index
    %122 = vector.load %arg12[%c104, %c0_110] : memref<224x32xf32, #tpu.memory_space<vmem>>, vector<1x32xf32>
    tpu.vector_store %arg12[%c104, %c0_110], %121 {strides = array<i32>} : memref<224x32xf32, #tpu.memory_space<vmem>>, vector<1x32xf32>,
    %c20 = arith.constant 20 : index
    %c0_111 = arith.constant 0 : index
    %123 = vector.load %arg11[%c20, %c0_111] : memref<40x32xf32, #tpu.memory_space<vmem>>, vector<1x32xf32>
    %c106 = arith.constant 106 : index
    %c0_112 = arith.constant 0 : index
    %124 = vector.load %arg12[%c106, %c0_112] : memref<224x32xf32, #tpu.memory_space<vmem>>, vector<1x32xf32>
    tpu.vector_store %arg12[%c106, %c0_112], %123 {strides = array<i32>} : memref<224x32xf32, #tpu.memory_space<vmem>>, vector<1x32xf32>,
    %c24 = arith.constant 24 : index
    %c0_113 = arith.constant 0 : index
    %125 = vector.load %arg11[%c24, %c0_113] : memref<40x32xf32, #tpu.memory_space<vmem>>, vector<1x32xf32>
    %c130 = arith.constant 130 : index
    %c0_114 = arith.constant 0 : index
    %126 = vector.load %arg12[%c130, %c0_114] : memref<224x32xf32, #tpu.memory_space<vmem>>, vector<1x32xf32>
    tpu.vector_store %arg12[%c130, %c0_114], %125 {strides = array<i32>} : memref<224x32xf32, #tpu.memory_space<vmem>>, vector<1x32xf32>,
    %c25 = arith.constant 25 : index
    %c0_115 = arith.constant 0 : index
    %127 = vector.load %arg11[%c25, %c0_115] : memref<40x32xf32, #tpu.memory_space<vmem>>, vector<1x32xf32>
    %c132 = arith.constant 132 : index
    %c0_116 = arith.constant 0 : index
    %128 = vector.load %arg12[%c132, %c0_116] : memref<224x32xf32, #tpu.memory_space<vmem>>, vector<1x32xf32>
    tpu.vector_store %arg12[%c132, %c0_116], %127 {strides = array<i32>} : memref<224x32xf32, #tpu.memory_space<vmem>>, vector<1x32xf32>,
    %c26 = arith.constant 26 : index
    %c0_117 = arith.constant 0 : index
    %129 = vector.load %arg11[%c26, %c0_117] : memref<40x32xf32, #tpu.memory_space<vmem>>, vector<1x32xf32>
    %c134 = arith.constant 134 : index
    %c0_118 = arith.constant 0 : index
    %130 = vector.load %arg12[%c134, %c0_118] : memref<224x32xf32, #tpu.memory_space<vmem>>, vector<1x32xf32>
    tpu.vector_store %arg12[%c134, %c0_118], %129 {strides = array<i32>} : memref<224x32xf32, #tpu.memory_space<vmem>>, vector<1x32xf32>,
    %c27 = arith.constant 27 : index
    %c0_119 = arith.constant 0 : index
    %131 = vector.load %arg11[%c27, %c0_119] : memref<40x32xf32, #tpu.memory_space<vmem>>, vector<1x32xf32>
    %c136 = arith.constant 136 : index
    %c0_120 = arith.constant 0 : index
    %132 = vector.load %arg12[%c136, %c0_120] : memref<224x32xf32, #tpu.memory_space<vmem>>, vector<1x32xf32>
    tpu.vector_store %arg12[%c136, %c0_120], %131 {strides = array<i32>} : memref<224x32xf32, #tpu.memory_space<vmem>>, vector<1x32xf32>,
    %c28 = arith.constant 28 : index
    %c0_121 = arith.constant 0 : index
    %133 = vector.load %arg11[%c28, %c0_121] : memref<40x32xf32, #tpu.memory_space<vmem>>, vector<1x32xf32>
    %c138 = arith.constant 138 : index
    %c0_122 = arith.constant 0 : index
    %134 = vector.load %arg12[%c138, %c0_122] : memref<224x32xf32, #tpu.memory_space<vmem>>, vector<1x32xf32>
    tpu.vector_store %arg12[%c138, %c0_122], %133 {strides = array<i32>} : memref<224x32xf32, #tpu.memory_space<vmem>>, vector<1x32xf32>,
    %c32 = arith.constant 32 : index
    %c0_123 = arith.constant 0 : index
    %135 = vector.load %arg11[%c32, %c0_123] : memref<40x32xf32, #tpu.memory_space<vmem>>, vector<1x32xf32>
    %c162 = arith.constant 162 : index
    %c0_124 = arith.constant 0 : index
    %136 = vector.load %arg12[%c162, %c0_124] : memref<224x32xf32, #tpu.memory_space<vmem>>, vector<1x32xf32>
    tpu.vector_store %arg12[%c162, %c0_124], %135 {strides = array<i32>} : memref<224x32xf32, #tpu.memory_space<vmem>>, vector<1x32xf32>,
    %c33 = arith.constant 33 : index
    %c0_125 = arith.constant 0 : index
    %137 = vector.load %arg11[%c33, %c0_125] : memref<40x32xf32, #tpu.memory_space<vmem>>, vector<1x32xf32>
    %c164 = arith.constant 164 : index
    %c0_126 = arith.constant 0 : index
    %138 = vector.load %arg12[%c164, %c0_126] : memref<224x32xf32, #tpu.memory_space<vmem>>, vector<1x32xf32>
    tpu.vector_store %arg12[%c164, %c0_126], %137 {strides = array<i32>} : memref<224x32xf32, #tpu.memory_space<vmem>>, vector<1x32xf32>,
    %c34_127 = arith.constant 34 : index
    %c0_128 = arith.constant 0 : index
    %139 = vector.load %arg11[%c34_127, %c0_128] : memref<40x32xf32, #tpu.memory_space<vmem>>, vector<1x32xf32>
    %c166 = arith.constant 166 : index
    %c0_129 = arith.constant 0 : index
    %140 = vector.load %arg12[%c166, %c0_129] : memref<224x32xf32, #tpu.memory_space<vmem>>, vector<1x32xf32>
    tpu.vector_store %arg12[%c166, %c0_129], %139 {strides = array<i32>} : memref<224x32xf32, #tpu.memory_space<vmem>>, vector<1x32xf32>,
    %c35 = arith.constant 35 : index
    %c0_130 = arith.constant 0 : index
    %141 = vector.load %arg11[%c35, %c0_130] : memref<40x32xf32, #tpu.memory_space<vmem>>, vector<1x32xf32>
    %c168 = arith.constant 168 : index
    %c0_131 = arith.constant 0 : index
    %142 = vector.load %arg12[%c168, %c0_131] : memref<224x32xf32, #tpu.memory_space<vmem>>, vector<1x32xf32>
    tpu.vector_store %arg12[%c168, %c0_131], %141 {strides = array<i32>} : memref<224x32xf32, #tpu.memory_space<vmem>>, vector<1x32xf32>,
    %c36_132 = arith.constant 36 : index
    %c0_133 = arith.constant 0 : index
    %143 = vector.load %arg11[%c36_132, %c0_133] : memref<40x32xf32, #tpu.memory_space<vmem>>, vector<1x32xf32>
    %c170 = arith.constant 170 : index
    %c0_134 = arith.constant 0 : index
    %144 = vector.load %arg12[%c170, %c0_134] : memref<224x32xf32, #tpu.memory_space<vmem>>, vector<1x32xf32>
    tpu.vector_store %arg12[%c170, %c0_134], %143 {strides = array<i32>} : memref<224x32xf32, #tpu.memory_space<vmem>>, vector<1x32xf32>,
    %cst_135 = arith.constant 0.000000e+00 : f32
    %145 = vector.broadcast %cst_135 : f32 to vector<176x64xf32>
    %c0_136 = arith.constant 0 : index
    %c0_137 = arith.constant 0 : index
    %146 = vector.load %arg12[%c0_136, %c0_137] : memref<224x32xf32, #tpu.memory_space<vmem>>, vector<176x32xf32>
    %c0_138 = arith.constant 0 : index
    %c0_139 = arith.constant 0 : index
    %c0_140 = arith.constant 0 : index
    %147 = vector.load %arg5[%c0_138, %c0_139, %c0_140] : memref<9x32x64xf32, #tpu.memory_space<vmem>>, vector<1x32x64xf32>
    %148 = vector.shape_cast %147 : vector<1x32x64xf32> to vector<32x64xf32>
    %cst_141 = arith.constant dense<0.000000e+00> : vector<176x64xf32>
    %149 = tpu.matmul %146, %148, %cst_141 {dimension_numbers = #tpu.dot_dimension_numbers<[1], [0], [0], [1], [0, 0, 1, 1], [], []>} : vector<176x32xf32>, vector<32x64xf32>, vector<176x64xf32> -> vector<176x64xf32>
    %150 = arith.addf %145, %149 : vector<176x64xf32>
    %c1_142 = arith.constant 1 : index
    %c0_143 = arith.constant 0 : index
    %151 = vector.load %arg12[%c1_142, %c0_143] : memref<224x32xf32, #tpu.memory_space<vmem>>, vector<176x32xf32>
    %c1_144 = arith.constant 1 : index
    %c0_145 = arith.constant 0 : index
    %c0_146 = arith.constant 0 : index
    %152 = vector.load %arg5[%c1_144, %c0_145, %c0_146] : memref<9x32x64xf32, #tpu.memory_space<vmem>>, vector<1x32x64xf32>
    %153 = vector.shape_cast %152 : vector<1x32x64xf32> to vector<32x64xf32>
    %cst_147 = arith.constant dense<0.000000e+00> : vector<176x64xf32>
    %154 = tpu.matmul %151, %153, %cst_147 {dimension_numbers = #tpu.dot_dimension_numbers<[1], [0], [0], [1], [0, 0, 1, 1], [], []>} : vector<176x32xf32>, vector<32x64xf32>, vector<176x64xf32> -> vector<176x64xf32>
    %155 = arith.addf %150, %154 : vector<176x64xf32>
    %c2_148 = arith.constant 2 : index
    %c0_149 = arith.constant 0 : index
    %156 = vector.load %arg12[%c2_148, %c0_149] : memref<224x32xf32, #tpu.memory_space<vmem>>, vector<176x32xf32>
    %c2_150 = arith.constant 2 : index
    %c0_151 = arith.constant 0 : index
    %c0_152 = arith.constant 0 : index
    %157 = vector.load %arg5[%c2_150, %c0_151, %c0_152] : memref<9x32x64xf32, #tpu.memory_space<vmem>>, vector<1x32x64xf32>
    %158 = vector.shape_cast %157 : vector<1x32x64xf32> to vector<32x64xf32>
    %cst_153 = arith.constant dense<0.000000e+00> : vector<176x64xf32>
    %159 = tpu.matmul %156, %158, %cst_153 {dimension_numbers = #tpu.dot_dimension_numbers<[1], [0], [0], [1], [0, 0, 1, 1], [], []>} : vector<176x32xf32>, vector<32x64xf32>, vector<176x64xf32> -> vector<176x64xf32>
    %160 = arith.addf %155, %159 : vector<176x64xf32>
    %c16_154 = arith.constant 16 : index
    %c0_155 = arith.constant 0 : index
    %161 = vector.load %arg12[%c16_154, %c0_155] : memref<224x32xf32, #tpu.memory_space<vmem>>, vector<176x32xf32>
    %c3_156 = arith.constant 3 : index
    %c0_157 = arith.constant 0 : index
    %c0_158 = arith.constant 0 : index
    %162 = vector.load %arg5[%c3_156, %c0_157, %c0_158] : memref<9x32x64xf32, #tpu.memory_space<vmem>>, vector<1x32x64xf32>
    %163 = vector.shape_cast %162 : vector<1x32x64xf32> to vector<32x64xf32>
    %cst_159 = arith.constant dense<0.000000e+00> : vector<176x64xf32>
    %164 = tpu.matmul %161, %163, %cst_159 {dimension_numbers = #tpu.dot_dimension_numbers<[1], [0], [0], [1], [0, 0, 1, 1], [], []>} : vector<176x32xf32>, vector<32x64xf32>, vector<176x64xf32> -> vector<176x64xf32>
    %165 = arith.addf %160, %164 : vector<176x64xf32>
    %c17_160 = arith.constant 17 : index
    %c0_161 = arith.constant 0 : index
    %166 = vector.load %arg12[%c17_160, %c0_161] : memref<224x32xf32, #tpu.memory_space<vmem>>, vector<176x32xf32>
    %c4_162 = arith.constant 4 : index
    %c0_163 = arith.constant 0 : index
    %c0_164 = arith.constant 0 : index
    %167 = vector.load %arg5[%c4_162, %c0_163, %c0_164] : memref<9x32x64xf32, #tpu.memory_space<vmem>>, vector<1x32x64xf32>
    %168 = vector.shape_cast %167 : vector<1x32x64xf32> to vector<32x64xf32>
    %cst_165 = arith.constant dense<0.000000e+00> : vector<176x64xf32>
    %169 = tpu.matmul %166, %168, %cst_165 {dimension_numbers = #tpu.dot_dimension_numbers<[1], [0], [0], [1], [0, 0, 1, 1], [], []>} : vector<176x32xf32>, vector<32x64xf32>, vector<176x64xf32> -> vector<176x64xf32>
    %170 = arith.addf %165, %169 : vector<176x64xf32>
    %c18_166 = arith.constant 18 : index
    %c0_167 = arith.constant 0 : index
    %171 = vector.load %arg12[%c18_166, %c0_167] : memref<224x32xf32, #tpu.memory_space<vmem>>, vector<176x32xf32>
    %c5_168 = arith.constant 5 : index
    %c0_169 = arith.constant 0 : index
    %c0_170 = arith.constant 0 : index
    %172 = vector.load %arg5[%c5_168, %c0_169, %c0_170] : memref<9x32x64xf32, #tpu.memory_space<vmem>>, vector<1x32x64xf32>
    %173 = vector.shape_cast %172 : vector<1x32x64xf32> to vector<32x64xf32>
    %cst_171 = arith.constant dense<0.000000e+00> : vector<176x64xf32>
    %174 = tpu.matmul %171, %173, %cst_171 {dimension_numbers = #tpu.dot_dimension_numbers<[1], [0], [0], [1], [0, 0, 1, 1], [], []>} : vector<176x32xf32>, vector<32x64xf32>, vector<176x64xf32> -> vector<176x64xf32>
    %175 = arith.addf %170, %174 : vector<176x64xf32>
    %c32_172 = arith.constant 32 : index
    %c0_173 = arith.constant 0 : index
    %176 = vector.load %arg12[%c32_172, %c0_173] : memref<224x32xf32, #tpu.memory_space<vmem>>, vector<176x32xf32>
    %c6_174 = arith.constant 6 : index
    %c0_175 = arith.constant 0 : index
    %c0_176 = arith.constant 0 : index
    %177 = vector.load %arg5[%c6_174, %c0_175, %c0_176] : memref<9x32x64xf32, #tpu.memory_space<vmem>>, vector<1x32x64xf32>
    %178 = vector.shape_cast %177 : vector<1x32x64xf32> to vector<32x64xf32>
    %cst_177 = arith.constant dense<0.000000e+00> : vector<176x64xf32>
    %179 = tpu.matmul %176, %178, %cst_177 {dimension_numbers = #tpu.dot_dimension_numbers<[1], [0], [0], [1], [0, 0, 1, 1], [], []>} : vector<176x32xf32>, vector<32x64xf32>, vector<176x64xf32> -> vector<176x64xf32>
    %180 = arith.addf %175, %179 : vector<176x64xf32>
    %c33_178 = arith.constant 33 : index
    %c0_179 = arith.constant 0 : index
    %181 = vector.load %arg12[%c33_178, %c0_179] : memref<224x32xf32, #tpu.memory_space<vmem>>, vector<176x32xf32>
    %c7_180 = arith.constant 7 : index
    %c0_181 = arith.constant 0 : index
    %c0_182 = arith.constant 0 : index
    %182 = vector.load %arg5[%c7_180, %c0_181, %c0_182] : memref<9x32x64xf32, #tpu.memory_space<vmem>>, vector<1x32x64xf32>
    %183 = vector.shape_cast %182 : vector<1x32x64xf32> to vector<32x64xf32>
    %cst_183 = arith.constant dense<0.000000e+00> : vector<176x64xf32>
    %184 = tpu.matmul %181, %183, %cst_183 {dimension_numbers = #tpu.dot_dimension_numbers<[1], [0], [0], [1], [0, 0, 1, 1], [], []>} : vector<176x32xf32>, vector<32x64xf32>, vector<176x64xf32> -> vector<176x64xf32>
    %185 = arith.addf %180, %184 : vector<176x64xf32>
    %c34_184 = arith.constant 34 : index
    %c0_185 = arith.constant 0 : index
    %186 = vector.load %arg12[%c34_184, %c0_185] : memref<224x32xf32, #tpu.memory_space<vmem>>, vector<176x32xf32>
    %c8_186 = arith.constant 8 : index
    %c0_187 = arith.constant 0 : index
    %c0_188 = arith.constant 0 : index
    %187 = vector.load %arg5[%c8_186, %c0_187, %c0_188] : memref<9x32x64xf32, #tpu.memory_space<vmem>>, vector<1x32x64xf32>
    %188 = vector.shape_cast %187 : vector<1x32x64xf32> to vector<32x64xf32>
    %cst_189 = arith.constant dense<0.000000e+00> : vector<176x64xf32>
    %189 = tpu.matmul %186, %188, %cst_189 {dimension_numbers = #tpu.dot_dimension_numbers<[1], [0], [0], [1], [0, 0, 1, 1], [], []>} : vector<176x32xf32>, vector<32x64xf32>, vector<176x64xf32> -> vector<176x64xf32>
    %190 = arith.addf %185, %189 : vector<176x64xf32>
    %c0_190 = arith.constant 0 : index
    %c0_191 = arith.constant 0 : index
    %191 = vector.load %arg6[%c0_190, %c0_191] : memref<1x64xf32, #tpu.memory_space<vmem>>, vector<1x64xf32>
    %192 = vector.broadcast %191 : vector<1x64xf32> to vector<176x64xf32>
    %193 = arith.addf %190, %192 : vector<176x64xf32>
    %cst_192 = arith.constant 0.000000e+00 : f32
    %194 = vector.broadcast %cst_192 : f32 to vector<176x64xf32>
    %195 = arith.maximumf %193, %194 : vector<176x64xf32>
    %c0_193 = arith.constant 0 : index
    %c0_194 = arith.constant 0 : index
    %196 = vector.load %arg13[%c0_193, %c0_194] : memref<192x64xf32, #tpu.memory_space<vmem>>, vector<176x64xf32>
    tpu.vector_store %arg13[%c0_193, %c0_194], %195 {strides = array<i32>} : memref<192x64xf32, #tpu.memory_space<vmem>>, vector<176x64xf32>,
    %cst_195 = arith.constant 0.000000e+00 : f32
    %197 = vector.broadcast %cst_195 : f32 to vector<16x64xf32>
    %c176 = arith.constant 176 : index
    %c0_196 = arith.constant 0 : index
    %198 = vector.load %arg13[%c176, %c0_196] : memref<192x64xf32, #tpu.memory_space<vmem>>, vector<16x64xf32>
    tpu.vector_store %arg13[%c176, %c0_196], %197 {strides = array<i32>} : memref<192x64xf32, #tpu.memory_space<vmem>>, vector<16x64xf32>,
    %cst_197 = arith.constant 0.000000e+00 : f32
    %199 = vector.broadcast %cst_197 : f32 to vector<112x64xf32>
    %c0_198 = arith.constant 0 : index
    %c0_199 = arith.constant 0 : index
    %200 = vector.load %arg13[%c0_198, %c0_199] : memref<192x64xf32, #tpu.memory_space<vmem>>, vector<112x64xf32>
    %c0_200 = arith.constant 0 : index
    %c0_201 = arith.constant 0 : index
    %201 = vector.load %arg7[%c0_200, %c0_201] : memref<25x64xf32, #tpu.memory_space<vmem>>, vector<1x64xf32>
    %202 = vector.shape_cast %201 : vector<1x64xf32> to vector<64xf32>
    %203 = vector.shape_cast %202 : vector<64xf32> to vector<1x64xf32>
    %204 = vector.broadcast %203 : vector<1x64xf32> to vector<112x64xf32>
    %205 = arith.mulf %200, %204 : vector<112x64xf32>
    %206 = arith.addf %199, %205 : vector<112x64xf32>
    %c1_202 = arith.constant 1 : index
    %c0_203 = arith.constant 0 : index
    %207 = vector.load %arg13[%c1_202, %c0_203] : memref<192x64xf32, #tpu.memory_space<vmem>>, vector<112x64xf32>
    %c1_204 = arith.constant 1 : index
    %c0_205 = arith.constant 0 : index
    %208 = vector.load %arg7[%c1_204, %c0_205] : memref<25x64xf32, #tpu.memory_space<vmem>>, vector<1x64xf32>
    %209 = vector.shape_cast %208 : vector<1x64xf32> to vector<64xf32>
    %210 = vector.shape_cast %209 : vector<64xf32> to vector<1x64xf32>
    %211 = vector.broadcast %210 : vector<1x64xf32> to vector<112x64xf32>
    %212 = arith.mulf %207, %211 : vector<112x64xf32>
    %213 = arith.addf %206, %212 : vector<112x64xf32>
    %c2_206 = arith.constant 2 : index
    %c0_207 = arith.constant 0 : index
    %214 = vector.load %arg13[%c2_206, %c0_207] : memref<192x64xf32, #tpu.memory_space<vmem>>, vector<112x64xf32>
    %c2_208 = arith.constant 2 : index
    %c0_209 = arith.constant 0 : index
    %215 = vector.load %arg7[%c2_208, %c0_209] : memref<25x64xf32, #tpu.memory_space<vmem>>, vector<1x64xf32>
    %216 = vector.shape_cast %215 : vector<1x64xf32> to vector<64xf32>
    %217 = vector.shape_cast %216 : vector<64xf32> to vector<1x64xf32>
    %218 = vector.broadcast %217 : vector<1x64xf32> to vector<112x64xf32>
    %219 = arith.mulf %214, %218 : vector<112x64xf32>
    %220 = arith.addf %213, %219 : vector<112x64xf32>
    %c3_210 = arith.constant 3 : index
    %c0_211 = arith.constant 0 : index
    %221 = vector.load %arg13[%c3_210, %c0_211] : memref<192x64xf32, #tpu.memory_space<vmem>>, vector<112x64xf32>
    %c3_212 = arith.constant 3 : index
    %c0_213 = arith.constant 0 : index
    %222 = vector.load %arg7[%c3_212, %c0_213] : memref<25x64xf32, #tpu.memory_space<vmem>>, vector<1x64xf32>
    %223 = vector.shape_cast %222 : vector<1x64xf32> to vector<64xf32>
    %224 = vector.shape_cast %223 : vector<64xf32> to vector<1x64xf32>
    %225 = vector.broadcast %224 : vector<1x64xf32> to vector<112x64xf32>
    %226 = arith.mulf %221, %225 : vector<112x64xf32>
    %227 = arith.addf %220, %226 : vector<112x64xf32>
    %c4_214 = arith.constant 4 : index
    %c0_215 = arith.constant 0 : index
    %228 = vector.load %arg13[%c4_214, %c0_215] : memref<192x64xf32, #tpu.memory_space<vmem>>, vector<112x64xf32>
    %c4_216 = arith.constant 4 : index
    %c0_217 = arith.constant 0 : index
    %229 = vector.load %arg7[%c4_216, %c0_217] : memref<25x64xf32, #tpu.memory_space<vmem>>, vector<1x64xf32>
    %230 = vector.shape_cast %229 : vector<1x64xf32> to vector<64xf32>
    %231 = vector.shape_cast %230 : vector<64xf32> to vector<1x64xf32>
    %232 = vector.broadcast %231 : vector<1x64xf32> to vector<112x64xf32>
    %233 = arith.mulf %228, %232 : vector<112x64xf32>
    %234 = arith.addf %227, %233 : vector<112x64xf32>
    %c16_218 = arith.constant 16 : index
    %c0_219 = arith.constant 0 : index
    %235 = vector.load %arg13[%c16_218, %c0_219] : memref<192x64xf32, #tpu.memory_space<vmem>>, vector<112x64xf32>
    %c5_220 = arith.constant 5 : index
    %c0_221 = arith.constant 0 : index
    %236 = vector.load %arg7[%c5_220, %c0_221] : memref<25x64xf32, #tpu.memory_space<vmem>>, vector<1x64xf32>
    %237 = vector.shape_cast %236 : vector<1x64xf32> to vector<64xf32>
    %238 = vector.shape_cast %237 : vector<64xf32> to vector<1x64xf32>
    %239 = vector.broadcast %238 : vector<1x64xf32> to vector<112x64xf32>
    %240 = arith.mulf %235, %239 : vector<112x64xf32>
    %241 = arith.addf %234, %240 : vector<112x64xf32>
    %c17_222 = arith.constant 17 : index
    %c0_223 = arith.constant 0 : index
    %242 = vector.load %arg13[%c17_222, %c0_223] : memref<192x64xf32, #tpu.memory_space<vmem>>, vector<112x64xf32>
    %c6_224 = arith.constant 6 : index
    %c0_225 = arith.constant 0 : index
    %243 = vector.load %arg7[%c6_224, %c0_225] : memref<25x64xf32, #tpu.memory_space<vmem>>, vector<1x64xf32>
    %244 = vector.shape_cast %243 : vector<1x64xf32> to vector<64xf32>
    %245 = vector.shape_cast %244 : vector<64xf32> to vector<1x64xf32>
    %246 = vector.broadcast %245 : vector<1x64xf32> to vector<112x64xf32>
    %247 = arith.mulf %242, %246 : vector<112x64xf32>
    %248 = arith.addf %241, %247 : vector<112x64xf32>
    %c18_226 = arith.constant 18 : index
    %c0_227 = arith.constant 0 : index
    %249 = vector.load %arg13[%c18_226, %c0_227] : memref<192x64xf32, #tpu.memory_space<vmem>>, vector<112x64xf32>
    %c7_228 = arith.constant 7 : index
    %c0_229 = arith.constant 0 : index
    %250 = vector.load %arg7[%c7_228, %c0_229] : memref<25x64xf32, #tpu.memory_space<vmem>>, vector<1x64xf32>
    %251 = vector.shape_cast %250 : vector<1x64xf32> to vector<64xf32>
    %252 = vector.shape_cast %251 : vector<64xf32> to vector<1x64xf32>
    %253 = vector.broadcast %252 : vector<1x64xf32> to vector<112x64xf32>
    %254 = arith.mulf %249, %253 : vector<112x64xf32>
    %255 = arith.addf %248, %254 : vector<112x64xf32>
    %c19_230 = arith.constant 19 : index
    %c0_231 = arith.constant 0 : index
    %256 = vector.load %arg13[%c19_230, %c0_231] : memref<192x64xf32, #tpu.memory_space<vmem>>, vector<112x64xf32>
    %c8_232 = arith.constant 8 : index
    %c0_233 = arith.constant 0 : index
    %257 = vector.load %arg7[%c8_232, %c0_233] : memref<25x64xf32, #tpu.memory_space<vmem>>, vector<1x64xf32>
    %258 = vector.shape_cast %257 : vector<1x64xf32> to vector<64xf32>
    %259 = vector.shape_cast %258 : vector<64xf32> to vector<1x64xf32>
    %260 = vector.broadcast %259 : vector<1x64xf32> to vector<112x64xf32>
    %261 = arith.mulf %256, %260 : vector<112x64xf32>
    %262 = arith.addf %255, %261 : vector<112x64xf32>
    %c20_234 = arith.constant 20 : index
    %c0_235 = arith.constant 0 : index
    %263 = vector.load %arg13[%c20_234, %c0_235] : memref<192x64xf32, #tpu.memory_space<vmem>>, vector<112x64xf32>
    %c9_236 = arith.constant 9 : index
    %c0_237 = arith.constant 0 : index
    %264 = vector.load %arg7[%c9_236, %c0_237] : memref<25x64xf32, #tpu.memory_space<vmem>>, vector<1x64xf32>
    %265 = vector.shape_cast %264 : vector<1x64xf32> to vector<64xf32>
    %266 = vector.shape_cast %265 : vector<64xf32> to vector<1x64xf32>
    %267 = vector.broadcast %266 : vector<1x64xf32> to vector<112x64xf32>
    %268 = arith.mulf %263, %267 : vector<112x64xf32>
    %269 = arith.addf %262, %268 : vector<112x64xf32>
    %c32_238 = arith.constant 32 : index
    %c0_239 = arith.constant 0 : index
    %270 = vector.load %arg13[%c32_238, %c0_239] : memref<192x64xf32, #tpu.memory_space<vmem>>, vector<112x64xf32>
    %c10_240 = arith.constant 10 : index
    %c0_241 = arith.constant 0 : index
    %271 = vector.load %arg7[%c10_240, %c0_241] : memref<25x64xf32, #tpu.memory_space<vmem>>, vector<1x64xf32>
    %272 = vector.shape_cast %271 : vector<1x64xf32> to vector<64xf32>
    %273 = vector.shape_cast %272 : vector<64xf32> to vector<1x64xf32>
    %274 = vector.broadcast %273 : vector<1x64xf32> to vector<112x64xf32>
    %275 = arith.mulf %270, %274 : vector<112x64xf32>
    %276 = arith.addf %269, %275 : vector<112x64xf32>
    %c33_242 = arith.constant 33 : index
    %c0_243 = arith.constant 0 : index
    %277 = vector.load %arg13[%c33_242, %c0_243] : memref<192x64xf32, #tpu.memory_space<vmem>>, vector<112x64xf32>
    %c11_244 = arith.constant 11 : index
    %c0_245 = arith.constant 0 : index
    %278 = vector.load %arg7[%c11_244, %c0_245] : memref<25x64xf32, #tpu.memory_space<vmem>>, vector<1x64xf32>
    %279 = vector.shape_cast %278 : vector<1x64xf32> to vector<64xf32>
    %280 = vector.shape_cast %279 : vector<64xf32> to vector<1x64xf32>
    %281 = vector.broadcast %280 : vector<1x64xf32> to vector<112x64xf32>
    %282 = arith.mulf %277, %281 : vector<112x64xf32>
    %283 = arith.addf %276, %282 : vector<112x64xf32>
    %c34_246 = arith.constant 34 : index
    %c0_247 = arith.constant 0 : index
    %284 = vector.load %arg13[%c34_246, %c0_247] : memref<192x64xf32, #tpu.memory_space<vmem>>, vector<112x64xf32>
    %c12_248 = arith.constant 12 : index
    %c0_249 = arith.constant 0 : index
    %285 = vector.load %arg7[%c12_248, %c0_249] : memref<25x64xf32, #tpu.memory_space<vmem>>, vector<1x64xf32>
    %286 = vector.shape_cast %285 : vector<1x64xf32> to vector<64xf32>
    %287 = vector.shape_cast %286 : vector<64xf32> to vector<1x64xf32>
    %288 = vector.broadcast %287 : vector<1x64xf32> to vector<112x64xf32>
    %289 = arith.mulf %284, %288 : vector<112x64xf32>
    %290 = arith.addf %283, %289 : vector<112x64xf32>
    %c35_250 = arith.constant 35 : index
    %c0_251 = arith.constant 0 : index
    %291 = vector.load %arg13[%c35_250, %c0_251] : memref<192x64xf32, #tpu.memory_space<vmem>>, vector<112x64xf32>
    %c13 = arith.constant 13 : index
    %c0_252 = arith.constant 0 : index
    %292 = vector.load %arg7[%c13, %c0_252] : memref<25x64xf32, #tpu.memory_space<vmem>>, vector<1x64xf32>
    %293 = vector.shape_cast %292 : vector<1x64xf32> to vector<64xf32>
    %294 = vector.shape_cast %293 : vector<64xf32> to vector<1x64xf32>
    %295 = vector.broadcast %294 : vector<1x64xf32> to vector<112x64xf32>
    %296 = arith.mulf %291, %295 : vector<112x64xf32>
    %297 = arith.addf %290, %296 : vector<112x64xf32>
    %c36_253 = arith.constant 36 : index
    %c0_254 = arith.constant 0 : index
    %298 = vector.load %arg13[%c36_253, %c0_254] : memref<192x64xf32, #tpu.memory_space<vmem>>, vector<112x64xf32>
    %c14 = arith.constant 14 : index
    %c0_255 = arith.constant 0 : index
    %299 = vector.load %arg7[%c14, %c0_255] : memref<25x64xf32, #tpu.memory_space<vmem>>, vector<1x64xf32>
    %300 = vector.shape_cast %299 : vector<1x64xf32> to vector<64xf32>
    %301 = vector.shape_cast %300 : vector<64xf32> to vector<1x64xf32>
    %302 = vector.broadcast %301 : vector<1x64xf32> to vector<112x64xf32>
    %303 = arith.mulf %298, %302 : vector<112x64xf32>
    %304 = arith.addf %297, %303 : vector<112x64xf32>
    %c48 = arith.constant 48 : index
    %c0_256 = arith.constant 0 : index
    %305 = vector.load %arg13[%c48, %c0_256] : memref<192x64xf32, #tpu.memory_space<vmem>>, vector<112x64xf32>
    %c15 = arith.constant 15 : index
    %c0_257 = arith.constant 0 : index
    %306 = vector.load %arg7[%c15, %c0_257] : memref<25x64xf32, #tpu.memory_space<vmem>>, vector<1x64xf32>
    %307 = vector.shape_cast %306 : vector<1x64xf32> to vector<64xf32>
    %308 = vector.shape_cast %307 : vector<64xf32> to vector<1x64xf32>
    %309 = vector.broadcast %308 : vector<1x64xf32> to vector<112x64xf32>
    %310 = arith.mulf %305, %309 : vector<112x64xf32>
    %311 = arith.addf %304, %310 : vector<112x64xf32>
    %c49 = arith.constant 49 : index
    %c0_258 = arith.constant 0 : index
    %312 = vector.load %arg13[%c49, %c0_258] : memref<192x64xf32, #tpu.memory_space<vmem>>, vector<112x64xf32>
    %c16_259 = arith.constant 16 : index
    %c0_260 = arith.constant 0 : index
    %313 = vector.load %arg7[%c16_259, %c0_260] : memref<25x64xf32, #tpu.memory_space<vmem>>, vector<1x64xf32>
    %314 = vector.shape_cast %313 : vector<1x64xf32> to vector<64xf32>
    %315 = vector.shape_cast %314 : vector<64xf32> to vector<1x64xf32>
    %316 = vector.broadcast %315 : vector<1x64xf32> to vector<112x64xf32>
    %317 = arith.mulf %312, %316 : vector<112x64xf32>
    %318 = arith.addf %311, %317 : vector<112x64xf32>
    %c50 = arith.constant 50 : index
    %c0_261 = arith.constant 0 : index
    %319 = vector.load %arg13[%c50, %c0_261] : memref<192x64xf32, #tpu.memory_space<vmem>>, vector<112x64xf32>
    %c17_262 = arith.constant 17 : index
    %c0_263 = arith.constant 0 : index
    %320 = vector.load %arg7[%c17_262, %c0_263] : memref<25x64xf32, #tpu.memory_space<vmem>>, vector<1x64xf32>
    %321 = vector.shape_cast %320 : vector<1x64xf32> to vector<64xf32>
    %322 = vector.shape_cast %321 : vector<64xf32> to vector<1x64xf32>
    %323 = vector.broadcast %322 : vector<1x64xf32> to vector<112x64xf32>
    %324 = arith.mulf %319, %323 : vector<112x64xf32>
    %325 = arith.addf %318, %324 : vector<112x64xf32>
    %c51 = arith.constant 51 : index
    %c0_264 = arith.constant 0 : index
    %326 = vector.load %arg13[%c51, %c0_264] : memref<192x64xf32, #tpu.memory_space<vmem>>, vector<112x64xf32>
    %c18_265 = arith.constant 18 : index
    %c0_266 = arith.constant 0 : index
    %327 = vector.load %arg7[%c18_265, %c0_266] : memref<25x64xf32, #tpu.memory_space<vmem>>, vector<1x64xf32>
    %328 = vector.shape_cast %327 : vector<1x64xf32> to vector<64xf32>
    %329 = vector.shape_cast %328 : vector<64xf32> to vector<1x64xf32>
    %330 = vector.broadcast %329 : vector<1x64xf32> to vector<112x64xf32>
    %331 = arith.mulf %326, %330 : vector<112x64xf32>
    %332 = arith.addf %325, %331 : vector<112x64xf32>
    %c52 = arith.constant 52 : index
    %c0_267 = arith.constant 0 : index
    %333 = vector.load %arg13[%c52, %c0_267] : memref<192x64xf32, #tpu.memory_space<vmem>>, vector<112x64xf32>
    %c19_268 = arith.constant 19 : index
    %c0_269 = arith.constant 0 : index
    %334 = vector.load %arg7[%c19_268, %c0_269] : memref<25x64xf32, #tpu.memory_space<vmem>>, vector<1x64xf32>
    %335 = vector.shape_cast %334 : vector<1x64xf32> to vector<64xf32>
    %336 = vector.shape_cast %335 : vector<64xf32> to vector<1x64xf32>
    %337 = vector.broadcast %336 : vector<1x64xf32> to vector<112x64xf32>
    %338 = arith.mulf %333, %337 : vector<112x64xf32>
    %339 = arith.addf %332, %338 : vector<112x64xf32>
    %c64 = arith.constant 64 : index
    %c0_270 = arith.constant 0 : index
    %340 = vector.load %arg13[%c64, %c0_270] : memref<192x64xf32, #tpu.memory_space<vmem>>, vector<112x64xf32>
    %c20_271 = arith.constant 20 : index
    %c0_272 = arith.constant 0 : index
    %341 = vector.load %arg7[%c20_271, %c0_272] : memref<25x64xf32, #tpu.memory_space<vmem>>, vector<1x64xf32>
    %342 = vector.shape_cast %341 : vector<1x64xf32> to vector<64xf32>
    %343 = vector.shape_cast %342 : vector<64xf32> to vector<1x64xf32>
    %344 = vector.broadcast %343 : vector<1x64xf32> to vector<112x64xf32>
    %345 = arith.mulf %340, %344 : vector<112x64xf32>
    %346 = arith.addf %339, %345 : vector<112x64xf32>
    %c65 = arith.constant 65 : index
    %c0_273 = arith.constant 0 : index
    %347 = vector.load %arg13[%c65, %c0_273] : memref<192x64xf32, #tpu.memory_space<vmem>>, vector<112x64xf32>
    %c21 = arith.constant 21 : index
    %c0_274 = arith.constant 0 : index
    %348 = vector.load %arg7[%c21, %c0_274] : memref<25x64xf32, #tpu.memory_space<vmem>>, vector<1x64xf32>
    %349 = vector.shape_cast %348 : vector<1x64xf32> to vector<64xf32>
    %350 = vector.shape_cast %349 : vector<64xf32> to vector<1x64xf32>
    %351 = vector.broadcast %350 : vector<1x64xf32> to vector<112x64xf32>
    %352 = arith.mulf %347, %351 : vector<112x64xf32>
    %353 = arith.addf %346, %352 : vector<112x64xf32>
    %c66_275 = arith.constant 66 : index
    %c0_276 = arith.constant 0 : index
    %354 = vector.load %arg13[%c66_275, %c0_276] : memref<192x64xf32, #tpu.memory_space<vmem>>, vector<112x64xf32>
    %c22 = arith.constant 22 : index
    %c0_277 = arith.constant 0 : index
    %355 = vector.load %arg7[%c22, %c0_277] : memref<25x64xf32, #tpu.memory_space<vmem>>, vector<1x64xf32>
    %356 = vector.shape_cast %355 : vector<1x64xf32> to vector<64xf32>
    %357 = vector.shape_cast %356 : vector<64xf32> to vector<1x64xf32>
    %358 = vector.broadcast %357 : vector<1x64xf32> to vector<112x64xf32>
    %359 = arith.mulf %354, %358 : vector<112x64xf32>
    %360 = arith.addf %353, %359 : vector<112x64xf32>
    %c67 = arith.constant 67 : index
    %c0_278 = arith.constant 0 : index
    %361 = vector.load %arg13[%c67, %c0_278] : memref<192x64xf32, #tpu.memory_space<vmem>>, vector<112x64xf32>
    %c23 = arith.constant 23 : index
    %c0_279 = arith.constant 0 : index
    %362 = vector.load %arg7[%c23, %c0_279] : memref<25x64xf32, #tpu.memory_space<vmem>>, vector<1x64xf32>
    %363 = vector.shape_cast %362 : vector<1x64xf32> to vector<64xf32>
    %364 = vector.shape_cast %363 : vector<64xf32> to vector<1x64xf32>
    %365 = vector.broadcast %364 : vector<1x64xf32> to vector<112x64xf32>
    %366 = arith.mulf %361, %365 : vector<112x64xf32>
    %367 = arith.addf %360, %366 : vector<112x64xf32>
    %c68_280 = arith.constant 68 : index
    %c0_281 = arith.constant 0 : index
    %368 = vector.load %arg13[%c68_280, %c0_281] : memref<192x64xf32, #tpu.memory_space<vmem>>, vector<112x64xf32>
    %c24_282 = arith.constant 24 : index
    %c0_283 = arith.constant 0 : index
    %369 = vector.load %arg7[%c24_282, %c0_283] : memref<25x64xf32, #tpu.memory_space<vmem>>, vector<1x64xf32>
    %370 = vector.shape_cast %369 : vector<1x64xf32> to vector<64xf32>
    %371 = vector.shape_cast %370 : vector<64xf32> to vector<1x64xf32>
    %372 = vector.broadcast %371 : vector<1x64xf32> to vector<112x64xf32>
    %373 = arith.mulf %368, %372 : vector<112x64xf32>
    %374 = arith.addf %367, %373 : vector<112x64xf32>
    %cst_284 = arith.constant dense<0.000000e+00> : vector<112xf32>
    %375 = vector.multi_reduction <add>, %374, %cst_284 [1] : vector<112x64xf32> to vector<112xf32>
    %376 = vector.shape_cast %375 : vector<112xf32> to vector<112x1xf32>
    %c0_285 = arith.constant 0 : index
    %c0_286 = arith.constant 0 : index
    %377 = vector.load %arg8[%c0_285, %c0_286] : memref<1x1xf32, #tpu.memory_space<vmem>>, vector<1x1xf32>
    %378 = vector.broadcast %377 : vector<1x1xf32> to vector<112x1xf32>
    %379 = arith.addf %376, %378 : vector<112x1xf32>
    %c0_287 = arith.constant 0 : index
    %c0_288 = arith.constant 0 : index
    %380 = vector.load %arg9[%c0_287, %c0_288] : memref<112x1xf32, #tpu.memory_space<vmem>>, vector<112x1xf32>
    tpu.vector_store %arg9[%c0_287, %c0_288], %379 {strides = array<i32>} : memref<112x1xf32, #tpu.memory_space<vmem>>, vector<112x1xf32>,
    return
  }
}

</mosaic_0001>

<bundles_post_ra>
// kernel: forward.1
= control target key start
LH: loop header
LB: loop body
LE: loop exit
PB: predicated region body
PF: predicated region fallthrough
CT: control target
= control target key end

     0   :  { %s9088_s0 = inlined_call_operand.vmem [shape: f32[72,1], index: 0, kind: input, shape index: {}]   ;;  %s9089_s1 = inlined_call_operand.vmem [shape: f32[4,16], index: 1, kind: input, shape index: {}]   ;;  %s9090_s2 = inlined_call_operand.vmem [shape: f32[1,16], index: 2, kind: input, shape index: {}]   ;;  %s9091_s3 = inlined_call_operand.vmem [shape: f32[9,16,32], index: 3, kind: input, shape index: {}]   ;;  %s9092_s4 = inlined_call_operand.vmem [shape: f32[1,32], index: 4, kind: input, shape index: {}]   ;;  %s9093_s5 = inlined_call_operand.hbm [shape: f32[9,32,64], index: 5, kind: input, shape index: {}]   ;;  %s9094_s6 = inlined_call_operand.vmem [shape: f32[1,64], index: 6, kind: input, shape index: {}]   ;;  %s9095_s7 = inlined_call_operand.vmem [shape: f32[25,64], index: 7, kind: input, shape index: {}]   ;;  %s9096_s8 = inlined_call_operand.<no memory space> [shape: f32[1,1], index: 8, kind: input, shape index: {}]   ;;  %s9097_s9 = inlined_call_operand.vmem [shape: f32[112,1], index: 9, kind: output, shape index: {}]  }
   0x1   :  { %v14_v0 = vstv %s9096_s8 }
   0x2   :  { %15 = vst [vmem:[#allocation6] sm:$0x1] %v14_v0 }
   0x3   :  { %16 = vsyncpa [#allocation8], 0  ;;  %s6322_s11 = smov [#allocation7]  }
   0x4   :  { %s32_s12 = sshll.u32 %s6322_s11, 4  ;;  %s33_s12 = int_to_ptr.vmem [resolvable:$true] %s32_s12 }
   0x5   :  { %s6308_s13 = scalar_lea.vmem %s33_s12, 4608  ;;  %p6313_p1 = scmp.lt.s32.totalorder %s33_s12, %s33_s12 }
   0x6   :  { %p6309_p0 = scmp.ne.s32.totalorder %s33_s12, %s6308_s13  ;;  %p6314_p2 = scmp.lt.s32.totalorder %s6308_s13, %s6308_s13 }
   0x8   :  { %p6315_p3 = por %p6314_p2, %p6313_p1 }
   0xa   :  { %p6316_p4 = pnand %p6315_p3, %p6309_p0 }
   0xc   :  { %6319 = shalt.err (!%p6316_p4)
}
   0xd   :  { %s6323_s14 = smov 128   ;;  %s6324_s15 = smov 8  }
   0xe   :  { %38 = dma.hbm_to_vmem [thread:$0]  %s9093_s5, 4608, %s33_s12, [#allocation8], %s6323_s14, %s6323_s14, %s6324_s15  }
   0xf   :  { %6320 = dma.done.wait [#allocation8], 4608  }
  0x10   :  { %6321 = vsyncadd [#allocation8], 4294962688  ;;  %vm1390_vm0 = vcmask 261120   ;;  %vm4091_vm1 = vcmask 523264   ;;  %v6325_v1 = vmov 0.0   ;;  %v6326_v2 = vmov 0  }
  0x11   :  { %1396 = vst.msk [vmem:[#allocation4] sm:$0xff] %vm1390_vm0, %v6325_v1  ;;  %1397 = vst.msk [vmem:[#allocation4 + $0x8] sm:$0xff] %vm1390_vm0, %v6325_v1  ;;  %6274 = vset.pattern.permute.xlu1 %v6326_v2  ;;  %6273 = vset.pattern.permute.xlu0 %v6326_v2  ;;  %v109_v3 = vld [vmem:[%s9088_s0 + $0x1] sm:$0xff]  ;;  %v110_v5 = vld [vmem:[%s9088_s0 + $0x9] sm:$0xff]  ;;  %vm313_vm2 = vcmask 130048   ;;  %vm6327_vm3 = vmmov 0  }
  0x12   :  { %1398 = vst.msk [vmem:[#allocation4 + $0x10] sm:$0xff] %vm1390_vm0, %v6325_v1  ;;  %1399 = vst.msk [vmem:[#allocation4 + $0x18] sm:$0xff] %vm1390_vm0, %v6325_v1  ;;  %5723 = vmatprep.subr.mxu0 %v6325_v1  ;;  %6263 = vmatprep.subr.mxu1 %v6325_v1  ;;  %v48_v4 = vld [vmem:[%s9088_s0] sm:$0xff]  ;;  %v49_v6 = vld [vmem:[%s9088_s0 + $0x8] sm:$0xff]  ;;  %vm1425_vm4 = vcmask 253952   ;;  %vm5114_vm5 = vcmask 7168  }
  0x13   :  { %1400 = vst.msk [vmem:[#allocation4 + $0x20] sm:$0xff] %vm1390_vm0, %v6325_v1  ;;  %1401 = vst.msk [vmem:[#allocation4 + $0x28] sm:$0xff] %vm1390_vm0, %v6325_v1  ;;  %119 = vperm.xlu1 %6274, %v109_v3   ;;  %58 = vperm.xlu0 %6273, %v48_v4   ;;  %v171_v7 = vld [vmem:[%s9088_s0 + $0x10] sm:$0xff]  ;;  %v51_v9 = vld [vmem:[%s9088_s0 + $0x18] sm:$0xff] }
  0x14   :  { %1402 = vst.msk [vmem:[#allocation4 + $0x30] sm:$0xff] %vm1390_vm0, %v6325_v1  ;;  %1403 = vst.msk [vmem:[#allocation4 + $0x38] sm:$0xff] %vm1390_vm0, %v6325_v1  ;;  %v111_v8 = vld [vmem:[%s9088_s0 + $0x11] sm:$0xff]  ;;  %v233_v10 = vld [vmem:[%s9088_s0 + $0x19] sm:$0xff]  ;;  %5727 = vmatprep.mubr.msk.f32.mxu0 %vm6327_vm3, %v6325_v1  ;;  %5755 = vmatprep.mubr.msk.f32.mxu1 %vm6327_vm3, %v6325_v1 }
  0x15   :  { %1404 = vst.msk [vmem:[#allocation4 + $0x40] sm:$0xff] %vm1390_vm0, %v6325_v1  ;;  %1405 = vst.msk [vmem:[#allocation4 + $0x48] sm:$0xff] %vm1390_vm0, %v6325_v1  ;;  %v5140_v11 = vld [vmem:[%s9091_s3 + $0x18] sm:$0xff]  ;;  %v52_v12 = vld [vmem:[%s9088_s0 + $0x20] sm:$0xff] }
  0x16   :  { %1406 = vst.msk [vmem:[#allocation4 + $0x50] sm:$0xff] %vm1390_vm0, %v6325_v1  ;;  %1407 = vst.msk [vmem:[#allocation4 + $0x58] sm:$0xff] %vm1390_vm0, %v6325_v1  ;;  %5724 = vmatpush3.msra.mxu0 %v5140_v11  ;;  %v5139_v13 = vld [vmem:[%s9091_s3 + $0x10] sm:$0xff]  ;;  %v234_v14 = vld [vmem:[%s9088_s0 + $0x21] sm:$0xff] }
  0x17   :  { %1408 = vst.msk [vmem:[#allocation4 + $0x60] sm:$0xff] %vm1390_vm0, %v6325_v1  ;;  %1409 = vst.msk [vmem:[#allocation4 + $0x68] sm:$0xff] %vm1390_vm0, %v6325_v1  ;;  %124 = vperm.xlu1 %6274, %v110_v5   ;;  %63 = vperm.xlu0 %6273, %v49_v6   ;;  %v53_v15 = vld [vmem:[%s9088_s0 + $0x28] sm:$0xff]  ;;  %v236_v18 = vld [vmem:[%s9088_s0 + $0x31] sm:$0xff] }
  0x18   :  { %1410 = vst.msk [vmem:[#allocation4 + $0x70] sm:$0xff] %vm1390_vm0, %v6325_v1  ;;  %1411 = vst.msk [vmem:[#allocation4 + $0x78] sm:$0xff] %vm1390_vm0, %v6325_v1  ;;  %5725 = vmatprep.subr.mxu0 %v6325_v1  ;;  %v235_v16 = vld [vmem:[%s9088_s0 + $0x29] sm:$0xff]  ;;  %v6508_v20 = vld [vmem:[%s9091_s3] sm:$0xff] }
  0x19   :  { %1412 = vst.msk [vmem:[#allocation4 + $0x80] sm:$0xff] %vm1390_vm0, %v6325_v1  ;;  %1413 = vst.msk [vmem:[#allocation4 + $0x88] sm:$0xff] %vm1390_vm0, %v6325_v1  ;;  %5726 = vmatpush3.msra.mxu0 %v5139_v13  ;;  %v6495_v17 = vld [vmem:[%s9091_s3 + $0x8] sm:$0xff]  ;;  %v175_v19 = vld [vmem:[%s9088_s0 + $0x30] sm:$0xff] }
  0x1a   :  { %1414 = vst.msk [vmem:[#allocation4 + $0x90] sm:$0xff] %vm1390_vm0, %v6325_v1  ;;  %1415 = vst.msk [vmem:[#allocation4 + $0x98] sm:$0xff] %vm1390_vm0, %v6325_v1  ;;  %5742 = vmatprep.subr.mxu0 %v6325_v1  ;;  %6265 = vmatpush3.msra.mxu1 %v6495_v17  ;;  %v237_v21 = vld [vmem:[%s9088_s0 + $0x39] sm:$0xff]  ;;  %v6521_v27 = vld [vmem:[%s9089_s1 + $0x1] ss:$0 sm:$0xff] }
  0x1b   :  { %1416 = vst.msk [vmem:[#allocation4 + $0xa0] sm:$0xff] %vm1390_vm0, %v6325_v1  ;;  %1417 = vst.msk [vmem:[#allocation4 + $0xa8] sm:$0xff] %vm1390_vm0, %v6325_v1  ;;  %185 = vperm.xlu1 %6274, %v171_v7   ;;  %180 = vperm.xlu0 %6273, %v49_v6   ;;  %v176_v22 = vld [vmem:[%s9088_s0 + $0x38] sm:$0xff]  ;;  %v6526_v28 = vld [vmem:[%s9089_s1] ss:$0 sm:$0xff] }
  0x1c   :  { %1418 = vst.msk [vmem:[#allocation4 + $0xb0] sm:$0xff] %vm1390_vm0, %v6325_v1  ;;  %1419 = vst.msk [vmem:[#allocation4 + $0xb8] sm:$0xff] %vm1390_vm0, %v6325_v1  ;;  %6264 = vmatprep.subr.mxu1 %v6325_v1  ;;  %v6531_v31 = vld [vmem:[%s9089_s1 + $0x2] ss:$0 sm:$0xff]  ;;  %v6542_v40 = vld [vmem:[%s9089_s1 + $0x3] ss:$0 sm:$0xff] }
  0x1d   :  { %1420 = vst.msk [vmem:[#allocation4 + $0xc0] sm:$0xff] %vm1390_vm0, %v6325_v1  ;;  %1421 = vst.msk [vmem:[#allocation4 + $0xc8] sm:$0xff] %vm1390_vm0, %v6325_v1  ;;  %6266 = vmatpush3.msra.mxu1 %v6508_v20  ;;  %v6549_v49 = vld [vmem:[%s9090_s2] ss:$0 sm:$0xff] }
  0x1e   :  { %1422 = vst.msk [vmem:[#allocation4 + $0xd0] sm:$0xff] %vm1390_vm0, %v6325_v1  ;;  %5780 = vmatprep.subr.mxu1 %v6325_v1 }
  0x1f   :  { %4114 = vst.msk [vmem:[#allocation5 + $0xb0] sm:$0xff] %vm4091_vm1, %v6325_v1  ;;  %129 = vperm.xlu1 %6274, %v111_v8   ;;  %68 = vperm.xlu0 %6273, %v171_v7  }
  0x20   :  { %321 = vst.msk [vmem:[#allocation2 + $0x38] sm:$0xff] %vm313_vm2, %v6325_v1 }
  0x23   :  { %246 = vperm.xlu1 %6274, %v111_v8   ;;  %241 = vperm.xlu0 %6273, %v110_v5  }
  0x27   :  { %73 = vperm.xlu1 %6274, %v51_v9   ;;  %190 = vperm.xlu0 %6273, %v51_v9  }
  0x2b   :  { %251 = vperm.xlu1 %6274, %v233_v10   ;;  %134 = vperm.xlu0 %6273, %v233_v10  }
  0x2f   :  { %78 = vperm.xlu1 %6274, %v52_v12   ;;  %195 = vperm.xlu0 %6273, %v52_v12  }
  0x33   :  { %256 = vperm.xlu1 %6274, %v234_v14   ;;  %139 = vperm.xlu0 %6273, %v234_v14  }
  0x37   :  { %83 = vperm.xlu1 %6274, %v53_v15   ;;  %200 = vperm.xlu0 %6273, %v53_v15  }
  0x3b   :  { %261 = vperm.xlu1 %6274, %v235_v16   ;;  %144 = vperm.xlu0 %6273, %v235_v16  }
  0x3f   :  { %266 = vperm.xlu1 %6274, %v236_v18   ;;  %205 = vperm.xlu0 %6273, %v175_v19  }
  0x43   :  { %149 = vperm.xlu1 %6274, %v236_v18   ;;  %88 = vperm.xlu0 %6273, %v175_v19  }
  0x47   :  { %271 = vperm.xlu1 %6274, %v237_v21   ;;  %210 = vperm.xlu0 %6273, %v176_v22  }
  0x8e   :  { %v120_v23 = vpop.permute.xlu1 %119  ;;  %v59_v24 = vpop.permute.xlu0 %58 }
  0x8f   :  { %v156_v32 = vmul.f32 %v6521_v27, %v120_v23  ;;  %v95_v33 = vmul.f32 %v6526_v28, %v59_v24 }
  0x91   :  { %v163_v41 = vadd.f32 %v156_v32, %v95_v33 }
  0x92   :  { %v125_v25 = vpop.permute.xlu1 %124  ;;  %v64_v26 = vpop.permute.xlu0 %63 }
  0x93   :  { %v157_v34 = vmul.f32 %v6521_v27, %v125_v25  ;;  %v96_v35 = vmul.f32 %v6526_v28, %v64_v26 }
  0x95   :  { %v164_v42 = vadd.f32 %v157_v34, %v96_v35 }
  0x96   :  { %v186_v29 = vpop.permute.xlu1 %185  ;;  %v181_v30 = vpop.permute.xlu0 %180 }
  0x97   :  { %v218_v38 = vmul.f32 %v6531_v31, %v186_v29  ;;  %v217_v39 = vmul.f32 %v6531_v31, %v181_v30 }
  0x99   :  { %v225_v45 = vadd.f32 %v218_v38, %v164_v42  ;;  %v224_v46 = vadd.f32 %v217_v39, %v163_v41 }
  0x9a   :  { %v130_v36 = vpop.permute.xlu1 %129  ;;  %v69_v37 = vpop.permute.xlu0 %68 }
  0x9b   :  { %v158_v50 = vmul.f32 %v6521_v27, %v130_v36  ;;  %v97_v51 = vmul.f32 %v6526_v28, %v69_v37 }
  0x9d   :  { %v165_v59 = vadd.f32 %v158_v50, %v97_v51  ;;  %v5159_v51 = vld [vmem:[%s9091_s3 + $0x38] sm:$0xff] }
  0x9e   :  { %v247_v43 = vpop.permute.xlu1 %246  ;;  %v242_v44 = vpop.permute.xlu0 %241 }
  0x9f   :  { %v279_v47 = vmul.f32 %v6542_v40, %v247_v43  ;;  %v278_v48 = vmul.f32 %v6542_v40, %v242_v44 }
  0xa1   :  { %v286_v52 = vadd.f32 %v279_v47, %v225_v45  ;;  %v285_v53 = vadd.f32 %v278_v48, %v224_v46 }
  0xa2   :  { %v74_v54 = vpop.permute.xlu1 %73  ;;  %v191_v55 = vpop.permute.xlu0 %190 }
  0xa3   :  { %v300_v56 = vadd.f32 %v6549_v49, %v286_v52  ;;  %v299_v57 = vadd.f32 %v6549_v49, %v285_v53  ;;  %v219_v58 = vmul.f32 %v6531_v31, %v191_v55  ;;  %v98_v7 = vmul.f32 %v6526_v28, %v74_v54  ;;  %v5158_v55 = vld [vmem:[%s9091_s3 + $0x30] sm:$0xff] }
  0xa5   :  { %v307_v60 = vmax.f32 %v300_v56, 0.0  ;;  %v306_v61 = vmax.f32 %v299_v57, 0.0  ;;  %v226_v0 = vadd.f32 %v219_v58, %v165_v59 }
  0xa6   :  { %v252_v62 = vpop.permute.xlu1 %251  ;;  %v135_v63 = vpop.permute.xlu0 %134 }
  0xa7   :  { %315 = vst.msk [vmem:[#allocation2 + $0x8] sm:$0xff] %vm313_vm2, %v307_v60  ;;  %314 = vst.msk [vmem:[#allocation2] sm:$0xff] %vm313_vm2, %v306_v61  ;;  %v280_v2 = vmul.f32 %v6542_v40, %v252_v62  ;;  %v159_v4 = vmul.f32 %v6521_v27, %v135_v63 }
  0xa9   :  { %v287_v3 = vadd.f32 %v280_v2, %v226_v0  ;;  %v166_v11 = vadd.f32 %v159_v4, %v98_v7  ;;  %v5172_v4 = vld [vmem:[%s9091_s3 + $0x50] sm:$0xff] }
  0xaa   :  { %v79_v5 = vpop.permute.xlu1 %78  ;;  %v196_v6 = vpop.permute.xlu0 %195 }
  0xab   :  { %v301_v8 = vadd.f32 %v6549_v49, %v287_v3  ;;  %v220_v9 = vmul.f32 %v6531_v31, %v196_v6  ;;  %v99_v23 = vmul.f32 %v6526_v28, %v79_v5  ;;  %v5152_v6 = vld [vmem:[%s9091_s3 + $0x28] sm:$0xff] }
  0xad   :  { %v308_v10 = vmax.f32 %v301_v8, 0.0  ;;  %v227_v15 = vadd.f32 %v220_v9, %v166_v11  ;;  %v5151_v8 = vld [vmem:[%s9091_s3 + $0x20] sm:$0xff] }
  0xae   :  { %v257_v12 = vpop.permute.xlu1 %256  ;;  %v140_v13 = vpop.permute.xlu0 %139  ;;  %v329_v14 = vld [vmem:[#allocation2 + $0x1] sm:$0xff] }
  0xaf   :  { %316 = vst.msk [vmem:[#allocation2 + $0x10] sm:$0xff] %vm313_vm2, %v308_v10  ;;  %v281_v16 = vmul.f32 %v6542_v40, %v257_v12  ;;  %5728 = vmatmul.mubr.msk.f32.vlgmr.msra.gmra.mxu0 %vm313_vm2, %v329_v14  ;;  %v160_v19 = vmul.f32 %v6521_v27, %v140_v13  ;;  %v665_v2 = vld [vmem:[#allocation2 + $0x8] sm:$0xff]  ;;  %v322_v7 = vld [vmem:[#allocation2] sm:$0xff]  ;;  %v5187_v14 = vld [vmem:[%s9091_s3 + $0x78] sm:$0xff] }
  0xb0   :  { %5730 = vmatprep.mubr.msk.f32.mxu0 %vm6327_vm3, %v6325_v1  ;;  %5743 = vmatpush3.msra.mxu0 %v6495_v17  ;;  %v5166_v10 = vld [vmem:[%s9091_s3 + $0x48] sm:$0xff]  ;;  %v5165_v12 = vld [vmem:[%s9091_s3 + $0x40] sm:$0xff] }
  0xb1   :  { %v288_v18 = vadd.f32 %v281_v16, %v227_v15  ;;  %5744 = vmatprep.subr.mxu0 %v6325_v1  ;;  %v167_v29 = vadd.f32 %v160_v19, %v99_v23  ;;  %v547_v11 = vld [vmem:[#allocation2 + $0x2] sm:$0xff]  ;;  %v5186_v15 = vld [vmem:[%s9091_s3 + $0x70] sm:$0xff] }
  0xb2   :  { %v84_v21 = vpop.permute.xlu1 %83  ;;  %v201_v22 = vpop.permute.xlu0 %200  ;;  %5745 = vmatpush3.msra.mxu0 %v6508_v20  ;;  %v5179_v23 = vld [vmem:[%s9091_s3 + $0x60] sm:$0xff] }
  0xb3   :  { %v302_v24 = vadd.f32 %v6549_v49, %v288_v18  ;;  %v221_v25 = vmul.f32 %v6531_v31, %v201_v22  ;;  %5761 = vmatprep.subr.mxu0 %v6325_v1  ;;  %v100_v35 = vmul.f32 %v6526_v28, %v84_v21  ;;  %v5180_v22 = vld [vmem:[%s9091_s3 + $0x68] sm:$0xff] }
  0xb5   :  { %v309_v26 = vmax.f32 %v302_v24, 0.0  ;;  %v228_v33 = vadd.f32 %v221_v25, %v167_v29  ;;  %v5193_v29 = vld [vmem:[%s9091_s3 + $0x80] sm:$0xff] }
  0xb6   :  { %v262_v17 = vpop.permute.xlu1 %261  ;;  %v145_v30 = vpop.permute.xlu0 %144  ;;  %v6576_v32 = vld [vmem:[#allocation2 + $0x9] sm:$0xff] }
  0xb7   :  { %317 = vst.msk [vmem:[#allocation2 + $0x18] sm:$0xff] %vm313_vm2, %v309_v26  ;;  %v282_v34 = vmul.f32 %v6542_v40, %v262_v17  ;;  %v161_v20 = vmul.f32 %v6521_v27, %v145_v30  ;;  %5731 = vmatmul.mubr.msk.f32.gmra.mxu0 %vm313_vm2, %v6576_v32  ;;  %v901_v13 = vld [vmem:[#allocation2 + $0xa] sm:$0xff] }
  0xb8   :  { %5733 = vmatprep.mubr.msk.f32.mxu0 %vm6327_vm3, %v6325_v1  ;;  %v5194_v26 = vld [vmem:[%s9091_s3 + $0x88] sm:$0xff] }
  0xb9   :  { %v289_v36 = vadd.f32 %v282_v34, %v228_v33  ;;  %v168_v41 = vadd.f32 %v161_v20, %v100_v35  ;;  %v1500_v33 = vld [vmem:[#allocation7 + $0x18] sm:$0xff]  ;;  %v1526_v34 = vld [vmem:[#allocation7 + $0x30] sm:$0xff]  ;;  %v1525_v35 = vld [vmem:[#allocation7 + $0x28] sm:$0xff] }
  0xba   :  { %v267_v37 = vpop.permute.xlu1 %266  ;;  %v206_v38 = vpop.permute.xlu0 %205  ;;  %v1499_v20 = vld [vmem:[#allocation7 + $0x10] sm:$0xff] }
  0xbb   :  { %v303_v39 = vadd.f32 %v6549_v49, %v289_v36  ;;  %v222_v42 = vmul.f32 %v6531_v31, %v206_v38  ;;  %v283_v44 = vmul.f32 %v6542_v40, %v267_v37  ;;  %v1498_v36 = vld [vmem:[#allocation7 + $0x8] sm:$0xff]  ;;  %v1497_v37 = vld [vmem:[#allocation7] sm:$0xff] }
  0xbc   :  { %v1501_v38 = vld [vmem:[#allocation4 + $0x1] sm:$0xff] }
  0xbd   :  { %v310_v43 = vmax.f32 %v303_v39, 0.0  ;;  %v229_v45 = vadd.f32 %v222_v42, %v168_v41  ;;  %v1475_v39 = vld [vmem:[#allocation4] sm:$0xff]  ;;  %v1502_v41 = vld [vmem:[#allocation4 + $0x9] sm:$0xff] }
  0xbe   :  { %v150_v46 = vpop.permute.xlu1 %149  ;;  %v89_v47 = vpop.permute.xlu0 %88  ;;  %v6589_v48 = vld [vmem:[#allocation2 + $0x11] sm:$0xff] }
  0xbf   :  { %v6591_v50 = vld [vmem:[#allocation2 + $0x18] sm:$0xff]  ;;  %318 = vst.msk [vmem:[#allocation2 + $0x20] sm:$0xff] %vm313_vm2, %v310_v43  ;;  %v290_v52 = vadd.f32 %v283_v44, %v229_v45  ;;  %v162_v53 = vmul.f32 %v6521_v27, %v150_v46  ;;  %v101_v54 = vmul.f32 %v6526_v28, %v89_v47  ;;  %5734 = vmatmul.mubr.msk.f32.gmra.mxu0 %vm313_vm2, %v6589_v48  ;;  %v1476_v42 = vld [vmem:[#allocation4 + $0x8] sm:$0xff]  ;;  %v6829_v45 = vld [vmem:[#allocation4 + $0x19] sm:$0xff] }
  0xc0   :  { %5756 = vmatmul.mubr.msk.f32.vlgmr.msra.gmra.mxu1 %vm313_vm2, %v6591_v50  ;;  %5736 = vmatprep.mubr.msk.f32.mxu0 %vm6327_vm3, %v6325_v1  ;;  %v6706_v16 = vld [vmem:[#allocation2 + $0x12] sm:$0xff]  ;;  %v6831_v46 = vld [vmem:[#allocation4 + $0x18] sm:$0xff] }
  0xc1   :  { %5758 = vmatprep.mubr.msk.f32.mxu1 %vm6327_vm3, %v6325_v1  ;;  %v304_v27 = vadd.f32 %v6549_v49, %v290_v52  ;;  %5781 = vmatpush3.msra.mxu1 %v5159_v51  ;;  %v169_v58 = vadd.f32 %v162_v53, %v101_v54  ;;  %v6821_v43 = vld [vmem:[#allocation4 + $0x11] sm:$0xff]  ;;  %v2036_v47 = vld [vmem:[#allocation7 + $0x58] sm:$0xff] }
  0xc2   :  { %v272_v28 = vpop.permute.xlu1 %271  ;;  %v211_v56 = vpop.permute.xlu0 %210  ;;  %5782 = vmatprep.subr.mxu1 %v6325_v1  ;;  %v6823_v44 = vld [vmem:[#allocation4 + $0x10] sm:$0xff] }
  0xc3   :  { %v311_v57 = vmax.f32 %v304_v27, 0.0  ;;  %v223_v59 = vmul.f32 %v6531_v31, %v211_v56  ;;  %5783 = vmatpush3.msra.mxu1 %v5158_v55  ;;  %v284_v60 = vmul.f32 %v6542_v40, %v272_v28  ;;  %v5173_v40 = vld [vmem:[%s9091_s3 + $0x58] sm:$0xff] }
  0xc4   :  { %5818 = vmatprep.subr.mxu1 %v6325_v1  ;;  %v2035_v51 = vld [vmem:[#allocation7 + $0x50] sm:$0xff]  ;;  %v2034_v27 = vld [vmem:[#allocation7 + $0x48] sm:$0xff] }
  0xc5   :  { %319 = vst.msk [vmem:[#allocation2 + $0x28] sm:$0xff] %vm313_vm2, %v311_v57  ;;  %v230_v61 = vadd.f32 %v223_v59, %v169_v58 }
  0xc6   :  { %v6616_v62 = vld [vmem:[#allocation2 + $0x19] sm:$0xff] }
  0xc7   :  { %v6618_v63 = vld [vmem:[#allocation2 + $0x20] sm:$0xff]  ;;  %v291_v0 = vadd.f32 %v284_v60, %v230_v61  ;;  %5737 = vmatmul.mubr.msk.f32.gmra.mxu0 %vm313_vm2, %v6616_v62 }
  0xc8   :  { %5759 = vmatmul.mubr.msk.f32.gmra.mxu1 %vm313_vm2, %v6618_v63  ;;  %5739 = vmatprep.mubr.msk.f32.mxu0 %vm6327_vm3, %v6325_v1  ;;  %v903_v18 = vld [vmem:[#allocation2 + $0x1a] sm:$0xff] }
  0xc9   :  { %5784 = vmatprep.mubr.msk.f32.mxu1 %vm6327_vm3, %v6325_v1  ;;  %v305_v31 = vadd.f32 %v6549_v49, %v291_v0  ;;  %v6644_v49 = vld [vmem:[#allocation2 + $0x10] sm:$0xff] }
  0xcb   :  { %v312_v3 = vmax.f32 %v305_v31, 0.0 }
  0xcc   :  { %5785 = vmatmul.mubr.msk.f32.vlgmr.msra.gmra.mxu1 %vm313_vm2, %v665_v2  ;;  %v6636_v5 = vld [vmem:[#allocation2 + $0x21] sm:$0xff] }
  0xcd   :  { %5787 = vmatprep.mubr.msk.f32.mxu1 %vm6327_vm3, %v6325_v1  ;;  %5819 = vmatpush3.msra.mxu1 %v5173_v40  ;;  %320 = vst.msk [vmem:[#allocation2 + $0x30] sm:$0xff] %vm313_vm2, %v312_v3  ;;  %v6677_v9 = vld [vmem:[#allocation2 + $0x28] sm:$0xff] }
  0xce   :  { %5740 = vmatmul.mubr.msk.f32.gmra.mxu0 %vm313_vm2, %v6636_v5  ;;  %5820 = vmatprep.subr.mxu1 %v6325_v1  ;;  %v904_v19 = vld [vmem:[#allocation2 + $0x22] sm:$0xff] }
  0xcf   :  { %5746 = vmatprep.mubr.msk.f32.mxu0 %vm6327_vm3, %v6325_v1  ;;  %5821 = vmatpush3.msra.mxu1 %v5172_v4 }
  0xd0   :  { %5788 = vmatmul.mubr.msk.f32.gmra.mxu1 %vm313_vm2, %v6644_v49  ;;  %5856 = vmatprep.subr.mxu1 %v6325_v1 }
  0xd1   :  { %5790 = vmatprep.mubr.msk.f32.mxu1 %vm6327_vm3, %v6325_v1 }
  0xd2   :  { %5747 = vmatmul.mubr.msk.f32.vlgmr.msra.gmra.mxu0 %vm313_vm2, %v322_v7  ;;  %v2324_v7 = vld [vmem:[#allocation7 + $0x68] sm:$0xff] }
  0xd3   :  { %5762 = vmatpush3.msra.mxu0 %v5152_v6  ;;  %5749 = vmatprep.mubr.msk.f32.mxu0 %vm6327_vm3, %v6325_v1 }
  0xd4   :  { %5791 = vmatmul.mubr.msk.f32.gmra.mxu1 %vm313_vm2, %v6591_v50  ;;  %5763 = vmatprep.subr.mxu0 %v6325_v1  ;;  %v905_v21 = vld [vmem:[#allocation2 + $0x2a] sm:$0xff]  ;;  %v1259_v30 = vld [vmem:[#allocation2 + $0x32] sm:$0xff] }
  0xd5   :  { %5793 = vmatprep.mubr.msk.f32.mxu1 %vm6327_vm3, %v6325_v1  ;;  %5764 = vmatpush3.msra.mxu0 %v5151_v8  ;;  %v1140_v24 = vld [vmem:[#allocation2 + $0x29] sm:$0xff]  ;;  %v1141_v25 = vld [vmem:[#allocation2 + $0x31] sm:$0xff] }
  0xd6   :  { %5750 = vmatmul.mubr.msk.f32.gmra.mxu0 %vm313_vm2, %v665_v2  ;;  %5799 = vmatprep.subr.mxu0 %v6325_v1  ;;  %v1023_v17 = vld [vmem:[#allocation2 + $0x30] sm:$0xff]  ;;  %v2326_v2 = vld [vmem:[#allocation7 + $0x78] sm:$0xff] }
  0xd7   :  { %5752 = vmatprep.mubr.msk.f32.mxu0 %vm6327_vm3, %v6325_v1  ;;  %v2323_v8 = vld [vmem:[#allocation7 + $0x60] sm:$0xff] }
  0xd8   :  { %5794 = vmatmul.mubr.msk.f32.gmra.mxu1 %vm313_vm2, %v6618_v63 }
  0xd9   :  { %5796 = vmatprep.mubr.msk.f32.mxu1 %vm6327_vm3, %v6325_v1 }
  0xda   :  { %5753 = vmatmul.mubr.msk.f32.gmra.mxu0 %vm313_vm2, %v6644_v49 }
  0xdb   :  { %5765 = vmatprep.mubr.msk.f32.mxu0 %vm6327_vm3, %v6325_v1 }
  0xdc   :  { %5797 = vmatmul.mubr.msk.f32.gmra.mxu1 %vm313_vm2, %v6677_v9 }
  0xdd   :  { %5822 = vmatprep.mubr.msk.f32.mxu1 %vm6327_vm3, %v6325_v1 }
  0xde   :  { %5766 = vmatmul.mubr.msk.f32.vlgmr.msra.gmra.mxu0 %vm313_vm2, %v547_v11  ;;  %v6837_v11 = vld [vmem:[#allocation7 + $0x98] sm:$0xff] }
  0xdf   :  { %5800 = vmatpush3.msra.mxu0 %v5166_v10  ;;  %5768 = vmatprep.mubr.msk.f32.mxu0 %vm6327_vm3, %v6325_v1 }
  0xe0   :  { %5823 = vmatmul.mubr.msk.f32.vlgmr.msra.gmra.mxu1 %vm313_vm2, %v901_v13  ;;  %5801 = vmatprep.subr.mxu0 %v6325_v1 }
  0xe1   :  { %5825 = vmatprep.mubr.msk.f32.mxu1 %vm6327_vm3, %v6325_v1  ;;  %5802 = vmatpush3.msra.mxu0 %v5165_v12 }
  0xe2   :  { %5769 = vmatmul.mubr.msk.f32.gmra.mxu0 %vm313_vm2, %v901_v13  ;;  %5837 = vmatprep.subr.mxu0 %v6325_v1 }
  0xe3   :  { %5771 = vmatprep.mubr.msk.f32.mxu0 %vm6327_vm3, %v6325_v1  ;;  %5857 = vmatpush3.msra.mxu1 %v5187_v14 }
  0xe4   :  { %5826 = vmatmul.mubr.msk.f32.gmra.mxu1 %vm313_vm2, %v6706_v16  ;;  %5858 = vmatprep.subr.mxu1 %v6325_v1 }
  0xe5   :  { %5828 = vmatprep.mubr.msk.f32.mxu1 %vm6327_vm3, %v6325_v1  ;;  %5859 = vmatpush3.msra.mxu1 %v5186_v15 }
  0xe6   :  { %5772 = vmatmul.mubr.msk.f32.gmra.mxu0 %vm313_vm2, %v6706_v16 }
  0xe7   :  { %5774 = vmatprep.mubr.msk.f32.mxu0 %vm6327_vm3, %v6325_v1 }
  0xe8   :  { %5829 = vmatmul.mubr.msk.f32.gmra.mxu1 %vm313_vm2, %v903_v18 }
  0xe9   :  { %5831 = vmatprep.mubr.msk.f32.mxu1 %vm6327_vm3, %v6325_v1 }
  0xea   :  { %5775 = vmatmul.mubr.msk.f32.gmra.mxu0 %vm313_vm2, %v903_v18 }
  0xeb   :  { %5777 = vmatprep.mubr.msk.f32.mxu0 %vm6327_vm3, %v6325_v1 }
  0xec   :  { %5832 = vmatmul.mubr.msk.f32.gmra.mxu1 %vm313_vm2, %v904_v19 }
  0xed   :  { %5834 = vmatprep.mubr.msk.f32.mxu1 %vm6327_vm3, %v6325_v1 }
  0xee   :  { %5778 = vmatmul.mubr.msk.f32.gmra.mxu0 %vm313_vm2, %v904_v19 }
  0xef   :  { %5803 = vmatprep.mubr.msk.f32.mxu0 %vm6327_vm3, %v6325_v1 }
  0xf0   :  { %5835 = vmatmul.mubr.msk.f32.gmra.mxu1 %vm313_vm2, %v905_v21 }
  0xf1   :  { %5860 = vmatprep.mubr.msk.f32.mxu1 %vm6327_vm3, %v6325_v1 }
  0xf2   :  { %5804 = vmatmul.mubr.msk.f32.vlgmr.msra.gmra.mxu0 %vm313_vm2, %v6576_v32  ;;  %v1527_v32 = vld [vmem:[#allocation7 + $0x38] sm:$0xff] }
  0xf3   :  { %5838 = vmatpush3.msra.mxu0 %v5180_v22  ;;  %5806 = vmatprep.mubr.msk.f32.mxu0 %vm6327_vm3, %v6325_v1 }
  0xf4   :  { %5861 = vmatmul.mubr.msk.f32.vlgmr.msra.gmra.mxu1 %vm313_vm2, %v6589_v48  ;;  %5839 = vmatprep.subr.mxu0 %v6325_v1 }
  0xf5   :  { %5863 = vmatprep.mubr.msk.f32.mxu1 %vm6327_vm3, %v6325_v1  ;;  %5840 = vmatpush3.msra.mxu0 %v5179_v23 }
  0xf6   :  { %5807 = vmatmul.mubr.msk.f32.gmra.mxu0 %vm313_vm2, %v6589_v48  ;;  %5875 = vmatprep.subr.mxu0 %v6325_v1 }
  0xf7   :  { %5809 = vmatprep.mubr.msk.f32.mxu0 %vm6327_vm3, %v6325_v1  ;;  %5894 = vmatprep.subr.mxu1 %v1527_v32 }
  0xf8   :  { %5864 = vmatmul.mubr.msk.f32.gmra.mxu1 %vm313_vm2, %v6616_v62 }
  0xf9   :  { %5866 = vmatprep.mubr.msk.f32.mxu1 %vm6327_vm3, %v6325_v1  ;;  %5895 = vmatpush3.msra.mxu1 %v1527_v32 }
  0xfa   :  { %5810 = vmatmul.mubr.msk.f32.gmra.mxu0 %vm313_vm2, %v6616_v62  ;;  %5896 = vmatprep.subr.mxu1 %v1526_v34  ;;  %v2033_v62 = vld [vmem:[#allocation7 + $0x40] sm:$0xff] }
  0xfb   :  { %5812 = vmatprep.mubr.msk.f32.mxu0 %vm6327_vm3, %v6325_v1  ;;  %5897 = vmatpush3.msra.mxu1 %v1526_v34 }
  0xfc   :  { %5867 = vmatmul.mubr.msk.f32.gmra.mxu1 %vm313_vm2, %v6636_v5  ;;  %5898 = vmatprep.subr.mxu1 %v1525_v35 }
  0xfd   :  { %5869 = vmatprep.mubr.msk.f32.mxu1 %vm6327_vm3, %v6325_v1  ;;  %5899 = vmatpush3.msra.mxu1 %v1525_v35 }
  0xfe   :  { %5813 = vmatmul.mubr.msk.f32.gmra.mxu0 %vm313_vm2, %v6636_v5  ;;  %v2325_v5 = vld [vmem:[#allocation7 + $0x70] sm:$0xff] }
  0xff   :  { %5815 = vmatprep.mubr.msk.f32.mxu0 %vm6327_vm3, %v6325_v1 }
 0x100   :  { %5870 = vmatmul.mubr.msk.f32.gmra.mxu1 %vm313_vm2, %v1140_v24 }
 0x101   :  { %5872 = vmatprep.mubr.msk.f32.mxu1 %vm6327_vm3, %v6325_v1 }
 0x102   :  { %5816 = vmatmul.mubr.msk.f32.gmra.mxu0 %vm313_vm2, %v1140_v24 }
 0x103   :  { %5841 = vmatprep.mubr.msk.f32.mxu0 %vm6327_vm3, %v6325_v1 }
 0x104   :  { %5873 = vmatmul.mubr.msk.f32.gmra.mxu1 %vm313_vm2, %v1141_v25 }
 0x105   :  { %5902 = vmatprep.mubr.msk.f32.mxu1 %vm1390_vm0, %v1501_v38 }
 0x106   :  { %5842 = vmatmul.mubr.msk.f32.vlgmr.msra.gmra.mxu0 %vm313_vm2, %v6644_v49 }
 0x107   :  { %5876 = vmatpush3.msra.mxu0 %v5194_v26  ;;  %5844 = vmatprep.mubr.msk.f32.mxu0 %vm6327_vm3, %v6325_v1 }
 0x108   :  { %5877 = vmatprep.subr.mxu0 %v6325_v1 }
 0x109   :  { %5878 = vmatpush3.msra.mxu0 %v5193_v29 }
 0x10a   :  { %5845 = vmatmul.mubr.msk.f32.gmra.mxu0 %vm313_vm2, %v6591_v50  ;;  %5935 = vmatprep.subr.mxu0 %v1500_v33 }
 0x10b   :  { %5847 = vmatprep.mubr.msk.f32.mxu0 %vm6327_vm3, %v6325_v1 }
 0x10e   :  { %5848 = vmatmul.mubr.msk.f32.gmra.mxu0 %vm313_vm2, %v6618_v63 }
 0x10f   :  { %5850 = vmatprep.mubr.msk.f32.mxu0 %vm6327_vm3, %v6325_v1 }
 0x112   :  { %5851 = vmatmul.mubr.msk.f32.gmra.mxu0 %vm313_vm2, %v6677_v9 }
 0x113   :  { %5853 = vmatprep.mubr.msk.f32.mxu0 %vm6327_vm3, %v6325_v1 }
 0x116   :  { %5854 = vmatmul.mubr.msk.f32.gmra.mxu0 %vm313_vm2, %v1023_v17 }
 0x117   :  { %5879 = vmatprep.mubr.msk.f32.mxu0 %vm6327_vm3, %v6325_v1 }
 0x11a   :  { %5880 = vmatmul.mubr.msk.f32.vlgmr.msra.gmra.mxu0 %vm313_vm2, %v6706_v16 }
 0x11b   :  { %5882 = vmatprep.mubr.msk.f32.mxu0 %vm6327_vm3, %v6325_v1  ;;  %5936 = vmatpush3.msra.mxu0 %v1500_v33 }
 0x11c   :  { %5937 = vmatprep.subr.mxu0 %v1499_v20 }
 0x11d   :  { %5938 = vmatpush3.msra.mxu0 %v1499_v20 }
 0x11e   :  { %5883 = vmatmul.mubr.msk.f32.gmra.mxu0 %vm313_vm2, %v903_v18  ;;  %5939 = vmatprep.subr.mxu0 %v1498_v36 }
 0x11f   :  { %5885 = vmatprep.mubr.msk.f32.mxu0 %vm6327_vm3, %v6325_v1  ;;  %5940 = vmatpush3.msra.mxu0 %v1498_v36 }
 0x120   :  { %5941 = vmatprep.subr.mxu0 %v1497_v37 }
 0x121   :  { %5942 = vmatpush3.msra.mxu0 %v1497_v37 }
 0x122   :  { %5886 = vmatmul.mubr.msk.f32.gmra.mxu0 %vm313_vm2, %v904_v19  ;;  %6017 = vmatprep.subr.mxu0 %v2326_v2 }
 0x123   :  { %5888 = vmatprep.mubr.msk.f32.mxu0 %vm6327_vm3, %v6325_v1 }
 0x126   :  { %5889 = vmatmul.mubr.msk.f32.gmra.mxu0 %vm313_vm2, %v905_v21 }
 0x127   :  { %5891 = vmatprep.mubr.msk.f32.mxu0 %vm6327_vm3, %v6325_v1  ;;  %v1524_v1 = vld [vmem:[#allocation7 + $0x20] sm:$0xff] }
 0x128   :  { %5900 = vmatprep.subr.mxu1 %v1524_v1 }
 0x129   :  { %5901 = vmatpush3.msra.mxu1 %v1524_v1 }
 0x12a   :  { %5892 = vmatmul.mubr.msk.f32.gmra.mxu0 %vm313_vm2, %v1259_v30  ;;  %5903 = vmatmul.mubr.msk.f32.vlgmr.msra.gmra.mxu1 %vm1390_vm0, %v1502_v41 }
 0x12b   :  { %5943 = vmatprep.mubr.msk.f32.mxu0 %vm1390_vm0, %v1475_v39  ;;  %5905 = vmatprep.mubr.msk.f32.mxu1 %vm1390_vm0, %v6821_v43 }
 0x12c   :  { %5976 = vmatprep.subr.mxu1 %v2036_v47 }
 0x12d   :  { %5977 = vmatpush3.msra.mxu1 %v2036_v47 }
 0x12e   :  { %5944 = vmatmul.mubr.msk.f32.vlgmr.msra.gmra.mxu0 %vm1390_vm0, %v1476_v42  ;;  %5906 = vmatmul.mubr.msk.f32.gmra.mxu1 %vm1390_vm0, %v6829_v45 }
 0x12f   :  { %5946 = vmatprep.mubr.msk.f32.mxu0 %vm1390_vm0, %v6823_v44  ;;  %5978 = vmatprep.subr.mxu1 %v2035_v51 }
 0x130   :  { %5979 = vmatpush3.msra.mxu1 %v2035_v51  ;;  %6018 = vmatpush3.msra.mxu0 %v2326_v2 }
 0x131   :  { %5980 = vmatprep.subr.mxu1 %v2034_v27  ;;  %6019 = vmatprep.subr.mxu0 %v2325_v5 }
 0x132   :  { %5947 = vmatmul.mubr.msk.f32.gmra.mxu0 %vm1390_vm0, %v6831_v46  ;;  %5981 = vmatpush3.msra.mxu1 %v2034_v27 }
 0x133   :  { %5982 = vmatprep.subr.mxu1 %v2033_v62  ;;  %6020 = vmatpush3.msra.mxu0 %v2325_v5  ;;  %v6842_v5 = vld [vmem:[#allocation7 + $0xb8] sm:$0xff] }
 0x134   :  { %5983 = vmatpush3.msra.mxu1 %v2033_v62  ;;  %6021 = vmatprep.subr.mxu0 %v2324_v7 }
 0x135   :  { %6022 = vmatpush3.msra.mxu0 %v2324_v7  ;;  %6058 = vmatprep.subr.mxu1 %v6837_v11 }
 0x136   :  { %6023 = vmatprep.subr.mxu0 %v2323_v8 }
 0x137   :  { %6024 = vmatpush3.msra.mxu0 %v2323_v8 }
 0x138   :  { %6099 = vmatprep.subr.mxu0 %v6842_v5 }
 0x16f   :  { %v418_v48 = vpop.f32.mrf.mxu0 }
 0x171   :  { %v5729_v50 = vpop.f32.mrf.mxu0 }
 0x177   :  { %v423_v52 = vpop.f32.mrf.mxu0 }
 0x179   :  { %v5732_v53 = vpop.f32.mrf.mxu0 }
 0x17f   :  { %v428_v54 = vpop.f32.mrf.mxu0 }
 0x180   :  { %v538_v55 = vpop.f32.mrf.mxu1 }
 0x181   :  { %v5735_v28 = vpop.f32.mrf.mxu0 }
 0x182   :  { %v5757_v56 = vpop.f32.mrf.mxu1 }
 0x187   :  { %v433_v57 = vpop.f32.mrf.mxu0 }
 0x188   :  { %v543_v58 = vpop.f32.mrf.mxu1  ;;  %v539_v59 = vadd.f32 %v538_v55, %v433_v57 }
 0x189   :  { %v5738_v60 = vpop.f32.mrf.mxu0 }
 0x18a   :  { %v5760_v61 = vpop.f32.mrf.mxu1 }
 0x18c   :  { %v754_v63 = vpop.f32.mrf.mxu1 }
 0x18e   :  { %v438_v0 = vpop.f32.mrf.mxu0  ;;  %v5786_v31 = vpop.f32.mrf.mxu1 }
 0x18f   :  { %v544_v40 = vadd.f32 %v543_v58, %v438_v0 }
 0x190   :  { %v5741_v3 = vpop.f32.mrf.mxu0  ;;  %v759_v4 = vpop.f32.mrf.mxu1 }
 0x192   :  { %v523_v49 = vpop.f32.mrf.mxu0  ;;  %v5789_v6 = vpop.f32.mrf.mxu1 }
 0x193   :  { %v524_v22 = vadd.f32 %v523_v49, %v418_v48 }
 0x194   :  { %v5748_v9 = vpop.f32.mrf.mxu0  ;;  %v764_v10 = vpop.f32.mrf.mxu1 }
 0x196   :  { %v528_v12 = vpop.f32.mrf.mxu0  ;;  %v5792_v13 = vpop.f32.mrf.mxu1 }
 0x197   :  { %v529_v17 = vadd.f32 %v528_v12, %v423_v52 }
 0x198   :  { %v5751_v14 = vpop.f32.mrf.mxu0  ;;  %v769_v15 = vpop.f32.mrf.mxu1 }
 0x19a   :  { %v533_v16 = vpop.f32.mrf.mxu0  ;;  %v5795_v18 = vpop.f32.mrf.mxu1 }
 0x19b   :  { %v534_v36 = vadd.f32 %v533_v16, %v428_v54 }
 0x19c   :  { %v5754_v19 = vpop.f32.mrf.mxu0  ;;  %v774_v21 = vpop.f32.mrf.mxu1 }
 0x19e   :  { %v636_v23 = vpop.f32.mrf.mxu0  ;;  %v5798_v24 = vpop.f32.mrf.mxu1 }
 0x19f   :  { %v660_v25 = vadd.f32 %v636_v23, %v524_v22 }
 0x1a0   :  { %v5767_v26 = vpop.f32.mrf.mxu0  ;;  %v990_v29 = vpop.f32.mrf.mxu1 }
 0x1a1   :  { %v778_v30 = vadd.f32 %v754_v63, %v660_v25 }
 0x1a2   :  { %v641_v32 = vpop.f32.mrf.mxu0  ;;  %v5824_v33 = vpop.f32.mrf.mxu1 }
 0x1a3   :  { %v661_v34 = vadd.f32 %v641_v32, %v529_v17 }
 0x1a4   :  { %v5770_v20 = vpop.f32.mrf.mxu0  ;;  %v995_v35 = vpop.f32.mrf.mxu1 }
 0x1a5   :  { %v779_v1 = vadd.f32 %v759_v4, %v661_v34 }
 0x1a6   :  { %v646_v37 = vpop.f32.mrf.mxu0  ;;  %v5827_v38 = vpop.f32.mrf.mxu1 }
 0x1a7   :  { %v662_v39 = vadd.f32 %v646_v37, %v534_v36 }
 0x1a8   :  { %v5773_v41 = vpop.f32.mrf.mxu0  ;;  %v1000_v42 = vpop.f32.mrf.mxu1 }
 0x1a9   :  { %v780_v47 = vadd.f32 %v764_v10, %v662_v39 }
 0x1aa   :  { %v651_v48 = vpop.f32.mrf.mxu0  ;;  %v5830_v50 = vpop.f32.mrf.mxu1 }
 0x1ab   :  { %v663_v51 = vadd.f32 %v651_v48, %v539_v59  ;;  %v5200_v48 = vld [vmem:[%s9092_s4] ss:$0 sm:$0xff] }
 0x1ac   :  { %v5776_v53 = vpop.f32.mrf.mxu0  ;;  %v1005_v55 = vpop.f32.mrf.mxu1 }
 0x1ad   :  { %v781_v52 = vadd.f32 %v769_v15, %v663_v51 }
 0x1ae   :  { %v656_v27 = vpop.f32.mrf.mxu0  ;;  %v5833_v28 = vpop.f32.mrf.mxu1 }
 0x1af   :  { %v664_v56 = vadd.f32 %v656_v27, %v544_v40 }
 0x1b0   :  { %v5779_v57 = vpop.f32.mrf.mxu0  ;;  %v6840_v58 = vpop.f32.mrf.mxu1 }
 0x1b1   :  { %v782_v54 = vadd.f32 %v774_v21, %v664_v56 }
 0x1b2   :  { %v872_v60 = vpop.f32.mrf.mxu0  ;;  %v5836_v61 = vpop.f32.mrf.mxu1 }
 0x1b3   :  { %v896_v23 = vadd.f32 %v872_v60, %v778_v30 }
 0x1b4   :  { %v5805_v62 = vpop.f32.mrf.mxu0  ;;  %v1226_v63 = vpop.f32.mrf.mxu1 }
 0x1b5   :  { %v1014_v17 = vadd.f32 %v990_v29, %v896_v23 }
 0x1b6   :  { %v877_v0 = vpop.f32.mrf.mxu0  ;;  %v5862_v31 = vpop.f32.mrf.mxu1 }
 0x1b7   :  { %v897_v26 = vadd.f32 %v877_v0, %v779_v1 }
 0x1b8   :  { %v5808_v2 = vpop.f32.mrf.mxu0  ;;  %v1231_v3 = vpop.f32.mrf.mxu1 }
 0x1b9   :  { %v1015_v36 = vadd.f32 %v995_v35, %v897_v26  ;;  %v6863_v26 = vld [vmem:[#allocation4 + $0x31] sm:$0xff] }
 0x1ba   :  { %v882_v4 = vpop.f32.mrf.mxu0  ;;  %v5865_v59 = vpop.f32.mrf.mxu1 }
 0x1bb   :  { %v898_v20 = vadd.f32 %v882_v4, %v780_v47 }
 0x1bc   :  { %v5811_v49 = vpop.f32.mrf.mxu0  ;;  %v1236_v6 = vpop.f32.mrf.mxu1 }
 0x1bd   :  { %v1016_v51 = vadd.f32 %v1000_v42, %v898_v20 }
 0x1be   :  { %v887_v40 = vpop.f32.mrf.mxu0  ;;  %v5868_v7 = vpop.f32.mrf.mxu1 }
 0x1bf   :  { %v899_v50 = vadd.f32 %v887_v40, %v781_v52 }
 0x1c0   :  { %v5814_v8 = vpop.f32.mrf.mxu0  ;;  %v1241_v9 = vpop.f32.mrf.mxu1 }
 0x1c1   :  { %v1017_v57 = vadd.f32 %v1005_v55, %v899_v50  ;;  %v6895_v50 = vld [vmem:[#allocation4 + $0x39] sm:$0xff] }
 0x1c2   :  { %v892_v10 = vpop.f32.mrf.mxu0  ;;  %v5871_v12 = vpop.f32.mrf.mxu1 }
 0x1c3   :  { %v900_v56 = vadd.f32 %v892_v10, %v782_v54 }
 0x1c4   :  { %v5817_v13 = vpop.f32.mrf.mxu0  ;;  %v1246_v14 = vpop.f32.mrf.mxu1 }
 0x1c5   :  { %v1018_v52 = vadd.f32 %v6840_v58, %v900_v56  ;;  %v6909_v56 = vld [vmem:[#allocation4 + $0x51] sm:$0xff] }
 0x1c6   :  { %v1108_v15 = vpop.f32.mrf.mxu0  ;;  %v5874_v16 = vpop.f32.mrf.mxu1 }
 0x1c7   :  { %v1132_v33 = vadd.f32 %v1108_v15, %v1014_v17  ;;  %v6865_v17 = vld [vmem:[#allocation4 + $0x30] sm:$0xff] }
 0x1c8   :  { %v5843_v18 = vpop.f32.mrf.mxu0 }
 0x1c9   :  { %v1250_v39 = vadd.f32 %v1226_v63, %v1132_v33 }
 0x1ca   :  { %v1113_v19 = vpop.f32.mrf.mxu0 }
 0x1cb   :  { %v1133_v38 = vadd.f32 %v1113_v19, %v1015_v36 }
 0x1cc   :  { %v5846_v21 = vpop.f32.mrf.mxu0 }
 0x1cd   :  { %v1251_v29 = vadd.f32 %v1231_v3, %v1133_v38 }
 0x1ce   :  { %v1118_v22 = vpop.f32.mrf.mxu0 }
 0x1cf   :  { %v1134_v27 = vadd.f32 %v1118_v22, %v1016_v51 }
 0x1d0   :  { %v5849_v24 = vpop.f32.mrf.mxu0 }
 0x1d1   :  { %v1252_v63 = vadd.f32 %v1236_v6, %v1134_v27 }
 0x1d2   :  { %v1123_v25 = vpop.f32.mrf.mxu0 }
 0x1d3   :  { %v1135_v61 = vadd.f32 %v1123_v25, %v1017_v57  ;;  %v6911_v57 = vld [vmem:[#allocation4 + $0x50] sm:$0xff] }
 0x1d4   :  { %v5852_v32 = vpop.f32.mrf.mxu0 }
 0x1d5   :  { %v1253_v54 = vadd.f32 %v1241_v9, %v1135_v61 }
 0x1d6   :  { %v1128_v34 = vpop.f32.mrf.mxu0 }
 0x1d7   :  { %v1136_v4 = vadd.f32 %v1128_v34, %v1018_v52  ;;  %v6933_v52 = vld [vmem:[#allocation4 + $0x58] sm:$0xff] }
 0x1d8   :  { %v5855_v37 = vpop.f32.mrf.mxu0 }
 0x1d9   :  { %v1254_v58 = vadd.f32 %v1246_v14, %v1136_v4  ;;  %v6951_v4 = vld [vmem:[#allocation4 + $0x70] sm:$0xff] }
 0x1da   :  { %v1344_v41 = vpop.f32.mrf.mxu0 }
 0x1db   :  { %v1368_v30 = vadd.f32 %v1344_v41, %v1250_v39 }
 0x1dc   :  { %v5881_v53 = vpop.f32.mrf.mxu0 }
 0x1dd   :  { %v1380_v1 = vadd.f32 %v5200_v48, %v1368_v30 }
 0x1de   :  { %v1349_v28 = vpop.f32.mrf.mxu0 }
 0x1df   :  { %v1385_v47 = vmax.f32 %v1380_v1, 0.0  ;;  %v1369_v35 = vadd.f32 %v1349_v28, %v1251_v29 }
 0x1e0   :  { %v5884_v60 = vpop.f32.mrf.mxu0 }
 0x1e1   :  { %1391 = vst.msk [vmem:[#allocation3] sm:$0xff] %vm1390_vm0, %v1385_v47  ;;  %v1381_v62 = vadd.f32 %v5200_v48, %v1369_v35 }
 0x1e2   :  { %v1354_v0 = vpop.f32.mrf.mxu0 }
 0x1e3   :  { %v1386_v42 = vmax.f32 %v1381_v62, 0.0  ;;  %v1370_v31 = vadd.f32 %v1354_v0, %v1252_v63 }
 0x1e4   :  { %v5887_v2 = vpop.f32.mrf.mxu0 }
 0x1e5   :  { %1392 = vst.msk [vmem:[#allocation3 + $0x8] sm:$0xff] %vm1390_vm0, %v1386_v42  ;;  %v1382_v3 = vadd.f32 %v5200_v48, %v1370_v31  ;;  %v6937_v42 = vld [vmem:[#allocation4 + $0x59] sm:$0xff] }
 0x1e6   :  { %v1359_v55 = vpop.f32.mrf.mxu0 }
 0x1e7   :  { %v1387_v59 = vmax.f32 %v1382_v3, 0.0  ;;  %v1371_v49 = vadd.f32 %v1359_v55, %v1253_v54  ;;  %v6955_v54 = vld [vmem:[#allocation4 + $0x71] sm:$0xff] }
 0x1e8   :  { %v5890_v40 = vpop.f32.mrf.mxu0  ;;  %v1424_v7 = vld [vmem:[#allocation3] sm:$0x1]  ;;  %v1427_v8 = vld [vmem:[#allocation3 + $0x1] sm:$0x1]  ;;  %v1429_v10 = vld [vmem:[#allocation3 + $0x2] sm:$0x1] }
 0x1e9   :  { %1393 = vst.msk [vmem:[#allocation3 + $0x10] sm:$0xff] %vm1390_vm0, %v1387_v59  ;;  %v1383_v6 = vadd.f32 %v5200_v48, %v1371_v49  ;;  %v1431_v12 = vld [vmem:[#allocation3 + $0x3] sm:$0x1]  ;;  %v1433_v9 = vld [vmem:[#allocation3 + $0x4] sm:$0x1] }
 0x1ea   :  { %1426 = vst.msk [vmem:[#allocation4 + $0x22] sm:$0x1] %vm1425_vm4, %v1424_v7  ;;  %1428 = vst.msk [vmem:[#allocation4 + $0x24] sm:$0x1] %vm1425_vm4, %v1427_v8  ;;  %v1364_v13 = vpop.f32.mrf.mxu0  ;;  %v6965_v59 = vld [vmem:[#allocation4 + $0x78] sm:$0xff]  ;;  %v6983_v8 = vld [vmem:[#allocation4 + $0x90] sm:$0xff] }
 0x1eb   :  { %1430 = vst.msk [vmem:[#allocation4 + $0x26] sm:$0x1] %vm1425_vm4, %v1429_v10  ;;  %1432 = vst.msk [vmem:[#allocation4 + $0x28] sm:$0x1] %vm1425_vm4, %v1431_v12  ;;  %v1388_v15 = vmax.f32 %v1383_v6, 0.0  ;;  %v1372_v16 = vadd.f32 %v1364_v13, %v1254_v58  ;;  %v6969_v49 = vld [vmem:[#allocation4 + $0x79] sm:$0xff] }
 0x1ec   :  { %1434 = vst.msk [vmem:[#allocation4 + $0x2a] sm:$0x1] %vm1425_vm4, %v1433_v9  ;;  %v5893_v18 = vpop.f32.mrf.mxu0  ;;  %v1435_v19 = vld [vmem:[#allocation3 + $0x8] sm:$0x1]  ;;  %v1437_v21 = vld [vmem:[#allocation3 + $0x9] sm:$0x1] }
 0x1ed   :  { %v1439_v22 = vld [vmem:[#allocation3 + $0xa] sm:$0x1]  ;;  %1394 = vst.msk [vmem:[#allocation3 + $0x18] sm:$0xff] %vm1390_vm0, %v1388_v15  ;;  %v1384_v14 = vadd.f32 %v5200_v48, %v1372_v16  ;;  %v1441_v23 = vld [vmem:[#allocation3 + $0xb] sm:$0x1]  ;;  %v6888_v48 = vld [vmem:[#allocation4 + $0x38] sm:$0xff] }
 0x1ee   :  { %1436 = vst.msk [vmem:[#allocation4 + $0x42] sm:$0x1] %vm1425_vm4, %v1435_v19  ;;  %1438 = vst.msk [vmem:[#allocation4 + $0x44] sm:$0x1] %vm1425_vm4, %v1437_v21  ;;  %v1443_v24 = vld [vmem:[#allocation3 + $0xc] sm:$0x1] }
 0x1ef   :  { %1440 = vst.msk [vmem:[#allocation4 + $0x46] sm:$0x1] %vm1425_vm4, %v1439_v22  ;;  %1442 = vst.msk [vmem:[#allocation4 + $0x48] sm:$0x1] %vm1425_vm4, %v1441_v23  ;;  %v1389_v25 = vmax.f32 %v1384_v14, 0.0  ;;  %v6987_v6 = vld [vmem:[#allocation4 + $0x91] sm:$0xff] }
 0x1f0   :  { %1444 = vst.msk [vmem:[#allocation4 + $0x4a] sm:$0x1] %vm1425_vm4, %v1443_v24  ;;  %v1445_v33 = vld [vmem:[#allocation3 + $0x10] sm:$0x1]  ;;  %v1447_v34 = vld [vmem:[#allocation3 + $0x11] sm:$0x1] }
 0x1f1   :  { %1395 = vst.msk [vmem:[#allocation3 + $0x20] sm:$0xff] %vm1390_vm0, %v1389_v25  ;;  %v1449_v38 = vld [vmem:[#allocation3 + $0x12] sm:$0x1]  ;;  %v1451_v39 = vld [vmem:[#allocation3 + $0x13] sm:$0x1]  ;;  %v6997_v12 = vld [vmem:[#allocation4 + $0x98] sm:$0xff] }
 0x1f2   :  { %v6867_v32 = vld [vmem:[#allocation4 + $0x20] sm:$0xff]  ;;  %1446 = vst.msk [vmem:[#allocation4 + $0x62] sm:$0x1] %vm1425_vm4, %v1445_v33  ;;  %1448 = vst.msk [vmem:[#allocation4 + $0x64] sm:$0x1] %vm1425_vm4, %v1447_v34  ;;  %v2011_v21 = vld [vmem:[#allocation4 + $0xa] sm:$0xff] }
 0x1f3   :  { %v6870_v20 = vld [vmem:[#allocation4 + $0x21] sm:$0xff]  ;;  %5949 = vmatprep.mubr.msk.f32.mxu0 %vm1390_vm0, %v6867_v32  ;;  %v6874_v36 = vld [vmem:[#allocation4 + $0x29] sm:$0xff]  ;;  %1450 = vst.msk [vmem:[#allocation4 + $0x66] sm:$0x1] %vm1425_vm4, %v1449_v38  ;;  %1452 = vst.msk [vmem:[#allocation4 + $0x68] sm:$0x1] %vm1425_vm4, %v1451_v39 }
 0x1f4   :  { %v6876_v37 = vld [vmem:[#allocation4 + $0x28] sm:$0xff]  ;;  %5908 = vmatprep.mubr.msk.f32.mxu1 %vm1390_vm0, %v6870_v20  ;;  %v1455_v51 = vld [vmem:[#allocation3 + $0x18] sm:$0x1]  ;;  %v1457_v30 = vld [vmem:[#allocation3 + $0x19] sm:$0x1] }
 0x1f5   :  { %5950 = vmatmul.mubr.msk.f32.gmra.mxu0 %vm1390_vm0, %v6876_v37  ;;  %v1453_v41 = vld [vmem:[#allocation3 + $0x14] sm:$0x1]  ;;  %5909 = vmatmul.mubr.msk.f32.gmra.mxu1 %vm1390_vm0, %v6874_v36  ;;  %1456 = vst.msk [vmem:[#allocation4 + $0x82] sm:$0x1] %vm1425_vm4, %v1455_v51  ;;  %1458 = vst.msk [vmem:[#allocation4 + $0x84] sm:$0x1] %vm1425_vm4, %v1457_v30 }
 0x1f6   :  { %5952 = vmatprep.mubr.msk.f32.mxu0 %vm1390_vm0, %v6865_v17  ;;  %1454 = vst.msk [vmem:[#allocation4 + $0x6a] sm:$0x1] %vm1425_vm4, %v1453_v41  ;;  %5911 = vmatprep.mubr.msk.f32.mxu1 %vm1390_vm0, %v6863_v26  ;;  %v6897_v53 = vld [vmem:[#allocation4 + $0x40] sm:$0xff]  ;;  %v1459_v27 = vld [vmem:[#allocation3 + $0x1a] sm:$0x1]  ;;  %v2614_v23 = vld [vmem:[#allocation7 + $0x88] sm:$0xff] }
 0x1f7   :  { %v1461_v1 = vld [vmem:[#allocation3 + $0x1b] sm:$0x1]  ;;  %v1463_v29 = vld [vmem:[#allocation3 + $0x1c] sm:$0x1]  ;;  %v6905_v28 = vld [vmem:[#allocation4 + $0x41] sm:$0xff] }
 0x1f8   :  { %1460 = vst.msk [vmem:[#allocation4 + $0x86] sm:$0x1] %vm1425_vm4, %v1459_v27  ;;  %1462 = vst.msk [vmem:[#allocation4 + $0x88] sm:$0x1] %vm1425_vm4, %v1461_v1  ;;  %v1465_v47 = vld [vmem:[#allocation3 + $0x20] sm:$0x1] }
 0x1f9   :  { %5953 = vmatmul.mubr.msk.f32.gmra.mxu0 %vm1390_vm0, %v6888_v48  ;;  %5912 = vmatmul.mubr.msk.f32.gmra.mxu1 %vm1390_vm0, %v6895_v50  ;;  %1464 = vst.msk [vmem:[#allocation4 + $0x8a] sm:$0x1] %vm1425_vm4, %v1463_v29  ;;  %v1467_v35 = vld [vmem:[#allocation3 + $0x21] sm:$0x1]  ;;  %v1469_v60 = vld [vmem:[#allocation3 + $0x22] sm:$0x1]  ;;  %v5904_v29 = vpop.f32.mrf.mxu1 }
 0x1fa   :  { %5955 = vmatprep.mubr.msk.f32.mxu0 %vm1390_vm0, %v6897_v53  ;;  %5914 = vmatprep.mubr.msk.f32.mxu1 %vm1390_vm0, %v6905_v28  ;;  %v6918_v61 = vld [vmem:[#allocation4 + $0x48] sm:$0xff]  ;;  %1466 = vst.msk [vmem:[#allocation4 + $0xa2] sm:$0x1] %vm1425_vm4, %v1465_v47  ;;  %1468 = vst.msk [vmem:[#allocation4 + $0xa4] sm:$0x1] %vm1425_vm4, %v1467_v35  ;;  %v6941_v31 = vld [vmem:[#allocation4 + $0x60] sm:$0xff]  ;;  %v5945_v47 = vpop.f32.mrf.mxu0 }
 0x1fb   :  { %1470 = vst.msk [vmem:[#allocation4 + $0xa6] sm:$0x1] %vm1425_vm4, %v1469_v60  ;;  %v1471_v62 = vld [vmem:[#allocation3 + $0x23] sm:$0x1]  ;;  %v1473_v63 = vld [vmem:[#allocation3 + $0x24] sm:$0x1]  ;;  %v7098_v60 = vadd.f32 %v5945_v47, %v5904_v29 }
 0x1fc   :  { %v6923_v0 = vld [vmem:[#allocation4 + $0x49] sm:$0xff]  ;;  %1472 = vst.msk [vmem:[#allocation4 + $0xa8] sm:$0x1] %vm1425_vm4, %v1471_v62  ;;  %1474 = vst.msk [vmem:[#allocation4 + $0xaa] sm:$0x1] %vm1425_vm4, %v1473_v63  ;;  %v6945_v2 = vld [vmem:[#allocation4 + $0x61] sm:$0xff]  ;;  %v1660_v62 = vpop.f32.mrf.mxu1  ;;  %v1901_v63 = vpop.f32.mrf.mxu0 }
 0x1fd   :  { %5956 = vmatmul.mubr.msk.f32.gmra.mxu0 %vm1390_vm0, %v6918_v61  ;;  %5915 = vmatmul.mubr.msk.f32.gmra.mxu1 %vm1390_vm0, %v6923_v0  ;;  %v6953_v3 = vld [vmem:[#allocation4 + $0x68] sm:$0xff]  ;;  %v7001_v9 = vld [vmem:[#allocation4 + $0x99] sm:$0xff]  ;;  %v2615_v14 = vld [vmem:[#allocation7 + $0x90] sm:$0xff] }
 0x1fe   :  { %5958 = vmatprep.mubr.msk.f32.mxu0 %vm1390_vm0, %v6911_v57  ;;  %5917 = vmatprep.mubr.msk.f32.mxu1 %vm1390_vm0, %v6909_v56  ;;  %v6957_v55 = vld [vmem:[#allocation4 + $0x69] sm:$0xff]  ;;  %v7026_v22 = vld [vmem:[#allocation4 + $0x12] sm:$0xff]  ;;  %v7063_v38 = vld [vmem:[#allocation4 + $0x3a] sm:$0xff] }
 0x1ff   :  { %v6973_v40 = vld [vmem:[#allocation4 + $0x80] sm:$0xff]  ;;  %v7049_v25 = vld [vmem:[#allocation4 + $0x32] sm:$0xff]  ;;  %v2904_v34 = vld [vmem:[#allocation7 + $0xa8] sm:$0xff] }
 0x200   :  { %v6977_v7 = vld [vmem:[#allocation4 + $0x81] sm:$0xff]  ;;  %v6989_v58 = vld [vmem:[#allocation4 + $0x89] sm:$0xff]  ;;  %v7055_v33 = vld [vmem:[#allocation7 + $0xd8] sm:$0xff] }
 0x201   :  { %5959 = vmatmul.mubr.msk.f32.gmra.mxu0 %vm1390_vm0, %v6933_v52  ;;  %5918 = vmatmul.mubr.msk.f32.gmra.mxu1 %vm1390_vm0, %v6937_v42  ;;  %v6985_v10 = vld [vmem:[#allocation4 + $0x88] sm:$0xff]  ;;  %v7076_v51 = vld [vmem:[#allocation4 + $0x52] sm:$0xff]  ;;  %v7088_v1 = vld [vmem:[#allocation4 + $0x5a] sm:$0xff] }
 0x202   :  { %5961 = vmatprep.mubr.msk.f32.mxu0 %vm1390_vm0, %v6941_v31  ;;  %5920 = vmatprep.mubr.msk.f32.mxu1 %vm1390_vm0, %v6945_v2  ;;  %v7005_v13 = vld [vmem:[#allocation4 + $0xa0] sm:$0xff]  ;;  %v7078_v30 = vld [vmem:[#allocation4 + $0x4a] sm:$0xff]  ;;  %v7130_v29 = vld [vmem:[#allocation4 + $0x92] sm:$0xff] }
 0x203   :  { %v7009_v15 = vld [vmem:[#allocation4 + $0xa1] sm:$0xff]  ;;  %v7017_v19 = vld [vmem:[#allocation4 + $0xa9] sm:$0xff]  ;;  %v3486_v27 = vld [vmem:[#allocation7 + $0xf8] sm:$0xff] }
 0x204   :  { %v7015_v16 = vld [vmem:[#allocation4 + $0xa8] sm:$0xff] }
 0x205   :  { %5962 = vmatmul.mubr.msk.f32.gmra.mxu0 %vm1390_vm0, %v6953_v3  ;;  %5921 = vmatmul.mubr.msk.f32.gmra.mxu1 %vm1390_vm0, %v6957_v55  ;;  %v2010_v18 = vld [vmem:[#allocation4 + $0x2] sm:$0xff]  ;;  %v7132_v47 = vld [vmem:[#allocation4 + $0x8a] sm:$0xff] }
 0x206   :  { %5964 = vmatprep.mubr.msk.f32.mxu0 %vm1390_vm0, %v6951_v4  ;;  %5923 = vmatprep.mubr.msk.f32.mxu1 %vm1390_vm0, %v6955_v54  ;;  %v7043_v24 = vld [vmem:[#allocation4 + $0x22] sm:$0xff] }
 0x207   :  { %v2903_v39 = vld [vmem:[#allocation7 + $0xa0] sm:$0xff] }
 0x208   :  { %v7070_v41 = vld [vmem:[#allocation4 + $0x42] sm:$0xff] }
 0x209   :  { %5965 = vmatmul.mubr.msk.f32.gmra.mxu0 %vm1390_vm0, %v6965_v59  ;;  %5924 = vmatmul.mubr.msk.f32.gmra.mxu1 %vm1390_vm0, %v6969_v49  ;;  %v7094_v35 = vld [vmem:[#allocation4 + $0x62] sm:$0xff] }
 0x20a   :  { %5967 = vmatprep.mubr.msk.f32.mxu0 %vm1390_vm0, %v6973_v40  ;;  %5926 = vmatprep.mubr.msk.f32.mxu1 %vm1390_vm0, %v6977_v7 }
 0x20d   :  { %5968 = vmatmul.mubr.msk.f32.gmra.mxu0 %vm1390_vm0, %v6985_v10  ;;  %5927 = vmatmul.mubr.msk.f32.gmra.mxu1 %vm1390_vm0, %v6989_v58 }
 0x20e   :  { %5970 = vmatprep.mubr.msk.f32.mxu0 %vm1390_vm0, %v6983_v8  ;;  %5929 = vmatprep.mubr.msk.f32.mxu1 %vm1390_vm0, %v6987_v6 }
 0x211   :  { %5971 = vmatmul.mubr.msk.f32.gmra.mxu0 %vm1390_vm0, %v6997_v12  ;;  %5930 = vmatmul.mubr.msk.f32.gmra.mxu1 %vm1390_vm0, %v7001_v9 }
 0x212   :  { %5973 = vmatprep.mubr.msk.f32.mxu0 %vm1390_vm0, %v7005_v13  ;;  %5932 = vmatprep.mubr.msk.f32.mxu1 %vm1390_vm0, %v7009_v15 }
 0x215   :  { %5974 = vmatmul.mubr.msk.f32.gmra.mxu0 %vm1390_vm0, %v7015_v16  ;;  %5933 = vmatmul.mubr.msk.f32.gmra.mxu1 %vm1390_vm0, %v7017_v19 }
 0x216   :  { %6025 = vmatprep.mubr.msk.f32.mxu0 %vm1390_vm0, %v6823_v44  ;;  %5984 = vmatprep.mubr.msk.f32.mxu1 %vm1390_vm0, %v2010_v18  ;;  %v7036_v44 = vld [vmem:[#allocation4 + $0x1a] sm:$0xff]  ;;  %v7102_v18 = vld [vmem:[#allocation4 + $0x72] sm:$0xff] }
 0x219   :  { %6026 = vmatmul.mubr.msk.f32.vlgmr.msra.gmra.mxu0 %vm1390_vm0, %v6831_v46  ;;  %5985 = vmatmul.mubr.msk.f32.vlgmr.msra.gmra.mxu1 %vm1390_vm0, %v2011_v21  ;;  %v2905_v46 = vld [vmem:[#allocation7 + $0xb0] sm:$0xff]  ;;  %v7104_v21 = vadd.f32 %v1901_v63, %v1660_v62  ;;  %v7142_v62 = vld [vmem:[#allocation4 + $0x9a] sm:$0xff] }
 0x21a   :  { %6028 = vmatprep.mubr.msk.f32.mxu0 %vm1390_vm0, %v6867_v32  ;;  %6059 = vmatpush3.msra.mxu1 %v6837_v11  ;;  %v2613_v11 = vld [vmem:[#allocation7 + $0x80] sm:$0xff]  ;;  %v7144_v63 = vld [vmem:[#allocation4 + $0xb0] sm:$0xff] }
 0x21b   :  { %5987 = vmatprep.mubr.msk.f32.mxu1 %vm1390_vm0, %v7026_v22  ;;  %6060 = vmatprep.subr.mxu1 %v2615_v14  ;;  %9137 = vst [vmem:[#allocation10_spill] sm:$0xff] %v7104_v21  ;;  %v3195_v21 = vld [vmem:[#allocation7 + $0xd0] sm:$0xff] }
 0x21c   :  { %6100 = vmatpush3.msra.mxu0 %v6842_v5  ;;  %6061 = vmatpush3.msra.mxu1 %v2615_v14  ;;  %v7051_v5 = vld [vmem:[#allocation4 + $0x2a] sm:$0xff] }
 0x21d   :  { %6029 = vmatmul.mubr.msk.f32.gmra.mxu0 %vm1390_vm0, %v6876_v37  ;;  %5988 = vmatmul.mubr.msk.f32.gmra.mxu1 %vm1390_vm0, %v7036_v44  ;;  %v7106_v14 = vld [vmem:[#allocation4 + $0x6a] sm:$0xff] }
 0x21e   :  { %6031 = vmatprep.mubr.msk.f32.mxu0 %vm1390_vm0, %v6865_v17  ;;  %5990 = vmatprep.mubr.msk.f32.mxu1 %vm1390_vm0, %v7043_v24 }
 0x21f   :  { %6062 = vmatprep.subr.mxu1 %v2614_v23  ;;  %6101 = vmatprep.subr.mxu0 %v2905_v46 }
 0x220   :  { %6063 = vmatpush3.msra.mxu1 %v2614_v23  ;;  %6102 = vmatpush3.msra.mxu0 %v2905_v46  ;;  %v5907_v23 = vpop.f32.mrf.mxu1  ;;  %v5948_v46 = vpop.f32.mrf.mxu0 }
 0x221   :  { %6032 = vmatmul.mubr.msk.f32.gmra.mxu0 %vm1390_vm0, %v6888_v48  ;;  %6064 = vmatprep.subr.mxu1 %v2613_v11 }
 0x222   :  { %5991 = vmatmul.mubr.msk.f32.gmra.mxu1 %vm1390_vm0, %v7051_v5  ;;  %6034 = vmatprep.mubr.msk.f32.mxu0 %vm1390_vm0, %v6897_v53 }
 0x223   :  { %5993 = vmatprep.mubr.msk.f32.mxu1 %vm1390_vm0, %v7049_v25  ;;  %6065 = vmatpush3.msra.mxu1 %v2613_v11  ;;  %v7116_v11 = vld [vmem:[#allocation4 + $0x7a] sm:$0xff] }
 0x224   :  { %6140 = vmatprep.subr.mxu1 %v7055_v33  ;;  %6103 = vmatprep.subr.mxu0 %v2904_v34 }
 0x225   :  { %6035 = vmatmul.mubr.msk.f32.gmra.mxu0 %vm1390_vm0, %v6918_v61 }
 0x226   :  { %5994 = vmatmul.mubr.msk.f32.gmra.mxu1 %vm1390_vm0, %v7063_v38  ;;  %6037 = vmatprep.mubr.msk.f32.mxu0 %vm1390_vm0, %v6911_v57 }
 0x227   :  { %5996 = vmatprep.mubr.msk.f32.mxu1 %vm1390_vm0, %v7070_v41  ;;  %6104 = vmatpush3.msra.mxu0 %v2904_v34  ;;  %v7118_v34 = vadd.f32 %v5948_v46, %v5907_v23  ;;  %v7150_v23 = vld [vmem:[#allocation4 + $0xa2] sm:$0xff]  ;;  %v7154_v46 = vld [vmem:[#allocation4 + $0xb8] sm:$0xff] }
 0x228   :  { %6105 = vmatprep.subr.mxu0 %v2903_v39 }
 0x229   :  { %6038 = vmatmul.mubr.msk.f32.gmra.mxu0 %vm1390_vm0, %v6933_v52  ;;  %9138 = vst [vmem:[#allocation11_spill] sm:$0xff] %v7118_v34  ;;  %v7158_v34 = vld [vmem:[#allocation4 + $0xaa] sm:$0xff] }
 0x22a   :  { %5997 = vmatmul.mubr.msk.f32.gmra.mxu1 %vm1390_vm0, %v7078_v30  ;;  %6040 = vmatprep.mubr.msk.f32.mxu0 %vm1390_vm0, %v6941_v31 }
 0x22b   :  { %5999 = vmatprep.mubr.msk.f32.mxu1 %vm1390_vm0, %v7076_v51  ;;  %6106 = vmatpush3.msra.mxu0 %v2903_v39  ;;  %v7124_v39 = vld [vmem:[#allocation4 + $0x82] sm:$0xff] }
 0x22c   :  { %6181 = vmatprep.subr.mxu0 %v3486_v27 }
 0x22d   :  { %6041 = vmatmul.mubr.msk.f32.gmra.mxu0 %vm1390_vm0, %v6953_v3 }
 0x22e   :  { %6000 = vmatmul.mubr.msk.f32.gmra.mxu1 %vm1390_vm0, %v7088_v1  ;;  %6043 = vmatprep.mubr.msk.f32.mxu0 %vm1390_vm0, %v6951_v4 }
 0x22f   :  { %6002 = vmatprep.mubr.msk.f32.mxu1 %vm1390_vm0, %v7094_v35 }
 0x231   :  { %6044 = vmatmul.mubr.msk.f32.gmra.mxu0 %vm1390_vm0, %v6965_v59 }
 0x232   :  { %6003 = vmatmul.mubr.msk.f32.gmra.mxu1 %vm1390_vm0, %v7106_v14  ;;  %6046 = vmatprep.mubr.msk.f32.mxu0 %vm1390_vm0, %v6973_v40 }
 0x233   :  { %6005 = vmatprep.mubr.msk.f32.mxu1 %vm1390_vm0, %v7102_v18 }
 0x235   :  { %6047 = vmatmul.mubr.msk.f32.gmra.mxu0 %vm1390_vm0, %v6985_v10 }
 0x236   :  { %6006 = vmatmul.mubr.msk.f32.gmra.mxu1 %vm1390_vm0, %v7116_v11  ;;  %6049 = vmatprep.mubr.msk.f32.mxu0 %vm1390_vm0, %v6983_v8 }
 0x237   :  { %6008 = vmatprep.mubr.msk.f32.mxu1 %vm1390_vm0, %v7124_v39 }
 0x239   :  { %6050 = vmatmul.mubr.msk.f32.gmra.mxu0 %vm1390_vm0, %v6997_v12 }
 0x23a   :  { %6009 = vmatmul.mubr.msk.f32.gmra.mxu1 %vm1390_vm0, %v7132_v47  ;;  %6052 = vmatprep.mubr.msk.f32.mxu0 %vm1390_vm0, %v7005_v13 }
 0x23b   :  { %6011 = vmatprep.mubr.msk.f32.mxu1 %vm1390_vm0, %v7130_v29 }
 0x23d   :  { %6053 = vmatmul.mubr.msk.f32.gmra.mxu0 %vm1390_vm0, %v7015_v16 }
 0x23e   :  { %6012 = vmatmul.mubr.msk.f32.gmra.mxu1 %vm1390_vm0, %v7142_v62  ;;  %6055 = vmatprep.mubr.msk.f32.mxu0 %vm1390_vm0, %v7144_v63 }
 0x23f   :  { %6014 = vmatprep.mubr.msk.f32.mxu1 %vm1390_vm0, %v7150_v23 }
 0x241   :  { %6056 = vmatmul.mubr.msk.f32.gmra.mxu0 %vm1390_vm0, %v7154_v46 }
 0x242   :  { %6015 = vmatmul.mubr.msk.f32.gmra.mxu1 %vm1390_vm0, %v7158_v34  ;;  %6107 = vmatprep.mubr.msk.f32.mxu0 %vm1390_vm0, %v7026_v22  ;;  %v3194_v22 = vld [vmem:[#allocation7 + $0xc8] sm:$0xff] }
 0x243   :  { %6066 = vmatprep.mubr.msk.f32.mxu1 %vm1390_vm0, %v6821_v43  ;;  %v3485_v43 = vld [vmem:[#allocation7 + $0xf0] sm:$0xff] }
 0x245   :  { %6108 = vmatmul.mubr.msk.f32.vlgmr.msra.gmra.mxu0 %vm1390_vm0, %v7036_v44  ;;  %v3776_v44 = vld [vmem:[#allocation7 + $0x118] sm:$0xff] }
 0x246   :  { %6067 = vmatmul.mubr.msk.f32.vlgmr.msra.gmra.mxu1 %vm1390_vm0, %v6829_v45  ;;  %6110 = vmatprep.mubr.msk.f32.mxu0 %vm1390_vm0, %v7043_v24  ;;  %v3193_v45 = vld [vmem:[#allocation7 + $0xc0] sm:$0xff] }
 0x247   :  { %6141 = vmatpush3.msra.mxu1 %v7055_v33  ;;  %6069 = vmatprep.mubr.msk.f32.mxu1 %vm1390_vm0, %v6870_v20  ;;  %v3484_v33 = vld [vmem:[#allocation7 + $0xe8] sm:$0xff] }
 0x248   :  { %6142 = vmatprep.subr.mxu1 %v3195_v21  ;;  %6182 = vmatpush3.msra.mxu0 %v3486_v27  ;;  %v3483_v27 = vld [vmem:[#allocation7 + $0xe0] sm:$0xff] }
 0x249   :  { %6111 = vmatmul.mubr.msk.f32.gmra.mxu0 %vm1390_vm0, %v7051_v5  ;;  %6143 = vmatpush3.msra.mxu1 %v3195_v21  ;;  %v7241_v21 = vld [vmem:[#allocation4 + $0xb2] sm:$0xff] }
 0x24a   :  { %6070 = vmatmul.mubr.msk.f32.gmra.mxu1 %vm1390_vm0, %v6874_v36  ;;  %6113 = vmatprep.mubr.msk.f32.mxu0 %vm1390_vm0, %v7049_v25 }
 0x24b   :  { %6072 = vmatprep.mubr.msk.f32.mxu1 %vm1390_vm0, %v6863_v26  ;;  %6144 = vmatprep.subr.mxu1 %v3194_v22 }
 0x24c   :  { %6145 = vmatpush3.msra.mxu1 %v3194_v22  ;;  %6183 = vmatprep.subr.mxu0 %v3485_v43  ;;  %v2610_v22 = vld [vmem:[#allocation4 + $0xb1] sm:$0xff] }
 0x24d   :  { %6114 = vmatmul.mubr.msk.f32.gmra.mxu0 %vm1390_vm0, %v7063_v38  ;;  %6146 = vmatprep.subr.mxu1 %v3193_v45 }
 0x24e   :  { %6073 = vmatmul.mubr.msk.f32.gmra.mxu1 %vm1390_vm0, %v6895_v50  ;;  %6116 = vmatprep.mubr.msk.f32.mxu0 %vm1390_vm0, %v7070_v41 }
 0x24f   :  { %6075 = vmatprep.mubr.msk.f32.mxu1 %vm1390_vm0, %v6905_v28  ;;  %6147 = vmatpush3.msra.mxu1 %v3193_v45  ;;  %v2611_v45 = vld [vmem:[#allocation4 + $0xb9] sm:$0xff] }
 0x250   :  { %6184 = vmatpush3.msra.mxu0 %v3485_v43  ;;  %6222 = vmatprep.subr.mxu1 %v3776_v44  ;;  %v7249_v43 = vld [vmem:[#allocation4 + $0xba] sm:$0xff] }
 0x251   :  { %6117 = vmatmul.mubr.msk.f32.gmra.mxu0 %vm1390_vm0, %v7078_v30  ;;  %6185 = vmatprep.subr.mxu0 %v3484_v33 }
 0x252   :  { %6076 = vmatmul.mubr.msk.f32.gmra.mxu1 %vm1390_vm0, %v6923_v0  ;;  %6119 = vmatprep.mubr.msk.f32.mxu0 %vm1390_vm0, %v7076_v51 }
 0x253   :  { %6078 = vmatprep.mubr.msk.f32.mxu1 %vm1390_vm0, %v6909_v56  ;;  %6186 = vmatpush3.msra.mxu0 %v3484_v33  ;;  %v3775_v33 = vld [vmem:[#allocation7 + $0x110] sm:$0xff] }
 0x254   :  { %6187 = vmatprep.subr.mxu0 %v3483_v27 }
 0x255   :  { %6120 = vmatmul.mubr.msk.f32.gmra.mxu0 %vm1390_vm0, %v7088_v1 }
 0x256   :  { %6079 = vmatmul.mubr.msk.f32.gmra.mxu1 %vm1390_vm0, %v6937_v42  ;;  %6122 = vmatprep.mubr.msk.f32.mxu0 %vm1390_vm0, %v7094_v35 }
 0x257   :  { %6081 = vmatprep.mubr.msk.f32.mxu1 %vm1390_vm0, %v6945_v2  ;;  %6188 = vmatpush3.msra.mxu0 %v3483_v27  ;;  %v3774_v27 = vld [vmem:[#allocation7 + $0x108] sm:$0xff] }
 0x259   :  { %6123 = vmatmul.mubr.msk.f32.gmra.mxu0 %vm1390_vm0, %v7106_v14 }
 0x25a   :  { %6082 = vmatmul.mubr.msk.f32.gmra.mxu1 %vm1390_vm0, %v6957_v55  ;;  %6125 = vmatprep.mubr.msk.f32.mxu0 %vm1390_vm0, %v7102_v18 }
 0x25b   :  { %6084 = vmatprep.mubr.msk.f32.mxu1 %vm1390_vm0, %v6955_v54 }
 0x25d   :  { %6126 = vmatmul.mubr.msk.f32.gmra.mxu0 %vm1390_vm0, %v7116_v11 }
 0x25e   :  { %6085 = vmatmul.mubr.msk.f32.gmra.mxu1 %vm1390_vm0, %v6969_v49  ;;  %6128 = vmatprep.mubr.msk.f32.mxu0 %vm1390_vm0, %v7124_v39 }
 0x25f   :  { %6087 = vmatprep.mubr.msk.f32.mxu1 %vm1390_vm0, %v6977_v7 }
 0x261   :  { %6129 = vmatmul.mubr.msk.f32.gmra.mxu0 %vm1390_vm0, %v7132_v47 }
 0x262   :  { %6088 = vmatmul.mubr.msk.f32.gmra.mxu1 %vm1390_vm0, %v6989_v58  ;;  %6131 = vmatprep.mubr.msk.f32.mxu0 %vm1390_vm0, %v7130_v29 }
 0x263   :  { %6090 = vmatprep.mubr.msk.f32.mxu1 %vm1390_vm0, %v6987_v6 }
 0x265   :  { %6132 = vmatmul.mubr.msk.f32.gmra.mxu0 %vm1390_vm0, %v7142_v62 }
 0x266   :  { %6091 = vmatmul.mubr.msk.f32.gmra.mxu1 %vm1390_vm0, %v7001_v9  ;;  %6134 = vmatprep.mubr.msk.f32.mxu0 %vm1390_vm0, %v7150_v23 }
 0x267   :  { %6093 = vmatprep.mubr.msk.f32.mxu1 %vm1390_vm0, %v7009_v15 }
 0x269   :  { %6135 = vmatmul.mubr.msk.f32.gmra.mxu0 %vm1390_vm0, %v7158_v34 }
 0x26a   :  { %6094 = vmatmul.mubr.msk.f32.gmra.mxu1 %vm1390_vm0, %v7017_v19  ;;  %6137 = vmatprep.mubr.msk.f32.mxu0 %vm1390_vm0, %v7241_v21 }
 0x26b   :  { %6096 = vmatprep.mubr.msk.f32.mxu1 %vm1390_vm0, %v2610_v22 }
 0x26d   :  { %6138 = vmatmul.mubr.msk.f32.gmra.mxu0 %vm1390_vm0, %v7249_v43 }
 0x26e   :  { %6097 = vmatmul.mubr.msk.f32.gmra.mxu1 %vm1390_vm0, %v2611_v45  ;;  %6189 = vmatprep.mubr.msk.f32.mxu0 %vm1390_vm0, %v6870_v20  ;;  %v3481_v20 = vld [vmem:[#allocation4 + $0xc9] sm:$0xff] }
 0x26f   :  { %6148 = vmatprep.mubr.msk.f32.mxu1 %vm1390_vm0, %v6867_v32  ;;  %v3773_v32 = vld [vmem:[#allocation7 + $0x100] sm:$0xff] }
 0x271   :  { %6190 = vmatmul.mubr.msk.f32.vlgmr.msra.gmra.mxu0 %vm1390_vm0, %v6874_v36  ;;  %v3191_v36 = vld [vmem:[#allocation4 + $0xc8] sm:$0xff] }
 0x272   :  { %6149 = vmatmul.mubr.msk.f32.vlgmr.msra.gmra.mxu1 %vm1390_vm0, %v6876_v37  ;;  %6192 = vmatprep.mubr.msk.f32.mxu0 %vm1390_vm0, %v6863_v26  ;;  %v3480_v26 = vld [vmem:[#allocation4 + $0xc1] sm:$0xff]  ;;  %v7361_v37 = vpop.f32.mrf.mxu0 }
 0x273   :  { %6223 = vmatpush3.msra.mxu1 %v3776_v44  ;;  %6151 = vmatprep.mubr.msk.f32.mxu1 %vm1390_vm0, %v6865_v17  ;;  %v3190_v17 = vld [vmem:[#allocation4 + $0xc0] sm:$0xff] }
 0x274   :  { %6224 = vmatprep.subr.mxu1 %v3775_v33 }
 0x275   :  { %6193 = vmatmul.mubr.msk.f32.gmra.mxu0 %vm1390_vm0, %v6895_v50  ;;  %6225 = vmatpush3.msra.mxu1 %v3775_v33 }
 0x276   :  { %6152 = vmatmul.mubr.msk.f32.gmra.mxu1 %vm1390_vm0, %v6888_v48  ;;  %6195 = vmatprep.mubr.msk.f32.mxu0 %vm1390_vm0, %v6905_v28  ;;  %v7365_v48 = vpop.f32.mrf.mxu1 }
 0x277   :  { %6154 = vmatprep.mubr.msk.f32.mxu1 %vm1390_vm0, %v6897_v53  ;;  %6226 = vmatprep.subr.mxu1 %v3774_v27 }
 0x278   :  { %6227 = vmatpush3.msra.mxu1 %v3774_v27 }
 0x279   :  { %6196 = vmatmul.mubr.msk.f32.gmra.mxu0 %vm1390_vm0, %v6923_v0  ;;  %6228 = vmatprep.subr.mxu1 %v3773_v32 }
 0x27a   :  { %6155 = vmatmul.mubr.msk.f32.gmra.mxu1 %vm1390_vm0, %v6918_v61  ;;  %6198 = vmatprep.mubr.msk.f32.mxu0 %vm1390_vm0, %v6909_v56 }
 0x27b   :  { %6157 = vmatprep.mubr.msk.f32.mxu1 %vm1390_vm0, %v6911_v57  ;;  %6229 = vmatpush3.msra.mxu1 %v3773_v32 }
 0x27d   :  { %6199 = vmatmul.mubr.msk.f32.gmra.mxu0 %vm1390_vm0, %v6937_v42 }
 0x27e   :  { %6158 = vmatmul.mubr.msk.f32.gmra.mxu1 %vm1390_vm0, %v6933_v52  ;;  %6201 = vmatprep.mubr.msk.f32.mxu0 %vm1390_vm0, %v6945_v2 }
 0x27f   :  { %6160 = vmatprep.mubr.msk.f32.mxu1 %vm1390_vm0, %v6941_v31 }
 0x281   :  { %6202 = vmatmul.mubr.msk.f32.gmra.mxu0 %vm1390_vm0, %v6957_v55 }
 0x282   :  { %6161 = vmatmul.mubr.msk.f32.gmra.mxu1 %vm1390_vm0, %v6953_v3  ;;  %6204 = vmatprep.mubr.msk.f32.mxu0 %vm1390_vm0, %v6955_v54 }
 0x283   :  { %6163 = vmatprep.mubr.msk.f32.mxu1 %vm1390_vm0, %v6951_v4 }
 0x285   :  { %6205 = vmatmul.mubr.msk.f32.gmra.mxu0 %vm1390_vm0, %v6969_v49 }
 0x286   :  { %6164 = vmatmul.mubr.msk.f32.gmra.mxu1 %vm1390_vm0, %v6965_v59  ;;  %6207 = vmatprep.mubr.msk.f32.mxu0 %vm1390_vm0, %v6977_v7 }
 0x287   :  { %6166 = vmatprep.mubr.msk.f32.mxu1 %vm1390_vm0, %v6973_v40  ;;  %v3770_v40 = vld [vmem:[#allocation4 + $0xc2] sm:$0xff] }
 0x289   :  { %6208 = vmatmul.mubr.msk.f32.gmra.mxu0 %vm1390_vm0, %v6989_v58 }
 0x28a   :  { %6167 = vmatmul.mubr.msk.f32.gmra.mxu1 %vm1390_vm0, %v6985_v10  ;;  %6210 = vmatprep.mubr.msk.f32.mxu0 %vm1390_vm0, %v6987_v6 }
 0x28b   :  { %6169 = vmatprep.mubr.msk.f32.mxu1 %vm1390_vm0, %v6983_v8 }
 0x28d   :  { %6211 = vmatmul.mubr.msk.f32.gmra.mxu0 %vm1390_vm0, %v7001_v9 }
 0x28e   :  { %6170 = vmatmul.mubr.msk.f32.gmra.mxu1 %vm1390_vm0, %v6997_v12  ;;  %6213 = vmatprep.mubr.msk.f32.mxu0 %vm1390_vm0, %v7009_v15  ;;  %v3771_v12 = vld [vmem:[#allocation4 + $0xca] sm:$0xff] }
 0x28f   :  { %6172 = vmatprep.mubr.msk.f32.mxu1 %vm1390_vm0, %v7005_v13 }
 0x291   :  { %6214 = vmatmul.mubr.msk.f32.gmra.mxu0 %vm1390_vm0, %v7017_v19 }
 0x292   :  { %6173 = vmatmul.mubr.msk.f32.gmra.mxu1 %vm1390_vm0, %v7015_v16  ;;  %6216 = vmatprep.mubr.msk.f32.mxu0 %vm1390_vm0, %v2610_v22 }
 0x293   :  { %6175 = vmatprep.mubr.msk.f32.mxu1 %vm1390_vm0, %v7144_v63 }
 0x295   :  { %6217 = vmatmul.mubr.msk.f32.gmra.mxu0 %vm1390_vm0, %v2611_v45 }
 0x296   :  { %6176 = vmatmul.mubr.msk.f32.gmra.mxu1 %vm1390_vm0, %v7154_v46  ;;  %6219 = vmatprep.mubr.msk.f32.mxu0 %vm1390_vm0, %v3480_v26 }
 0x297   :  { %6178 = vmatprep.mubr.msk.f32.mxu1 %vm1390_vm0, %v3190_v17 }
 0x299   :  { %6220 = vmatmul.mubr.msk.f32.gmra.mxu0 %vm1390_vm0, %v3481_v20 }
 0x29a   :  { %6179 = vmatmul.mubr.msk.f32.gmra.mxu1 %vm1390_vm0, %v3191_v36 }
 0x29b   :  { %6230 = vmatprep.mubr.msk.f32.mxu1 %vm1390_vm0, %v7043_v24 }
 0x29e   :  { %6231 = vmatmul.mubr.msk.f32.vlgmr.msra.gmra.mxu1 %vm1390_vm0, %v7051_v5 }
 0x29f   :  { %6233 = vmatprep.mubr.msk.f32.mxu1 %vm1390_vm0, %v7049_v25 }
 0x2a2   :  { %6234 = vmatmul.mubr.msk.f32.gmra.mxu1 %vm1390_vm0, %v7063_v38 }
 0x2a3   :  { %6236 = vmatprep.mubr.msk.f32.mxu1 %vm1390_vm0, %v7070_v41 }
 0x2a6   :  { %6237 = vmatmul.mubr.msk.f32.gmra.mxu1 %vm1390_vm0, %v7078_v30 }
 0x2a7   :  { %6239 = vmatprep.mubr.msk.f32.mxu1 %vm1390_vm0, %v7076_v51 }
 0x2aa   :  { %6240 = vmatmul.mubr.msk.f32.gmra.mxu1 %vm1390_vm0, %v7088_v1 }
 0x2ab   :  { %6242 = vmatprep.mubr.msk.f32.mxu1 %vm1390_vm0, %v7094_v35 }
 0x2ae   :  { %6243 = vmatmul.mubr.msk.f32.gmra.mxu1 %vm1390_vm0, %v7106_v14 }
 0x2af   :  { %6245 = vmatprep.mubr.msk.f32.mxu1 %vm1390_vm0, %v7102_v18 }
 0x2b2   :  { %6246 = vmatmul.mubr.msk.f32.gmra.mxu1 %vm1390_vm0, %v7116_v11 }
 0x2b3   :  { %6248 = vmatprep.mubr.msk.f32.mxu1 %vm1390_vm0, %v7124_v39 }
 0x2b5   :  { %v5951_v50 = vpop.f32.mrf.mxu0  ;;  %v5910_v53 = vpop.f32.mrf.mxu1 }
 0x2b6   :  { %6249 = vmatmul.mubr.msk.f32.gmra.mxu1 %vm1390_vm0, %v7132_v47  ;;  %v7369_v28 = vadd.f32 %v5951_v50, %v5910_v53  ;;  %v9139_v53 = vld [vmem:[#allocation10_spill] sm:$0xff] }
 0x2b7   :  { %v1921_v56 = vpop.f32.mrf.mxu0  ;;  %6251 = vmatprep.mubr.msk.f32.mxu1 %vm1390_vm0, %v7130_v29  ;;  %v1680_v57 = vpop.f32.mrf.mxu1 }
 0x2b8   :  { %v7373_v61 = vadd.f32 %v1921_v56, %v1680_v57 }
 0x2b9   :  { %v5954_v0 = vpop.f32.mrf.mxu0  ;;  %v5913_v52 = vpop.f32.mrf.mxu1 }
 0x2ba   :  { %6252 = vmatmul.mubr.msk.f32.gmra.mxu1 %vm1390_vm0, %v7142_v62  ;;  %v7377_v42 = vadd.f32 %v5954_v0, %v5913_v52  ;;  %v1912_v52 = vadd.f32 %v7361_v37, %v7365_v48 }
 0x2bb   :  { %6254 = vmatprep.mubr.msk.f32.mxu1 %vm1390_vm0, %v7150_v23  ;;  %v1931_v31 = vpop.f32.mrf.mxu0  ;;  %v1690_v2 = vpop.f32.mrf.mxu1 }
 0x2bc   :  { %v7381_v4 = vadd.f32 %v1931_v31, %v1690_v2  ;;  %v9140_v2 = vld [vmem:[#allocation11_spill] sm:$0xff] }
 0x2bd   :  { %v5957_v3 = vpop.f32.mrf.mxu0  ;;  %v5916_v54 = vpop.f32.mrf.mxu1 }
 0x2be   :  { %6255 = vmatmul.mubr.msk.f32.gmra.mxu1 %vm1390_vm0, %v7158_v34  ;;  %v7385_v55 = vadd.f32 %v5957_v3, %v5916_v54 }
 0x2bf   :  { %v1941_v59 = vpop.f32.mrf.mxu0  ;;  %6257 = vmatprep.mubr.msk.f32.mxu1 %vm1390_vm0, %v7241_v21  ;;  %v1700_v49 = vpop.f32.mrf.mxu1 }
 0x2c0   :  { %v7389_v7 = vadd.f32 %v1941_v59, %v1700_v49 }
 0x2c1   :  { %v5960_v8 = vpop.f32.mrf.mxu0  ;;  %v5919_v10 = vpop.f32.mrf.mxu1 }
 0x2c2   :  { %6258 = vmatmul.mubr.msk.f32.gmra.mxu1 %vm1390_vm0, %v7249_v43  ;;  %v7393_v6 = vadd.f32 %v5960_v8, %v5919_v10 }
 0x2c3   :  { %v1951_v58 = vpop.f32.mrf.mxu0  ;;  %6260 = vmatprep.mubr.msk.f32.mxu1 %vm1390_vm0, %v3770_v40  ;;  %v1710_v9 = vpop.f32.mrf.mxu1 }
 0x2c4   :  { %v7396_v13 = vadd.f32 %v1951_v58, %v1710_v9 }
 0x2c5   :  { %v5963_v15 = vpop.f32.mrf.mxu0  ;;  %v5922_v16 = vpop.f32.mrf.mxu1 }
 0x2c6   :  { %6261 = vmatmul.mubr.msk.f32.gmra.mxu1 %vm1390_vm0, %v3771_v12  ;;  %v7399_v19 = vadd.f32 %v5963_v15, %v5922_v16 }
 0x2c7   :  { %v1961_v24 = vpop.f32.mrf.mxu0  ;;  %v1720_v25 = vpop.f32.mrf.mxu1 }
 0x2c8   :  { %v7401_v5 = vadd.f32 %v1961_v24, %v1720_v25 }
 0x2c9   :  { %v5966_v38 = vpop.f32.mrf.mxu0  ;;  %v5925_v41 = vpop.f32.mrf.mxu1 }
 0x2ca   :  { %v7403_v51 = vadd.f32 %v5966_v38, %v5925_v41 }
 0x2cb   :  { %v1971_v30 = vpop.f32.mrf.mxu0  ;;  %v1730_v1 = vpop.f32.mrf.mxu1 }
 0x2cc   :  { %v7405_v35 = vadd.f32 %v1971_v30, %v1730_v1 }
 0x2cd   :  { %v5969_v18 = vpop.f32.mrf.mxu0  ;;  %v5928_v14 = vpop.f32.mrf.mxu1 }
 0x2ce   :  { %v7407_v11 = vadd.f32 %v5969_v18, %v5928_v14 }
 0x2cf   :  { %v1981_v34 = vpop.f32.mrf.mxu0  ;;  %v1740_v39 = vpop.f32.mrf.mxu1 }
 0x2d0   :  { %v7409_v29 = vadd.f32 %v1981_v34, %v1740_v39 }
 0x2d1   :  { %v5972_v47 = vpop.f32.mrf.mxu0  ;;  %v5931_v62 = vpop.f32.mrf.mxu1 }
 0x2d2   :  { %v7411_v63 = vadd.f32 %v5972_v47, %v5931_v62 }
 0x2d3   :  { %v1991_v23 = vpop.f32.mrf.mxu0  ;;  %v1750_v46 = vpop.f32.mrf.mxu1 }
 0x2d4   :  { %v7413_v44 = vadd.f32 %v1991_v23, %v1750_v46 }
 0x2d5   :  { %v5975_v21 = vpop.f32.mrf.mxu0  ;;  %v5934_v22 = vpop.f32.mrf.mxu1 }
 0x2d6   :  { %v7415_v43 = vadd.f32 %v5975_v21, %v5934_v22 }
 0x2d7   :  { %v2001_v45 = vpop.f32.mrf.mxu0  ;;  %v1760_v33 = vpop.f32.mrf.mxu1 }
 0x2d8   :  { %v7417_v27 = vadd.f32 %v2001_v45, %v1760_v33 }
 0x2d9   :  { %v6027_v32 = vpop.f32.mrf.mxu0  ;;  %v5986_v26 = vpop.f32.mrf.mxu1 }
 0x2da   :  { %v2279_v17 = vadd.f32 %v5986_v26, %v7098_v60 }
 0x2db   :  { %v2459_v20 = vpop.f32.mrf.mxu0  ;;  %v2169_v36 = vpop.f32.mrf.mxu1 }
 0x2dc   :  { %v7420_v50 = vadd.f32 %v6027_v32, %v2279_v17  ;;  %v2278_v56 = vadd.f32 %v2169_v36, %v9139_v53 }
 0x2dd   :  { %v6030_v57 = vpop.f32.mrf.mxu0  ;;  %v5989_v0 = vpop.f32.mrf.mxu1 }
 0x2de   :  { %v7425_v31 = vadd.f32 %v2459_v20, %v2278_v56  ;;  %v2281_v3 = vadd.f32 %v5989_v0, %v9140_v2 }
 0x2df   :  { %v2469_v54 = vpop.f32.mrf.mxu0  ;;  %v2179_v59 = vpop.f32.mrf.mxu1 }
 0x2e0   :  { %v7428_v49 = vadd.f32 %v6030_v57, %v2281_v3  ;;  %v2280_v60 = vadd.f32 %v2179_v59, %v1912_v52 }
 0x2e1   :  { %v6033_v40 = vpop.f32.mrf.mxu0 }
 0x2e2   :  { %v5992_v8 = vpop.f32.mrf.mxu1  ;;  %v7430_v10 = vadd.f32 %v2469_v54, %v2280_v60 }
 0x2e3   :  { %v2283_v58 = vadd.f32 %v5992_v8, %v7369_v28  ;;  %v2479_v12 = vpop.f32.mrf.mxu0 }
 0x2e4   :  { %v2189_v9 = vpop.f32.mrf.mxu1 }
 0x2e5   :  { %v7433_v15 = vadd.f32 %v6033_v40, %v2283_v58  ;;  %v2282_v37 = vadd.f32 %v2189_v9, %v7373_v61  ;;  %v6036_v48 = vpop.f32.mrf.mxu0 }
 0x2e6   :  { %v5995_v16 = vpop.f32.mrf.mxu1 }
 0x2e7   :  { %v7436_v24 = vadd.f32 %v2479_v12, %v2282_v37  ;;  %v2285_v25 = vadd.f32 %v5995_v16, %v7377_v42  ;;  %v2489_v38 = vpop.f32.mrf.mxu0 }
 0x2e8   :  { %v2199_v41 = vpop.f32.mrf.mxu1 }
 0x2e9   :  { %v7439_v30 = vadd.f32 %v6036_v48, %v2285_v25  ;;  %v2284_v1 = vadd.f32 %v2199_v41, %v7381_v4  ;;  %v6039_v18 = vpop.f32.mrf.mxu0 }
 0x2ea   :  { %v5998_v28 = vpop.f32.mrf.mxu1 }
 0x2eb   :  { %v7442_v14 = vadd.f32 %v2489_v38, %v2284_v1  ;;  %v2287_v34 = vadd.f32 %v5998_v28, %v7385_v55  ;;  %v2499_v39 = vpop.f32.mrf.mxu0 }
 0x2ec   :  { %v2209_v61 = vpop.f32.mrf.mxu1 }
 0x2ed   :  { %v7445_v47 = vadd.f32 %v6039_v18, %v2287_v34  ;;  %v2286_v62 = vadd.f32 %v2209_v61, %v7389_v7  ;;  %v6042_v23 = vpop.f32.mrf.mxu0 }
 0x2ee   :  { %v6001_v42 = vpop.f32.mrf.mxu1 }
 0x2ef   :  { %v7448_v46 = vadd.f32 %v2499_v39, %v2286_v62  ;;  %v2289_v21 = vadd.f32 %v6001_v42, %v7393_v6  ;;  %v2509_v22 = vpop.f32.mrf.mxu0 }
 0x2f0   :  { %v2219_v4 = vpop.f32.mrf.mxu1 }
 0x2f1   :  { %v7451_v45 = vadd.f32 %v6042_v23, %v2289_v21  ;;  %v2288_v33 = vadd.f32 %v2219_v4, %v7396_v13  ;;  %v6045_v32 = vpop.f32.mrf.mxu0 }
 0x2f2   :  { %v6004_v55 = vpop.f32.mrf.mxu1 }
 0x2f3   :  { %v7454_v26 = vadd.f32 %v2509_v22, %v2288_v33  ;;  %v2291_v17 = vadd.f32 %v6004_v55, %v7399_v19  ;;  %v2519_v20 = vpop.f32.mrf.mxu0 }
 0x2f4   :  { %v2229_v7 = vpop.f32.mrf.mxu1 }
 0x2f5   :  { %v7457_v36 = vadd.f32 %v6045_v32, %v2291_v17  ;;  %v2290_v53 = vadd.f32 %v2229_v7, %v7401_v5  ;;  %v6048_v56 = vpop.f32.mrf.mxu0 }
 0x2f6   :  { %v6007_v6 = vpop.f32.mrf.mxu1 }
 0x2f7   :  { %v7460_v57 = vadd.f32 %v2519_v20, %v2290_v53  ;;  %v2293_v0 = vadd.f32 %v6007_v6, %v7403_v51  ;;  %v2529_v52 = vpop.f32.mrf.mxu0 }
 0x2f8   :  { %v2239_v13 = vpop.f32.mrf.mxu1 }
 0x2f9   :  { %v7463_v2 = vadd.f32 %v6048_v56, %v2293_v0  ;;  %v2292_v3 = vadd.f32 %v2239_v13, %v7405_v35  ;;  %v6051_v54 = vpop.f32.mrf.mxu0 }
 0x2fa   :  { %v6010_v19 = vpop.f32.mrf.mxu1 }
 0x2fb   :  { %v7466_v59 = vadd.f32 %v2529_v52, %v2292_v3  ;;  %v2295_v60 = vadd.f32 %v6010_v19, %v7407_v11  ;;  %v2539_v40 = vpop.f32.mrf.mxu0 }
 0x2fc   :  { %v2249_v5 = vpop.f32.mrf.mxu1 }
 0x2fd   :  { %v7469_v8 = vadd.f32 %v6051_v54, %v2295_v60  ;;  %v2294_v58 = vadd.f32 %v2249_v5, %v7409_v29  ;;  %v6054_v12 = vpop.f32.mrf.mxu0 }
 0x2fe   :  { %v6013_v51 = vpop.f32.mrf.mxu1 }
 0x2ff   :  { %v7472_v9 = vadd.f32 %v2539_v40, %v2294_v58  ;;  %v2297_v37 = vadd.f32 %v6013_v51, %v7411_v63  ;;  %v2549_v48 = vpop.f32.mrf.mxu0 }
 0x300   :  { %v2259_v35 = vpop.f32.mrf.mxu1 }
 0x301   :  { %v7475_v16 = vadd.f32 %v6054_v12, %v2297_v37  ;;  %v2296_v25 = vadd.f32 %v2259_v35, %v7413_v44  ;;  %v6057_v38 = vpop.f32.mrf.mxu0 }
 0x302   :  { %v6016_v11 = vpop.f32.mrf.mxu1 }
 0x303   :  { %v7478_v41 = vadd.f32 %v2549_v48, %v2296_v25  ;;  %v2299_v1 = vadd.f32 %v6016_v11, %v7415_v43  ;;  %v2559_v18 = vpop.f32.mrf.mxu0 }
 0x304   :  { %v2269_v29 = vpop.f32.mrf.mxu1 }
 0x305   :  { %v7481_v28 = vadd.f32 %v6057_v38, %v2299_v1  ;;  %v2298_v34 = vadd.f32 %v2269_v29, %v7417_v27  ;;  %v7484_v39 = vpop.f32.mrf.mxu0 }
 0x306   :  { %v6068_v63 = vpop.f32.mrf.mxu1 }
 0x307   :  { %v7486_v61 = vadd.f32 %v2559_v18, %v2298_v34  ;;  %v7489_v62 = vadd.f32 %v6068_v63, %v7420_v50  ;;  %v7491_v44 = vpop.f32.mrf.mxu0 }
 0x308   :  { %v2749_v23 = vpop.f32.mrf.mxu1 }
 0x309   :  { %v7494_v42 = vadd.f32 %v2749_v23, %v7425_v31  ;;  %v7496_v43 = vpop.f32.mrf.mxu0 }
 0x30a   :  { %v6071_v21 = vpop.f32.mrf.mxu1 }
 0x30b   :  { %v7499_v22 = vadd.f32 %v6071_v21, %v7428_v49  ;;  %v7501_v27 = vpop.f32.mrf.mxu0 }
 0x30c   :  { %v2759_v4 = vpop.f32.mrf.mxu1 }
 0x30d   :  { %v7504_v33 = vadd.f32 %v2759_v4, %v7430_v10  ;;  %v7506_v50 = vpop.f32.mrf.mxu0 }
 0x30e   :  { %v6074_v32 = vpop.f32.mrf.mxu1 }
 0x30f   :  { %v7509_v55 = vadd.f32 %v6074_v32, %v7433_v15  ;;  %v7511_v31 = vpop.f32.mrf.mxu0 }
 0x310   :  { %v2769_v17 = vpop.f32.mrf.mxu1 }
 0x311   :  { %v7514_v20 = vadd.f32 %v2769_v17, %v7436_v24  ;;  %v7516_v49 = vpop.f32.mrf.mxu0 }
 0x312   :  { %v6077_v7 = vpop.f32.mrf.mxu1 }
 0x313   :  { %v7519_v53 = vadd.f32 %v6077_v7, %v7439_v30  ;;  %v7521_v10 = vpop.f32.mrf.mxu0 }
 0x314   :  { %v2779_v56 = vpop.f32.mrf.mxu1 }
 0x315   :  { %v7524_v6 = vadd.f32 %v2779_v56, %v7442_v14  ;;  %v7526_v15 = vpop.f32.mrf.mxu0 }
 0x316   :  { %v6080_v0 = vpop.f32.mrf.mxu1 }
 0x317   :  { %v7529_v52 = vadd.f32 %v6080_v0, %v7445_v47  ;;  %v7531_v24 = vpop.f32.mrf.mxu0 }
 0x318   :  { %v2789_v13 = vpop.f32.mrf.mxu1 }
 0x319   :  { %v7534_v3 = vadd.f32 %v2789_v13, %v7448_v46  ;;  %v7536_v30 = vpop.f32.mrf.mxu0 }
 0x31a   :  { %v6083_v54 = vpop.f32.mrf.mxu1 }
 0x31b   :  { %v7539_v19 = vadd.f32 %v6083_v54, %v7451_v45  ;;  %v7541_v14 = vpop.f32.mrf.mxu0 }
 0x31c   :  { %v2799_v60 = vpop.f32.mrf.mxu1 }
 0x31d   :  { %v7544_v40 = vadd.f32 %v2799_v60, %v7454_v26  ;;  %v7546_v47 = vpop.f32.mrf.mxu0 }
 0x31e   :  { %v6086_v5 = vpop.f32.mrf.mxu1 }
 0x31f   :  { %v7549_v58 = vadd.f32 %v6086_v5, %v7457_v36  ;;  %v7551_v46 = vpop.f32.mrf.mxu0 }
 0x320   :  { %v2809_v12 = vpop.f32.mrf.mxu1 }
 0x321   :  { %v7554_v51 = vadd.f32 %v2809_v12, %v7460_v57  ;;  %v7556_v45 = vpop.f32.mrf.mxu0 }
 0x322   :  { %v6089_v37 = vpop.f32.mrf.mxu1 }
 0x323   :  { %v7559_v48 = vadd.f32 %v6089_v37, %v7463_v2  ;;  %v7561_v26 = vpop.f32.mrf.mxu0 }
 0x324   :  { %v2819_v35 = vpop.f32.mrf.mxu1 }
 0x325   :  { %v7564_v25 = vadd.f32 %v2819_v35, %v7466_v59  ;;  %v7566_v36 = vpop.f32.mrf.mxu0 }
 0x326   :  { %v6092_v38 = vpop.f32.mrf.mxu1 }
 0x327   :  { %v7569_v11 = vadd.f32 %v6092_v38, %v7469_v8  ;;  %v7571_v57 = vpop.f32.mrf.mxu0 }
 0x328   :  { %v2829_v1 = vpop.f32.mrf.mxu1 }
 0x329   :  { %v7574_v18 = vadd.f32 %v2829_v1, %v7472_v9  ;;  %v7576_v2 = vpop.f32.mrf.mxu0 }
 0x32a   :  { %v6095_v29 = vpop.f32.mrf.mxu1 }
 0x32b   :  { %v7579_v34 = vadd.f32 %v6095_v29, %v7475_v16  ;;  %v7581_v59 = vpop.f32.mrf.mxu0 }
 0x32c   :  { %9141 = vst [vmem:[#allocation10_spill] sm:$0xff] %v7581_v59  ;;  %v2839_v63 = vpop.f32.mrf.mxu1 }
 0x32d   :  { %v7584_v23 = vadd.f32 %v2839_v63, %v7478_v41  ;;  %v7586_v8 = vpop.f32.mrf.mxu0 }
 0x32e   :  { %9143 = vst [vmem:[#allocation12_spill] sm:$0xff] %v7586_v8  ;;  %v6098_v21 = vpop.f32.mrf.mxu1 }
 0x32f   :  { %9142 = vst [vmem:[#allocation11_spill] sm:$0xff] %v7584_v23  ;;  %v7589_v4 = vadd.f32 %v6098_v21, %v7481_v28  ;;  %v7591_v9 = vpop.f32.mrf.mxu0 }
 0x330   :  { %9145 = vst [vmem:[#allocation14_spill] sm:$0xff] %v7591_v9  ;;  %v2849_v32 = vpop.f32.mrf.mxu1 }
 0x331   :  { %9144 = vst [vmem:[#allocation13_spill] sm:$0xff] %v7589_v4  ;;  %v7594_v17 = vadd.f32 %v2849_v32, %v7486_v61  ;;  %v6191_v16 = vpop.f32.mrf.mxu0 }
 0x332   :  { %v6150_v7 = vpop.f32.mrf.mxu1 }
 0x333   :  { %9146 = vst [vmem:[#allocation15_spill] sm:$0xff] %v7594_v17  ;;  %v3619_v56 = vpop.f32.mrf.mxu0 }
 0x334   :  { %v3329_v0 = vpop.f32.mrf.mxu1 }
 0x335   :  { %v7596_v13 = vpop.f32.mrf.mxu0 }
 0x336   :  { %v6153_v41 = vpop.f32.mrf.mxu1 }
 0x337   :  { %v7598_v54 = vpop.f32.mrf.mxu0 }
 0x338   :  { %v3339_v60 = vpop.f32.mrf.mxu1 }
 0x339   :  { %v7600_v5 = vpop.f32.mrf.mxu0 }
 0x33a   :  { %v6156_v28 = vpop.f32.mrf.mxu1 }
 0x33b   :  { %v7602_v12 = vpop.f32.mrf.mxu0 }
 0x33c   :  { %9147 = vst [vmem:[#allocation16_spill] sm:$0xff] %v7602_v12  ;;  %v7604_v37 = vpop.f32.mrf.mxu1 }
 0x33d   :  { %v7606_v35 = vpop.f32.mrf.mxu0 }
 0x33e   :  { %9148 = vst [vmem:[#allocation17_spill] sm:$0xff] %v7606_v35  ;;  %v7608_v61 = vpop.f32.mrf.mxu1 }
 0x33f   :  { %v7610_v38 = vpop.f32.mrf.mxu0 }
 0x340   :  { %9149 = vst [vmem:[#allocation18_spill] sm:$0xff] %v7610_v38  ;;  %v7612_v1 = vpop.f32.mrf.mxu1 }
 0x341   :  { %v7614_v29 = vpop.f32.mrf.mxu0 }
 0x342   :  { %9150 = vst [vmem:[#allocation19_spill] sm:$0xff] %v7614_v29  ;;  %v7616_v63 = vpop.f32.mrf.mxu1 }
 0x343   :  { %v7618_v21 = vpop.f32.mrf.mxu0 }
 0x344   :  { %9151 = vst [vmem:[#allocation20_spill] sm:$0xff] %v7618_v21  ;;  %v7620_v32 = vpop.f32.mrf.mxu1 }
 0x345   :  { %v7622_v9 = vpop.f32.mrf.mxu0 }
 0x346   :  { %9152 = vst [vmem:[#allocation21_spill] sm:$0xff] %v7622_v9  ;;  %v7624_v12 = vpop.f32.mrf.mxu1 }
 0x347   :  { %9153 = vst [vmem:[#allocation22_spill] sm:$0xff] %v7624_v12  ;;  %v7628_v35 = vpop.f32.mrf.mxu0 }
 0x348   :  { %v7626_v17 = vpop.f32.mrf.mxu1 }
 0x349   :  { %9154 = vst [vmem:[#allocation23_spill] sm:$0xff] %v7626_v17  ;;  %v7632_v38 = vpop.f32.mrf.mxu0 }
 0x34a   :  { %v7630_v8 = vpop.f32.mrf.mxu1  ;;  %9156 = vst [vmem:[#allocation25_spill] sm:$0xff] %v7632_v38 }
 0x34b   :  { %9155 = vst [vmem:[#allocation24_spill] sm:$0xff] %v7630_v8  ;;  %v7638_v59 = vpop.f32.mrf.mxu0  ;;  %v3149_v8 = vadd.f32 %v7484_v39, %v7489_v62  ;;  %v3153_v39 = vadd.f32 %v7506_v50, %v7509_v55  ;;  %v3152_v62 = vadd.f32 %v7511_v31, %v7514_v20  ;;  %v3156_v50 = vadd.f32 %v7531_v24, %v7534_v3 }
 0x34c   :  { %v7634_v4 = vpop.f32.mrf.mxu1  ;;  %9159 = vst [vmem:[#allocation28_spill] sm:$0xff] %v7638_v59  ;;  %v3148_v59 = vadd.f32 %v7491_v44, %v7494_v42  ;;  %v3159_v55 = vadd.f32 %v7536_v30, %v7539_v19  ;;  %v3160_v24 = vadd.f32 %v7551_v46, %v7554_v51  ;;  %v3163_v3 = vadd.f32 %v7556_v45, %v7559_v48 }
 0x34d   :  { %9157 = vst [vmem:[#allocation26_spill] sm:$0xff] %v7634_v4  ;;  %v7644_v9 = vpop.f32.mrf.mxu0  ;;  %v3443_v20 = vadd.f32 %v6156_v28, %v3153_v39  ;;  %v3162_v30 = vadd.f32 %v7561_v26, %v7564_v25  ;;  %v3165_v19 = vadd.f32 %v7566_v36, %v7569_v11  ;;  %v3167_v51 = vadd.f32 %v7576_v2, %v7579_v34  ;;  %v9169_v28 = vld [vmem:[#allocation13_spill] sm:$0xff] }
 0x34e   :  { %v7636_v29 = vpop.f32.mrf.mxu1  ;;  %9162 = vst [vmem:[#allocation31_spill] sm:$0xff] %v7644_v9  ;;  %v3151_v9 = vadd.f32 %v7496_v43, %v7499_v22  ;;  %v3154_v43 = vadd.f32 %v7521_v10, %v7524_v6  ;;  %v3157_v22 = vadd.f32 %v7526_v15, %v7529_v52  ;;  %v3158_v10 = vadd.f32 %v7541_v14, %v7544_v40  ;;  %v9165_v34 = vld [vmem:[#allocation22_spill] sm:$0xff] }
 0x34f   :  { %9158 = vst [vmem:[#allocation27_spill] sm:$0xff] %v7636_v29  ;;  %v7652_v38 = vpop.f32.mrf.mxu0  ;;  %v3439_v29 = vadd.f32 %v6150_v7, %v3149_v8  ;;  %v3161_v6 = vadd.f32 %v7546_v47, %v7549_v58  ;;  %v3164_v40 = vadd.f32 %v7571_v57, %v7574_v18  ;;  %v3733_v48 = vadd.f32 %v7600_v5, %v3443_v20  ;;  %v9176_v20 = vld [vmem:[#allocation19_spill] sm:$0xff] }
 0x350   :  { %v7640_v21 = vpop.f32.mrf.mxu1  ;;  %9164 = vst [vmem:[#allocation33_spill] sm:$0xff] %v7652_v38  ;;  %v3155_v38 = vadd.f32 %v7516_v49, %v7519_v53  ;;  %v7685_v53 = vld [vmem:[%s9094_s6] ss:$0 sm:$0xff]  ;;  %v3442_v26 = vadd.f32 %v7604_v37, %v3152_v62  ;;  %v3444_v8 = vadd.f32 %v7612_v1, %v3154_v43  ;;  %v3446_v2 = vadd.f32 %v7620_v32, %v3156_v50  ;;  %v9166_v7 = vld [vmem:[#allocation23_spill] sm:$0xff]  ;;  %v9172_v1 = vld [vmem:[#allocation14_spill] sm:$0xff] }
 0x351   :  { %9160 = vst [vmem:[#allocation29_spill] sm:$0xff] %v7640_v21  ;;  %v7670_v44 = vpop.f32.mrf.mxu0  ;;  %v9170_v37 = vld [vmem:[#allocation12_spill] sm:$0xff]  ;;  %v9174_v43 = vld [vmem:[#allocation17_spill] sm:$0xff] }
 0x352   :  { %v7642_v23 = vpop.f32.mrf.mxu1  ;;  %v3445_v11 = vadd.f32 %v7608_v61, %v3155_v38  ;;  %v3169_v61 = vadd.f32 %v9170_v37, %v9169_v28  ;;  %v9171_v38 = vld [vmem:[#allocation15_spill] sm:$0xff] }
 0x353   :  { %9161 = vst [vmem:[#allocation30_spill] sm:$0xff] %v7642_v23  ;;  %v3438_v23 = vadd.f32 %v3329_v0, %v3148_v59  ;;  %v7699_v59 = vpop.f32.mrf.mxu0 }
 0x354   :  { %v7646_v12 = vpop.f32.mrf.mxu1 }
 0x355   :  { %v3728_v15 = vadd.f32 %v3619_v56, %v3438_v23  ;;  %v7710_v25 = vpop.f32.mrf.mxu0  ;;  %v3448_v56 = vadd.f32 %v9166_v7, %v3158_v10  ;;  %v9177_v10 = vld [vmem:[#allocation20_spill] sm:$0xff] }
 0x356   :  { %v7648_v17 = vpop.f32.mrf.mxu1 }
 0x357   :  { %9163 = vst [vmem:[#allocation32_spill] sm:$0xff] %v7648_v17  ;;  %v3150_v17 = vadd.f32 %v7501_v27, %v7504_v33  ;;  %v3729_v27 = vadd.f32 %v6191_v16, %v3439_v29  ;;  %v3441_v33 = vadd.f32 %v6153_v41, %v3151_v9  ;;  %v3447_v9 = vadd.f32 %v7616_v63, %v3157_v22  ;;  %v9173_v63 = vld [vmem:[#allocation16_spill] sm:$0xff]  ;;  %v7728_v39 = vpop.f32.mrf.mxu0  ;;  %v9189_v37 = vld [vmem:[#allocation33_spill] sm:$0xff] }
 0x358   :  { %v7654_v4 = vpop.f32.mrf.mxu1  ;;  %v3168_v29 = vadd.f32 %v9172_v1, %v9171_v38  ;;  %v3732_v32 = vadd.f32 %v9173_v63, %v3442_v26  ;;  %v3735_v22 = vadd.f32 %v9174_v43, %v3445_v11  ;;  %v9179_v26 = vld [vmem:[#allocation24_spill] sm:$0xff]  ;;  %v9180_v11 = vld [vmem:[#allocation26_spill] sm:$0xff] }
 0x359   :  { %v3440_v31 = vadd.f32 %v3339_v60, %v3150_v17  ;;  %v3731_v47 = vadd.f32 %v7596_v13, %v3441_v33  ;;  %v3449_v17 = vadd.f32 %v9165_v34, %v3159_v55  ;;  %v9168_v60 = vld [vmem:[#allocation10_spill] sm:$0xff] }
 0x35a   :  { %v7658_v21 = vpop.f32.mrf.mxu1  ;;  %v9175_v55 = vld [vmem:[#allocation18_spill] sm:$0xff] }
 0x35b   :  { %v3730_v45 = vadd.f32 %v7598_v54, %v3440_v31  ;;  %v9167_v54 = vld [vmem:[#allocation11_spill] sm:$0xff]  ;;  %v3734_v31 = vadd.f32 %v9175_v55, %v3444_v8  ;;  %v9182_v8 = vld [vmem:[#allocation29_spill] sm:$0xff] }
 0x35c   :  { %v7672_v42 = vpop.f32.mrf.mxu1  ;;  %v3166_v5 = vadd.f32 %v9168_v60, %v9167_v54 }
 0x35e   :  { %v6232_v49 = vpop.f32.mrf.mxu1 }
 0x35f   :  { %v4019_v52 = vadd.f32 %v6232_v49, %v3729_v27  ;;  %v3737_v49 = vadd.f32 %v9176_v20, %v3447_v9  ;;  %v3452_v9 = vadd.f32 %v9182_v8, %v3162_v30  ;;  %v7760_v30 = vld [vmem:[%s9095_s7 + $0x1] ss:$0 sm:$0xff] }
 0x360   :  { %v3909_v14 = vpop.f32.mrf.mxu1  ;;  %9185 = vst [vmem:[#allocation22_spill] sm:$0xff] %v7760_v30 }
 0x361   :  { %v4048_v58 = vadd.f32 %v7685_v53, %v4019_v52  ;;  %v4018_v46 = vadd.f32 %v3909_v14, %v3728_v15  ;;  %v7736_v15 = vadd.f32 %v9177_v10, %v3446_v2  ;;  %v9178_v52 = vld [vmem:[#allocation21_spill] sm:$0xff]  ;;  %v6221_v2 = vpop.f32.mrf.mxu0 }
 0x362   :  { %v6235_v36 = vpop.f32.mrf.mxu1  ;;  %v7739_v14 = vadd.f32 %v9178_v52, %v3449_v17  ;;  %v9183_v17 = vld [vmem:[#allocation30_spill] sm:$0xff]  ;;  %v7807_v10 = vld [vmem:[%s9095_s7 + $0x4] ss:$0 sm:$0xff] }
 0x363   :  { %v4070_v57 = vmax.f32 %v4048_v58, 0.0  ;;  %v4047_v18 = vadd.f32 %v7685_v53, %v4018_v46  ;;  %v4021_v23 = vadd.f32 %v6235_v36, %v3731_v47  ;;  %v7742_v58 = vadd.f32 %v7628_v35, %v3448_v56  ;;  %v3719_v38 = vpop.f32.mrf.mxu0 }
 0x364   :  { %v3919_v16 = vpop.f32.mrf.mxu1  ;;  %v3451_v36 = vadd.f32 %v9179_v26, %v3161_v6 }
 0x365   :  { %4093 = vst.msk [vmem:[#allocation5 + $0x8] sm:$0xff] %vm4091_vm1, %v4070_v57  ;;  %v4069_v0 = vmax.f32 %v4047_v18, 0.0  ;;  %v4050_v13 = vadd.f32 %v7685_v53, %v4021_v23  ;;  %v4020_v41 = vadd.f32 %v3919_v16, %v3730_v45  ;;  %v3450_v57 = vadd.f32 %v9180_v11, %v3160_v24  ;;  %v9181_v18 = vld [vmem:[#allocation27_spill] sm:$0xff]  ;;  %v7820_v11 = vld [vmem:[%s9095_s7 + $0x5] ss:$0 sm:$0xff] }
 0x366   :  { %v6238_v62 = vpop.f32.mrf.mxu1  ;;  %v3453_v23 = vadd.f32 %v9181_v18, %v3163_v3  ;;  %v3455_v16 = vadd.f32 %v9183_v17, %v3165_v19  ;;  %v3456_v24 = vadd.f32 %v7654_v4, %v3166_v5  ;;  %v3459_v3 = vadd.f32 %v7658_v21, %v3169_v61  ;;  %v9187_v4 = vld [vmem:[#allocation28_spill] sm:$0xff]  ;;  %v9188_v21 = vld [vmem:[#allocation31_spill] sm:$0xff] }
 0x367   :  { %4092 = vst.msk [vmem:[#allocation5] sm:$0xff] %vm4091_vm1, %v4069_v0  ;;  %v4072_v27 = vmax.f32 %v4050_v13, 0.0  ;;  %v4049_v33 = vadd.f32 %v7685_v53, %v4020_v41  ;;  %v4023_v50 = vadd.f32 %v6238_v62, %v3733_v48  ;;  %v3454_v0 = vadd.f32 %v7646_v12, %v3164_v40  ;;  %v9184_v13 = vld [vmem:[#allocation32_spill] sm:$0xff]  ;;  %v9186_v40 = vld [vmem:[#allocation25_spill] sm:$0xff] }
 0x368   :  { %v3929_v47 = vpop.f32.mrf.mxu1  ;;  %v3457_v6 = vadd.f32 %v9184_v13, %v3167_v51  ;;  %v3458_v41 = vadd.f32 %v7672_v42, %v3168_v29  ;;  %v7766_v51 = vadd.f32 %v9186_v40, %v3451_v36  ;;  %v7769_v5 = vadd.f32 %v9187_v4, %v3450_v57  ;;  %v7780_v42 = vld [vmem:[%s9095_s7] ss:$0 sm:$0xff] }
 0x369   :  { %4095 = vst.msk [vmem:[#allocation5 + $0x18] sm:$0xff] %vm4091_vm1, %v4072_v27  ;;  %v4071_v46 = vmax.f32 %v4049_v33, 0.0  ;;  %v4052_v45 = vadd.f32 %v7685_v53, %v4023_v50  ;;  %v4022_v48 = vadd.f32 %v3929_v47, %v3732_v32  ;;  %v7772_v28 = vadd.f32 %v9188_v21, %v3453_v23  ;;  %9190 = vst [vmem:[#allocation23_spill] sm:$0xff] %v7780_v42  ;;  %v7790_v27 = vld [vmem:[%s9095_s7 + $0x2] ss:$0 sm:$0xff] }
 0x36a   :  { %v6241_v34 = vpop.f32.mrf.mxu1  ;;  %v7775_v61 = vadd.f32 %v9189_v37, %v3452_v9  ;;  %v7783_v32 = vadd.f32 %v7670_v44, %v3455_v16  ;;  %v7795_v33 = vld [vmem:[%s9095_s7 + $0x3] ss:$0 sm:$0xff]  ;;  %v7799_v44 = vadd.f32 %v7699_v59, %v3454_v0  ;;  %v7802_v55 = vadd.f32 %v7710_v25, %v3457_v6 }
 0x36b   :  { %4094 = vst.msk [vmem:[#allocation5 + $0x10] sm:$0xff] %vm4091_vm1, %v4071_v46  ;;  %v4074_v35 = vmax.f32 %v4052_v45, 0.0  ;;  %v4051_v7 = vadd.f32 %v7685_v53, %v4022_v48  ;;  %v4025_v56 = vadd.f32 %v6241_v34, %v3735_v22  ;;  %v7811_v45 = vadd.f32 %v7728_v39, %v3456_v24 }
 0x36c   :  { %v3939_v19 = vpop.f32.mrf.mxu1  ;;  %v7813_v48 = vadd.f32 %v6221_v2, %v3459_v3  ;;  %v7815_v59 = vadd.f32 %v3719_v38, %v3458_v41 }
 0x36d   :  { %4097 = vst.msk [vmem:[#allocation5 + $0x28] sm:$0xff] %vm4091_vm1, %v4074_v35  ;;  %v4073_v54 = vmax.f32 %v4051_v7, 0.0  ;;  %v4054_v60 = vadd.f32 %v7685_v53, %v4025_v56  ;;  %v4024_v12 = vadd.f32 %v3939_v19, %v3734_v31  ;;  %v4117_v31 = vld [vmem:[#allocation5 + $0x8] sm:$0xff] }
 0x36e   :  { %v4116_v1 = vld [vmem:[#allocation5] sm:$0xff]  ;;  %v6244_v63 = vpop.f32.mrf.mxu1  ;;  %v4136_v34 = vmul.f32 %v7780_v42, %v4117_v31 }
 0x36f   :  { %v4163_v29 = vld [vmem:[#allocation5 + $0x1] sm:$0xff]  ;;  %v4135_v62 = vmul.f32 %v7780_v42, %v4116_v1  ;;  %4096 = vst.msk [vmem:[#allocation5 + $0x20] sm:$0xff] %vm4091_vm1, %v4073_v54  ;;  %v4076_v50 = vmax.f32 %v4054_v60, 0.0  ;;  %v4053_v52 = vadd.f32 %v7685_v53, %v4024_v12  ;;  %v4027_v47 = vadd.f32 %v6244_v63, %v3737_v49 }
 0x370   :  { %v4182_v43 = vmul.f32 %v7760_v30, %v4163_v29  ;;  %v4210_v22 = vld [vmem:[#allocation5 + $0x2] sm:$0xff]  ;;  %v3949_v46 = vpop.f32.mrf.mxu1  ;;  %v4119_v36 = vld [vmem:[#allocation5 + $0x18] sm:$0xff] }
 0x371   :  { %v4257_v20 = vld [vmem:[#allocation5 + $0x3] sm:$0xff]  ;;  %4099 = vst.msk [vmem:[#allocation5 + $0x38] sm:$0xff] %vm4091_vm1, %v4076_v50  ;;  %v4229_v49 = vmul.f32 %v7790_v27, %v4210_v22  ;;  %v4075_v23 = vmax.f32 %v4053_v52, 0.0  ;;  %v4056_v8 = vadd.f32 %v7685_v53, %v4027_v47  ;;  %v4026_v9 = vadd.f32 %v3949_v46, %v7736_v15 }
 0x372   :  { %v4196_v25 = vadd.f32 %v4182_v43, %v4135_v62  ;;  %v4304_v26 = vld [vmem:[#allocation5 + $0x4] sm:$0xff]  ;;  %v4118_v57 = vld [vmem:[#allocation5 + $0x10] sm:$0xff]  ;;  %v6247_v2 = vpop.f32.mrf.mxu1  ;;  %v4276_v17 = vmul.f32 %v7795_v33, %v4257_v20  ;;  %v7837_v24 = vmul.f32 %v7780_v42, %v4119_v36  ;;  %v7840_v15 = vmul.f32 %v7820_v11, %v4119_v36 }
 0x373   :  { %v4164_v18 = vld [vmem:[#allocation5 + $0x9] sm:$0xff]  ;;  %v7824_v39 = vld [vmem:[#allocation5 + $0x11] sm:$0xff]  ;;  %v4137_v16 = vmul.f32 %v7780_v42, %v4118_v57  ;;  %v7834_v6 = vmul.f32 %v7807_v10, %v4304_v26  ;;  %4098 = vst.msk [vmem:[#allocation5 + $0x30] sm:$0xff] %vm4091_vm1, %v4075_v23  ;;  %v4078_v60 = vmax.f32 %v4056_v8, 0.0  ;;  %v4055_v40 = vadd.f32 %v7685_v53, %v4026_v9 }
 0x374   :  { %v4184_v35 = vmul.f32 %v7760_v30, %v7824_v39  ;;  %v4211_v7 = vld [vmem:[#allocation5 + $0xa] sm:$0xff]  ;;  %v4243_v13 = vadd.f32 %v4229_v49, %v4196_v25  ;;  %v3959_v3 = vpop.f32.mrf.mxu1  ;;  %v4183_v19 = vmul.f32 %v7760_v30, %v4164_v18  ;;  %v4029_v4 = vadd.f32 %v6247_v2, %v7739_v14  ;;  %v7858_v29 = vld [vmem:[#allocation5 + $0x12] sm:$0xff] }
 0x375   :  { %v4258_v56 = vld [vmem:[#allocation5 + $0xb] sm:$0xff]  ;;  %v4230_v41 = vmul.f32 %v7790_v27, %v4211_v7  ;;  %v4028_v21 = vadd.f32 %v3959_v3, %v7742_v58  ;;  %v7861_v62 = vmul.f32 %v7820_v11, %v4118_v57  ;;  %4101 = vst.msk [vmem:[#allocation5 + $0x48] sm:$0xff] %vm4091_vm1, %v4078_v60  ;;  %v4077_v58 = vmax.f32 %v4055_v40, 0.0  ;;  %v7880_v23 = vld [vmem:[#allocation5 + $0x13] sm:$0xff] }
 0x376   :  { %v4305_v0 = vld [vmem:[#allocation5 + $0xc] sm:$0xff]  ;;  %v7846_v54 = vmul.f32 %v7795_v33, %v4258_v56  ;;  %v6250_v37 = vpop.f32.mrf.mxu1  ;;  %v7854_v38 = vld [vmem:[#allocation5 + $0x20] sm:$0xff]  ;;  %v4198_v63 = vadd.f32 %v4184_v35, %v4137_v16  ;;  %v4058_v50 = vadd.f32 %v7685_v53, %v4029_v4  ;;  %v4197_v47 = vadd.f32 %v4183_v19, %v4136_v34 }
 0x377   :  { %v7849_v12 = vmul.f32 %v7807_v10, %v4305_v0  ;;  %v7856_v1 = vld [vmem:[#allocation5 + $0x21] sm:$0xff]  ;;  %v4031_v43 = vadd.f32 %v6250_v37, %v7766_v51  ;;  %v4139_v14 = vmul.f32 %v7780_v42, %v7854_v38  ;;  %v4057_v31 = vadd.f32 %v7685_v53, %v4028_v21  ;;  %4100 = vst.msk [vmem:[#allocation5 + $0x40] sm:$0xff] %vm4091_vm1, %v4077_v58  ;;  %v7905_v21 = vld [vmem:[#allocation5 + $0x14] sm:$0xff] }
 0x378   :  { %v7867_v22 = vld [vmem:[#allocation5 + $0x22] sm:$0xff]  ;;  %v3969_v20 = vpop.f32.mrf.mxu1  ;;  %v4186_v52 = vmul.f32 %v7760_v30, %v7856_v1  ;;  %v4231_v51 = vmul.f32 %v7790_v27, %v7858_v29  ;;  %v4080_v26 = vmax.f32 %v4058_v50, 0.0  ;;  %v4290_v9 = vadd.f32 %v4276_v17, %v4243_v13 }
 0x379   :  { %v4060_v46 = vadd.f32 %v7685_v53, %v4031_v43  ;;  %v4030_v25 = vadd.f32 %v3969_v20, %v7769_v5  ;;  %v4079_v36 = vmax.f32 %v4057_v31, 0.0  ;;  %v4233_v18 = vmul.f32 %v7790_v27, %v7867_v22  ;;  %v7882_v8 = vld [vmem:[#allocation5 + $0x23] sm:$0xff] }
 0x37a   :  { %v6253_v49 = vpop.f32.mrf.mxu1  ;;  %v4200_v57 = vadd.f32 %v4186_v52, %v4139_v14  ;;  %v7886_v16 = vld [vmem:[#allocation5 + $0x30] sm:$0xff]  ;;  %4103 = vst.msk [vmem:[#allocation5 + $0x58] sm:$0xff] %vm4091_vm1, %v4080_v26  ;;  %v4245_v13 = vadd.f32 %v4231_v51, %v4198_v63  ;;  %v7900_v19 = vadd.f32 %v4230_v41, %v4197_v47  ;;  %v4278_v63 = vmul.f32 %v7795_v33, %v7880_v23  ;;  %v7913_v58 = vld [vmem:[#allocation5 + $0x24] sm:$0xff]  ;;  %v7922_v47 = vld [vmem:[#allocation5 + $0x19] sm:$0xff] }
 0x37b   :  { %v4082_v2 = vmax.f32 %v4060_v46, 0.0  ;;  %v4059_v5 = vadd.f32 %v7685_v53, %v4030_v25  ;;  %v4033_v34 = vadd.f32 %v6253_v49, %v7772_v28  ;;  %v7888_v35 = vld [vmem:[#allocation5 + $0x31] sm:$0xff]  ;;  %4102 = vst.msk [vmem:[#allocation5 + $0x50] sm:$0xff] %vm4091_vm1, %v4079_v36  ;;  %v4141_v0 = vmul.f32 %v7780_v42, %v7886_v16 }
 0x37c   :  { %v7890_v7 = vld [vmem:[#allocation5 + $0x32] sm:$0xff]  ;;  %v3979_v56 = vpop.f32.mrf.mxu1  ;;  %v4188_v17 = vmul.f32 %v7760_v30, %v7888_v35  ;;  %v4247_v3 = vadd.f32 %v4233_v18, %v4200_v57  ;;  %v4280_v41 = vmul.f32 %v7795_v33, %v7882_v8  ;;  %v4292_v51 = vadd.f32 %v4278_v63, %v4245_v13 }
 0x37d   :  { %v7898_v28 = vld [vmem:[#allocation5 + $0x33] sm:$0xff]  ;;  %4105 = vst.msk [vmem:[#allocation5 + $0x68] sm:$0xff] %vm4091_vm1, %v4082_v2  ;;  %v4081_v60 = vmax.f32 %v4059_v5, 0.0  ;;  %v4062_v40 = vadd.f32 %v7685_v53, %v4033_v34  ;;  %v4032_v4 = vadd.f32 %v3979_v56, %v7775_v61  ;;  %v4235_v14 = vmul.f32 %v7790_v27, %v7890_v7 }
 0x37e   :  { %v6256_v37 = vpop.f32.mrf.mxu1  ;;  %v4202_v43 = vadd.f32 %v4188_v17, %v4141_v0  ;;  %v4282_v20 = vmul.f32 %v7795_v33, %v7898_v28  ;;  %v7920_v52 = vld [vmem:[#allocation5 + $0x34] sm:$0xff]  ;;  %v4294_v26 = vadd.f32 %v4280_v41, %v4247_v3  ;;  %v4325_v36 = vmul.f32 %v7807_v10, %v7905_v21  ;;  %v7929_v18 = vld [vmem:[#allocation5 + $0x40] sm:$0xff] }
 0x37f   :  { %4104 = vst.msk [vmem:[#allocation5 + $0x60] sm:$0xff] %vm4091_vm1, %v4081_v60  ;;  %v4084_v50 = vmax.f32 %v4062_v40, 0.0  ;;  %v4061_v61 = vadd.f32 %v7685_v53, %v4032_v4  ;;  %v4035_v31 = vadd.f32 %v6256_v37, %v7783_v32  ;;  %9191 = vst [vmem:[#allocation11_spill] sm:$0xff] %v7929_v18  ;;  %v7931_v2 = vld [vmem:[#allocation5 + $0x41] sm:$0xff]  ;;  %v4327_v34 = vmul.f32 %v7807_v10, %v7913_v58 }
 0x380   :  { %v3989_v46 = vpop.f32.mrf.mxu1  ;;  %v4249_v25 = vadd.f32 %v4235_v14, %v4202_v43  ;;  %9192 = vst [vmem:[#allocation10_spill] sm:$0xff] %v7931_v2  ;;  %v7933_v5 = vld [vmem:[#allocation5 + $0x42] sm:$0xff]  ;;  %v4143_v0 = vmul.f32 %v7780_v42, %v7929_v18  ;;  %v4190_v17 = vmul.f32 %v7760_v30, %v7931_v2  ;;  %v4337_v4 = vadd.f32 %v7834_v6, %v4290_v9 }
 0x381   :  { %4107 = vst.msk [vmem:[#allocation5 + $0x78] sm:$0xff] %vm4091_vm1, %v4084_v50  ;;  %v4083_v49 = vmax.f32 %v4061_v61, 0.0  ;;  %v4064_v57 = vadd.f32 %v7685_v53, %v4035_v31  ;;  %v4034_v32 = vadd.f32 %v3989_v46, %v7799_v44  ;;  %9193 = vst [vmem:[#allocation13_spill] sm:$0xff] %v7933_v5  ;;  %v4329_v44 = vmul.f32 %v7807_v10, %v7920_v52 }
 0x382   :  { %v6259_v56 = vpop.f32.mrf.mxu1  ;;  %v4296_v13 = vadd.f32 %v4282_v20, %v4249_v25  ;;  %v7949_v37 = vmul.f32 %v7760_v30, %v7922_v47  ;;  %v4237_v14 = vmul.f32 %v7790_v27, %v7933_v5  ;;  %v4339_v63 = vadd.f32 %v4325_v36, %v4292_v51 }
 0x383   :  { %4106 = vst.msk [vmem:[#allocation5 + $0x70] sm:$0xff] %vm4091_vm1, %v4083_v49  ;;  %v4086_v3 = vmax.f32 %v4064_v57, 0.0  ;;  %v4063_v60 = vadd.f32 %v7685_v53, %v4034_v32  ;;  %v4037_v40 = vadd.f32 %v6259_v56, %v7802_v55  ;;  %v4341_v41 = vadd.f32 %v4327_v34, %v4294_v26  ;;  %v7956_v55 = vld [vmem:[#allocation5 + $0x43] sm:$0xff]  ;;  %v7967_v26 = vld [vmem:[%s9095_s7 + $0x6] ss:$0 sm:$0xff] }
 0x384   :  { %v3999_v43 = vpop.f32.mrf.mxu1  ;;  %9194 = vst [vmem:[#allocation12_spill] sm:$0xff] %v7956_v55  ;;  %v4343_v6 = vadd.f32 %v4329_v44, %v4296_v13  ;;  %v4204_v20 = vadd.f32 %v4190_v17, %v4143_v0  ;;  %v4360_v46 = vmul.f32 %v7820_v11, %v7854_v38  ;;  %v4362_v25 = vmul.f32 %v7820_v11, %v7886_v16  ;;  %v7978_v13 = vld [vmem:[%s9095_s7 + $0x7] ss:$0 sm:$0xff] }
 0x385   :  { %4109 = vst.msk [vmem:[#allocation5 + $0x88] sm:$0xff] %vm4091_vm1, %v4086_v3  ;;  %v4085_v50 = vmax.f32 %v4063_v60, 0.0  ;;  %v4066_v61 = vadd.f32 %v7685_v53, %v4037_v40  ;;  %v4036_v31 = vadd.f32 %v3999_v43, %v7811_v45  ;;  %v4364_v51 = vmul.f32 %v7820_v11, %v7929_v18 }
 0x386   :  { %v6262_v9 = vpop.f32.mrf.mxu1  ;;  %v4372_v57 = vadd.f32 %v7861_v62, %v4337_v4  ;;  %v4284_v34 = vmul.f32 %v7795_v33, %v7956_v55  ;;  %v4374_v56 = vadd.f32 %v4360_v46, %v4339_v63  ;;  %v4376_v0 = vadd.f32 %v4362_v25, %v4341_v41  ;;  %v8010_v46 = vld [vmem:[%s9095_s7 + $0x9] ss:$0 sm:$0xff] }
 0x387   :  { %4108 = vst.msk [vmem:[#allocation5 + $0x80] sm:$0xff] %vm4091_vm1, %v4085_v50  ;;  %v4088_v45 = vmax.f32 %v4066_v61, 0.0  ;;  %v4065_v36 = vadd.f32 %v7685_v53, %v4036_v31  ;;  %v4039_v49 = vadd.f32 %v6262_v9, %v7813_v48  ;;  %v4378_v17 = vadd.f32 %v4364_v51, %v4343_v6  ;;  %v8012_v51 = vld [vmem:[#allocation5 + $0x44] sm:$0xff] }
 0x388   :  { %v4009_v32 = vpop.f32.mrf.mxu1  ;;  %v4393_v62 = vmul.f32 %v7967_v26, %v7824_v39  ;;  %v4251_v60 = vadd.f32 %v4237_v14, %v4204_v20  ;;  %v4395_v40 = vmul.f32 %v7967_v26, %v7856_v1  ;;  %v4397_v4 = vmul.f32 %v7967_v26, %v7888_v35  ;;  %v7998_v39 = vld [vmem:[%s9095_s7 + $0x8] ss:$0 sm:$0xff]  ;;  %9195 = vst [vmem:[#allocation15_spill] sm:$0xff] %v8012_v51 }
 0x389   :  { %4111 = vst.msk [vmem:[#allocation5 + $0x98] sm:$0xff] %vm4091_vm1, %v4088_v45  ;;  %v4087_v44 = vmax.f32 %v4065_v36, 0.0  ;;  %v4068_v3 = vadd.f32 %v7685_v53, %v4039_v49  ;;  %v4038_v48 = vadd.f32 %v4009_v32, %v7815_v59  ;;  %v4399_v43 = vmul.f32 %v7967_v26, %v7931_v2 }
 0x38a   :  { %v4407_v50 = vadd.f32 %v4393_v62, %v4372_v57  ;;  %v4428_v59 = vmul.f32 %v7978_v13, %v7858_v29  ;;  %v4409_v14 = vadd.f32 %v4395_v40, %v4374_v56  ;;  %v4411_v61 = vadd.f32 %v4397_v4, %v4376_v0  ;;  %v8036_v40 = vld [vmem:[%s9095_s7 + $0xa] ss:$0 sm:$0xff] }
 0x38b   :  { %4110 = vst.msk [vmem:[#allocation5 + $0x90] sm:$0xff] %vm4091_vm1, %v4087_v44  ;;  %v4090_v63 = vmax.f32 %v4068_v3, 0.0  ;;  %v4067_v41 = vadd.f32 %v7685_v53, %v4038_v48  ;;  %v4413_v31 = vadd.f32 %v4399_v43, %v4378_v17  ;;  %v4430_v6 = vmul.f32 %v7978_v13, %v7867_v22 }
 0x38c   :  { %v4432_v53 = vmul.f32 %v7978_v13, %v7890_v7  ;;  %v4434_v29 = vmul.f32 %v7978_v13, %v7933_v5  ;;  %v4442_v20 = vadd.f32 %v4428_v59, %v4407_v50  ;;  %v4298_v25 = vadd.f32 %v4284_v34, %v4251_v60 }
 0x38d   :  { %4113 = vst.msk [vmem:[#allocation5 + $0xa8] sm:$0xff] %vm4091_vm1, %v4090_v63  ;;  %v4089_v9 = vmax.f32 %v4067_v41, 0.0  ;;  %v4444_v45 = vadd.f32 %v4430_v6, %v4409_v14  ;;  %v4463_v36 = vmul.f32 %v7998_v39, %v7880_v23  ;;  %v4465_v49 = vmul.f32 %v7998_v39, %v7882_v8 }
 0x38e   :  { %v4446_v57 = vadd.f32 %v4432_v53, %v4411_v61  ;;  %v4448_v32 = vadd.f32 %v4434_v29, %v4413_v31  ;;  %v4467_v56 = vmul.f32 %v7998_v39, %v7898_v28  ;;  %v4469_v0 = vmul.f32 %v7998_v39, %v7956_v55  ;;  %v8073_v31 = vld [vmem:[%s9095_s7 + $0xd] ss:$0 sm:$0xff] }
 0x38f   :  { %4112 = vst.msk [vmem:[#allocation5 + $0xa0] sm:$0xff] %vm4091_vm1, %v4089_v9  ;;  %v8025_v34 = vadd.f32 %v7846_v54, %v7900_v19  ;;  %v4477_v17 = vadd.f32 %v4463_v36, %v4442_v20  ;;  %v4479_v44 = vadd.f32 %v4465_v49, %v4444_v45  ;;  %v4498_v23 = vmul.f32 %v8010_v46, %v7905_v21  ;;  %v8041_v54 = vld [vmem:[%s9095_s7 + $0xb] ss:$0 sm:$0xff]  ;;  %v8086_v20 = vld [vmem:[%s9095_s7 + $0xe] ss:$0 sm:$0xff] }
 0x390   :  { %v4331_v3 = vmul.f32 %v7807_v10, %v8012_v51  ;;  %v4481_v48 = vadd.f32 %v4467_v56, %v4446_v57  ;;  %v4483_v62 = vadd.f32 %v4469_v0, %v4448_v32  ;;  %v4502_v60 = vmul.f32 %v8010_v46, %v7920_v52  ;;  %9201 = vst [vmem:[#allocation20_spill] sm:$0xff] %v8086_v20  ;;  %v8099_v49 = vld [vmem:[%s9095_s7 + $0xf] ss:$0 sm:$0xff]  ;;  %v8104_v57 = vld [vmem:[%s9095_s7 + $0x10] ss:$0 sm:$0xff] }
 0x391   :  { %v8045_v19 = vadd.f32 %v7949_v37, %v7837_v24  ;;  %v4500_v21 = vmul.f32 %v8010_v46, %v7913_v58  ;;  %v4512_v4 = vadd.f32 %v4498_v23, %v4477_v17  ;;  %v4533_v43 = vmul.f32 %v8036_v40, %v7854_v38  ;;  %v8060_v24 = vld [vmem:[%s9095_s7 + $0xc] ss:$0 sm:$0xff]  ;;  %9203 = vst [vmem:[#allocation24_spill] sm:$0xff] %v8099_v49  ;;  %v8114_v32 = vld [vmem:[%s9095_s7 + $0x12] ss:$0 sm:$0xff] }
 0x392   :  { %v8051_v63 = vadd.f32 %v4331_v3, %v4298_v25  ;;  %v4504_v41 = vmul.f32 %v8010_v46, %v8012_v51  ;;  %v4516_v50 = vadd.f32 %v4502_v60, %v4481_v48  ;;  %v4537_v59 = vmul.f32 %v8036_v40, %v7929_v18  ;;  %9204 = vst [vmem:[#allocation26_spill] sm:$0xff] %v8104_v57  ;;  %v8129_v23 = vld [vmem:[%s9095_s7 + $0x13] ss:$0 sm:$0xff]  ;;  %v8134_v3 = vld [vmem:[%s9095_s7 + $0x14] ss:$0 sm:$0xff] }
 0x393   :  { %v8062_v37 = vadd.f32 %v4500_v21, %v4479_v44  ;;  %v8066_v14 = vmul.f32 %v8036_v40, %v7886_v16  ;;  %v4547_v38 = vadd.f32 %v4533_v43, %v4512_v4  ;;  %v4568_v61 = vmul.f32 %v8041_v54, %v7856_v1  ;;  %9206 = vst [vmem:[#allocation29_spill] sm:$0xff] %v8114_v32  ;;  %v8154_v4 = vld [vmem:[%s9095_s7 + $0x16] ss:$0 sm:$0xff] }
 0x394   :  { %9196 = vst [vmem:[#allocation14_spill] sm:$0xff] %v8051_v63  ;;  %v8075_v6 = vadd.f32 %v4504_v41, %v4483_v62  ;;  %v4551_v9 = vadd.f32 %v4537_v59, %v4516_v50  ;;  %v8079_v53 = vmul.f32 %v8041_v54, %v7888_v35  ;;  %v4572_v29 = vmul.f32 %v8041_v54, %v7931_v2  ;;  %v8156_v43 = vld [vmem:[#allocation5 + $0x28] sm:$0xff]  ;;  %v8228_v63 = vld [vmem:[#allocation5 + $0x3b] sm:$0xff] }
 0x395   :  { %9197 = vst [vmem:[#allocation16_spill] sm:$0xff] %v8062_v37  ;;  %9198 = vst [vmem:[#allocation17_spill] sm:$0xff] %v8066_v14  ;;  %v4582_v1 = vadd.f32 %v4568_v61, %v4547_v38  ;;  %v4603_v25 = vmul.f32 %v8060_v24, %v7867_v22  ;;  %v8092_v45 = vmul.f32 %v8060_v24, %v7890_v7  ;;  %v8109_v22 = vld [vmem:[%s9095_s7 + $0x11] ss:$0 sm:$0xff]  ;;  %v8171_v61 = vld [vmem:[%s9095_s7 + $0x17] ss:$0 sm:$0xff] }
 0x396   :  { %9199 = vst [vmem:[#allocation18_spill] sm:$0xff] %v8075_v6  ;;  %9200 = vst [vmem:[#allocation19_spill] sm:$0xff] %v8079_v53  ;;  %v4607_v36 = vmul.f32 %v8060_v24, %v7933_v5  ;;  %v4586_v56 = vadd.f32 %v4572_v29, %v4551_v9  ;;  %v4638_v0 = vmul.f32 %v8073_v31, %v7882_v8  ;;  %v8139_v8 = vld [vmem:[%s9095_s7 + $0x15] ss:$0 sm:$0xff]  ;;  %v8173_v9 = vld [vmem:[#allocation5 + $0x38] sm:$0xff] }
 0x397   :  { %9202 = vst [vmem:[#allocation21_spill] sm:$0xff] %v8092_v45  ;;  %9205 = vst [vmem:[#allocation27_spill] sm:$0xff] %v8109_v22  ;;  %v8120_v17 = vmul.f32 %v8073_v31, %v7898_v28  ;;  %v8124_v44 = vmul.f32 %v8073_v31, %v7956_v55  ;;  %v4617_v48 = vadd.f32 %v4603_v25, %v4582_v1  ;;  %v8158_v41 = vld [vmem:[#allocation5 + $0x29] sm:$0xff]  ;;  %v8175_v29 = vld [vmem:[#allocation5 + $0x39] sm:$0xff] }
 0x398   :  { %9208 = vst [vmem:[#allocation32_spill] sm:$0xff] %v8129_v23  ;;  %9209 = vst [vmem:[#allocation25_spill] sm:$0xff] %v8134_v3  ;;  %v4673_v62 = vmul.f32 %v8086_v20, %v7913_v58  ;;  %v8145_v60 = vmul.f32 %v8086_v20, %v7920_v52  ;;  %v8149_v21 = vmul.f32 %v8086_v20, %v8012_v51  ;;  %v8183_v25 = vld [vmem:[#allocation5 + $0x49] sm:$0xff]  ;;  %v8213_v53 = vld [vmem:[#allocation5 + $0x1b] sm:$0xff] }
 0x399   :  { %9207 = vst [vmem:[#allocation30_spill] sm:$0xff] %v8120_v17  ;;  %9210 = vst [vmem:[#allocation28_spill] sm:$0xff] %v8139_v8  ;;  %v4708_v58 = vmul.f32 %v8099_v49, %v7886_v16  ;;  %v4743_v50 = vmul.f32 %v8104_v57, %v7888_v35  ;;  %v4778_v59 = vmul.f32 %v8109_v22, %v7890_v7  ;;  %v8215_v6 = vld [vmem:[#allocation5 + $0x2b] sm:$0xff] }
 0x39a   :  { %9211 = vst [vmem:[#allocation31_spill] sm:$0xff] %v8145_v60  ;;  %9212 = vst [vmem:[#allocation33_spill] sm:$0xff] %v8154_v4  ;;  %v4813_v38 = vmul.f32 %v8114_v32, %v7898_v28  ;;  %v4621_v1 = vadd.f32 %v4607_v36, %v4586_v56  ;;  %v4652_v16 = vadd.f32 %v4638_v0, %v4617_v48  ;;  %v8185_v28 = vld [vmem:[#allocation5 + $0x1a] sm:$0xff]  ;;  %v8187_v60 = vld [vmem:[#allocation5 + $0x2a] sm:$0xff] }
 0x39b   :  { %9213 = vst [vmem:[#allocation34_spill] sm:$0xff] %v8171_v61  ;;  %v4848_v35 = vmul.f32 %v8129_v23, %v7920_v52  ;;  %v8181_v7 = vmul.f32 %v8134_v3, %v7929_v18  ;;  %9214 = vst [vmem:[#allocation35_spill] sm:$0xff] %v8183_v25  ;;  %v8191_v17 = vmul.f32 %v8139_v8, %v7931_v2  ;;  %v8197_v56 = vld [vmem:[#allocation5 + $0x48] sm:$0xff]  ;;  %v8203_v48 = vld [vmem:[#allocation5 + $0x3a] sm:$0xff] }
 0x39c   :  { %v8195_v36 = vmul.f32 %v8154_v4, %v7933_v5  ;;  %9215 = vst [vmem:[#allocation36_spill] sm:$0xff] %v8197_v56  ;;  %v4140_v52 = vmul.f32 %v7780_v42, %v8156_v43  ;;  %v4187_v0 = vmul.f32 %v7760_v30, %v8158_v41  ;;  %v4687_v18 = vadd.f32 %v4673_v62, %v4652_v16  ;;  %v8220_v14 = vld [vmem:[%s9095_s7 + $0x18] ss:$0 sm:$0xff]  ;;  %v8234_v23 = vld [vmem:[#allocation5 + $0x1c] sm:$0xff] }
 0x39d   :  { %v8207_v45 = vmul.f32 %v8171_v61, %v7956_v55  ;;  %v4142_v2 = vmul.f32 %v7780_v42, %v8173_v9  ;;  %v4189_v5 = vmul.f32 %v7760_v30, %v8175_v29  ;;  %v4191_v62 = vmul.f32 %v7760_v30, %v8183_v25  ;;  %v8241_v22 = vld [vmem:[#allocation5 + $0x2c] sm:$0xff] }
 0x39e   :  { %v4201_v16 = vadd.f32 %v4187_v0, %v4140_v52  ;;  %v4232_v55 = vmul.f32 %v7790_v27, %v8185_v28  ;;  %v4234_v37 = vmul.f32 %v7790_v27, %v8187_v60  ;;  %v4722_v61 = vadd.f32 %v4708_v58, %v4687_v18  ;;  %v8243_v18 = vld [vmem:[#allocation5 + $0x3c] sm:$0xff] }
 0x39f   :  { %v4144_v4 = vmul.f32 %v7780_v42, %v8197_v56  ;;  %v4203_v8 = vadd.f32 %v4189_v5, %v4142_v2  ;;  %v4236_v3 = vmul.f32 %v7790_v27, %v8203_v48  ;;  %v4279_v30 = vmul.f32 %v7795_v33, %v8213_v53  ;;  %v8249_v5 = vld [vmem:[#allocation5 + $0x4a] sm:$0xff] }
 0x3a0   :  { %v4246_v52 = vadd.f32 %v4232_v55, %v8045_v19  ;;  %v4248_v0 = vadd.f32 %v4234_v37, %v4201_v16  ;;  %v4281_v32 = vmul.f32 %v7795_v33, %v8215_v6  ;;  %v4757_v58 = vadd.f32 %v4743_v50, %v4722_v61  ;;  %9216 = vst [vmem:[#allocation37_spill] sm:$0xff] %v8249_v5 }
 0x3a1   :  { %v8247_v2 = vmul.f32 %v8220_v14, %v8012_v51  ;;  %v4250_v42 = vadd.f32 %v4236_v3, %v4203_v8  ;;  %v4283_v55 = vmul.f32 %v7795_v33, %v8228_v63  ;;  %v4205_v19 = vadd.f32 %v4191_v62, %v4144_v4 }
 0x3a2   :  { %v4293_v37 = vadd.f32 %v4279_v30, %v4246_v52  ;;  %v4295_v16 = vadd.f32 %v4281_v32, %v4248_v0  ;;  %v4326_v57 = vmul.f32 %v7807_v10, %v8234_v23  ;;  %v4792_v49 = vadd.f32 %v4778_v59, %v4757_v58 }
 0x3a3   :  { %v4297_v20 = vadd.f32 %v4283_v55, %v4250_v42  ;;  %v4328_v50 = vmul.f32 %v7807_v10, %v8241_v22  ;;  %v4330_v61 = vmul.f32 %v7807_v10, %v8243_v18  ;;  %v4656_v51 = vadd.f32 %v8124_v44, %v4621_v1 }
 0x3a4   :  { %v4238_v3 = vmul.f32 %v7790_v27, %v8249_v5  ;;  %v4338_v30 = vadd.f32 %v7849_v12, %v8025_v34  ;;  %v4340_v32 = vadd.f32 %v4326_v57, %v4293_v37  ;;  %v4827_v8 = vadd.f32 %v4813_v38, %v4792_v49 }
 0x3a5   :  { %v4342_v4 = vadd.f32 %v4328_v50, %v4295_v16  ;;  %v4344_v62 = vadd.f32 %v4330_v61, %v4297_v20  ;;  %v4361_v42 = vmul.f32 %v7820_v11, %v8156_v43  ;;  %v4363_v52 = vmul.f32 %v7820_v11, %v8173_v9 }
 0x3a6   :  { %v4252_v59 = vadd.f32 %v4238_v3, %v4205_v19  ;;  %v4365_v44 = vmul.f32 %v7820_v11, %v8197_v56  ;;  %v4373_v1 = vadd.f32 %v7840_v15, %v4338_v30  ;;  %v4862_v0 = vadd.f32 %v4848_v35, %v4827_v8  ;;  %v8280_v19 = vld [vmem:[#allocation5 + $0x4b] sm:$0xff] }
 0x3a7   :  { %v4375_v58 = vadd.f32 %v4361_v42, %v4340_v32  ;;  %v4394_v12 = vmul.f32 %v7967_v26, %v7922_v47  ;;  %v4396_v34 = vmul.f32 %v7967_v26, %v8158_v41  ;;  %v4377_v20 = vadd.f32 %v4363_v52, %v4342_v4  ;;  %9217 = vst [vmem:[#allocation38_spill] sm:$0xff] %v8280_v19  ;;  %v8298_v52 = vld [vmem:[#allocation5 + $0x4c] sm:$0xff] }
 0x3a8   :  { %v4379_v49 = vadd.f32 %v4365_v44, %v4344_v62  ;;  %v4398_v57 = vmul.f32 %v7967_v26, %v8175_v29  ;;  %v4400_v38 = vmul.f32 %v7967_v26, %v8183_v25  ;;  %v4897_v55 = vadd.f32 %v8181_v7, %v4862_v0  ;;  %9218 = vst [vmem:[#allocation39_spill] sm:$0xff] %v8298_v52 }
 0x3a9   :  { %v4408_v15 = vadd.f32 %v4394_v12, %v4373_v1  ;;  %v4410_v35 = vadd.f32 %v4396_v34, %v4375_v58  ;;  %v4429_v47 = vmul.f32 %v7978_v13, %v8185_v28  ;;  %v4431_v50 = vmul.f32 %v7978_v13, %v8187_v60 }
 0x3aa   :  { %v4412_v37 = vadd.f32 %v4398_v57, %v4377_v20  ;;  %v4414_v16 = vadd.f32 %v4400_v38, %v4379_v49  ;;  %v4433_v61 = vmul.f32 %v7978_v13, %v8203_v48  ;;  %v4932_v3 = vadd.f32 %v8191_v17, %v4897_v55 }
 0x3ab   :  { %v4435_v7 = vmul.f32 %v7978_v13, %v8249_v5  ;;  %v4443_v30 = vadd.f32 %v4429_v47, %v4408_v15  ;;  %v4464_v32 = vmul.f32 %v7998_v39, %v8213_v53  ;;  %v4285_v28 = vmul.f32 %v7795_v33, %v8280_v19 }
 0x3ac   :  { %v4445_v8 = vadd.f32 %v4431_v50, %v4410_v35  ;;  %v4447_v4 = vadd.f32 %v4433_v61, %v4412_v37  ;;  %v4468_v62 = vmul.f32 %v7998_v39, %v8228_v63  ;;  %v4967_v42 = vadd.f32 %v8195_v36, %v4932_v3 }
 0x3ad   :  { %v4449_v17 = vadd.f32 %v4435_v7, %v4414_v16  ;;  %v4466_v44 = vmul.f32 %v7998_v39, %v8215_v6  ;;  %v4478_v1 = vadd.f32 %v4464_v32, %v4443_v30  ;;  %v4299_v0 = vadd.f32 %v4285_v28, %v4252_v59 }
 0x3ae   :  { %v4470_v53 = vmul.f32 %v7998_v39, %v8280_v19  ;;  %v4482_v58 = vadd.f32 %v4468_v62, %v4447_v4  ;;  %v4499_v12 = vmul.f32 %v8010_v46, %v8234_v23  ;;  %v8307_v34 = vadd.f32 %v8149_v21, %v4656_v51 }
 0x3af   :  { %v5002_v36 = vadd.f32 %v8207_v45, %v4967_v42  ;;  %v4480_v20 = vadd.f32 %v4466_v44, %v4445_v8  ;;  %v4503_v49 = vmul.f32 %v8010_v46, %v8243_v18  ;;  %v4332_v57 = vmul.f32 %v7807_v10, %v8298_v52 }
 0x3b0   :  { %v4484_v59 = vadd.f32 %v4470_v53, %v4449_v17  ;;  %v4513_v38 = vadd.f32 %v4499_v12, %v4478_v1  ;;  %v4534_v55 = vmul.f32 %v8036_v40, %v8156_v43  ;;  %v4501_v51 = vmul.f32 %v8010_v46, %v8241_v22  ;;  %v8358_v17 = vld [vmem:[#allocation5 + $0x50] sm:$0xff] }
 0x3b1   :  { %v5037_v15 = vadd.f32 %v8247_v2, %v5002_v36  ;;  %v4517_v23 = vadd.f32 %v4503_v49, %v4482_v58  ;;  %v4538_v45 = vmul.f32 %v8036_v40, %v8197_v56  ;;  %v8321_v21 = vadd.f32 %v4332_v57, %v4299_v0  ;;  %v9226_v1 = vld [vmem:[#allocation20_spill] sm:$0xff]  ;;  %v9229_v49 = vld [vmem:[#allocation26_spill] sm:$0xff] }
 0x3b2   :  { %v4505_v35 = vmul.f32 %v8010_v46, %v8298_v52  ;;  %v4548_v47 = vadd.f32 %v4534_v55, %v4513_v38  ;;  %v4569_v37 = vmul.f32 %v8041_v54, %v8158_v41  ;;  %v8328_v16 = vadd.f32 %v4501_v51, %v4480_v20  ;;  %v8368_v58 = vld [vmem:[#allocation5 + $0x51] sm:$0xff] }
 0x3b3   :  { %9219 = vst [vmem:[#allocation40_spill] sm:$0xff] %v8321_v21  ;;  %v5051_v43 = vsel %vm4091_vm1, %v5037_v15, 0.0  ;;  %v4552_v2 = vadd.f32 %v4538_v45, %v4517_v23  ;;  %v4573_v50 = vmul.f32 %v8041_v54, %v8183_v25  ;;  %v8336_v3 = vmul.f32 %v8036_v40, %v8173_v9  ;;  %v9228_v36 = vld [vmem:[#allocation24_spill] sm:$0xff]  ;;  %v9233_v23 = vld [vmem:[#allocation25_spill] sm:$0xff] }
 0x3b4   :  { %9220 = vst [vmem:[#allocation41_spill] sm:$0xff] %v8328_v16  ;;  %5052 = vadd.xlane.f32.xlu0 %v5051_v43  ;;  %v8332_v61 = vadd.f32 %v4505_v35, %v4484_v59  ;;  %v4583_v7 = vadd.f32 %v4569_v37, %v4548_v47  ;;  %v4604_v30 = vmul.f32 %v8060_v24, %v8187_v60  ;;  %v9230_v59 = vld [vmem:[#allocation27_spill] sm:$0xff]  ;;  %v9232_v15 = vld [vmem:[#allocation32_spill] sm:$0xff] }
 0x3b5   :  { %9222 = vst [vmem:[#allocation43_spill] sm:$0xff] %v8336_v3  ;;  %v8342_v41 = vmul.f32 %v8041_v54, %v8175_v29  ;;  %v4587_v32 = vadd.f32 %v4573_v50, %v4552_v2  ;;  %v8346_v28 = vmul.f32 %v8060_v24, %v8203_v48  ;;  %v4608_v8 = vmul.f32 %v8060_v24, %v8249_v5  ;;  %v9234_v35 = vld [vmem:[#allocation23_spill] sm:$0xff]  ;;  %v8384_v37 = vld [vmem:[#allocation5 + $0x52] sm:$0xff] }
 0x3b6   :  { %9221 = vst [vmem:[#allocation42_spill] sm:$0xff] %v8332_v61  ;;  %v4618_v4 = vadd.f32 %v4604_v30, %v4583_v7  ;;  %v4639_v62 = vmul.f32 %v8073_v31, %v8215_v6  ;;  %v8354_v42 = vmul.f32 %v8073_v31, %v8228_v63  ;;  %v4643_v60 = vmul.f32 %v8073_v31, %v8280_v19  ;;  %v9238_v30 = vld [vmem:[#allocation34_spill] sm:$0xff] }
 0x3b7   :  { %9223 = vst [vmem:[#allocation44_spill] sm:$0xff] %v8342_v41  ;;  %9224 = vst [vmem:[#allocation45_spill] sm:$0xff] %v8346_v28  ;;  %v4622_v44 = vadd.f32 %v4608_v8, %v4587_v32  ;;  %v4674_v0 = vmul.f32 %v9226_v1, %v8241_v22  ;;  %v8364_v53 = vmul.f32 %v9226_v1, %v8243_v18  ;;  %v9231_v22 = vld [vmem:[#allocation29_spill] sm:$0xff]  ;;  %v9243_v41 = vld [vmem:[#allocation18_spill] sm:$0xff] }
 0x3b8   :  { %9225 = vst [vmem:[#allocation46_spill] sm:$0xff] %v8354_v42  ;;  %v4678_v6 = vmul.f32 %v9226_v1, %v8298_v52  ;;  %v4653_v12 = vadd.f32 %v4639_v62, %v4618_v4  ;;  %v4709_v20 = vmul.f32 %v9228_v36, %v8173_v9  ;;  %v4744_v57 = vmul.f32 %v9229_v49, %v8175_v29  ;;  %v8386_v9 = vld [vmem:[#allocation5 + $0x53] sm:$0xff] }
 0x3b9   :  { %9227 = vst [vmem:[#allocation20_spill] sm:$0xff] %v8364_v53  ;;  %v4779_v38 = vmul.f32 %v9230_v59, %v8203_v48  ;;  %v4814_v55 = vmul.f32 %v9231_v22, %v8228_v63  ;;  %v4849_v51 = vmul.f32 %v9232_v15, %v8243_v18  ;;  %v4884_v45 = vmul.f32 %v9233_v23, %v8197_v56  ;;  %v9235_v48 = vld [vmem:[#allocation28_spill] sm:$0xff]  ;;  %v9236_v63 = vld [vmem:[#allocation22_spill] sm:$0xff]  ;;  %v9237_v18 = vld [vmem:[#allocation33_spill] sm:$0xff] }
 0x3ba   :  { %v4145_v47 = vmul.f32 %v9234_v35, %v8358_v17  ;;  %v4657_v29 = vadd.f32 %v4643_v60, %v4622_v44  ;;  %v4688_v43 = vadd.f32 %v4674_v0, %v4653_v12  ;;  %v4919_v2 = vmul.f32 %v9235_v48, %v8183_v25  ;;  %v8410_v12 = vld [vmem:[#allocation5 + $0x54] sm:$0xff] }
 0x3bb   :  { %v4192_v50 = vmul.f32 %v9236_v63, %v8368_v58  ;;  %v8394_v7 = vmul.f32 %v9237_v18, %v8249_v5  ;;  %v8398_v32 = vmul.f32 %v9238_v30, %v8280_v19  ;;  %v8402_v8 = vmul.f32 %v8220_v14, %v8298_v52  ;;  %v9239_v5 = vld [vmem:[#allocation14_spill] sm:$0xff]  ;;  %v9240_v25 = vld [vmem:[#allocation16_spill] sm:$0xff]  ;;  %v9241_v56 = vld [vmem:[#allocation17_spill] sm:$0xff] }
 0x3bc   :  { %v4366_v4 = vmul.f32 %v7820_v11, %v8358_v17  ;;  %v4723_v62 = vadd.f32 %v4709_v20, %v4688_v43  ;;  %v4239_v44 = vmul.f32 %v7790_v27, %v8384_v37  ;;  %v4286_v0 = vmul.f32 %v7795_v33, %v8386_v9 }
 0x3bd   :  { %v4206_v60 = vadd.f32 %v4192_v50, %v4145_v47  ;;  %v4401_v53 = vmul.f32 %v7967_v26, %v8368_v58  ;;  %v4539_v52 = vmul.f32 %v8036_v40, %v8358_v17  ;;  %v4549_v20 = vadd.f32 %v9241_v56, %v9240_v25 }
 0x3be   :  { %v4380_v19 = vadd.f32 %v4366_v4, %v9239_v5  ;;  %v8419_v47 = vadd.f32 %v4678_v6, %v4657_v29  ;;  %v4758_v43 = vadd.f32 %v4744_v57, %v4723_v62  ;;  %v4436_v42 = vmul.f32 %v7978_v13, %v8384_v37  ;;  %v9244_v4 = vld [vmem:[#allocation19_spill] sm:$0xff] }
 0x3bf   :  { %v4253_v50 = vadd.f32 %v4239_v44, %v4206_v60  ;;  %v4553_v61 = vadd.f32 %v4539_v52, %v9243_v41  ;;  %v4574_v5 = vmul.f32 %v8041_v54, %v8368_v58  ;;  %v4584_v3 = vadd.f32 %v9244_v4, %v4549_v20  ;;  %v8443_v20 = vld [vmem:[#allocation5 + $0x60] sm:$0xff] }
 0x3c0   :  { %9242 = vst [vmem:[#allocation24_spill] sm:$0xff] %v8419_v47  ;;  %v4415_v28 = vadd.f32 %v4401_v53, %v4380_v19  ;;  %v4793_v16 = vadd.f32 %v4779_v38, %v4758_v43  ;;  %v4333_v25 = vmul.f32 %v7807_v10, %v8410_v12  ;;  %v4471_v56 = vmul.f32 %v7998_v39, %v8386_v9  ;;  %v9245_v53 = vld [vmem:[#allocation21_spill] sm:$0xff]  ;;  %v9248_v43 = vld [vmem:[#allocation10_spill] sm:$0xff] }
 0x3c1   :  { %v4300_v21 = vadd.f32 %v4286_v0, %v4253_v50  ;;  %v4588_v57 = vadd.f32 %v4574_v5, %v4553_v61  ;;  %v4609_v19 = vmul.f32 %v8060_v24, %v8384_v37  ;;  %v4619_v52 = vadd.f32 %v9245_v53, %v4584_v3  ;;  %v9246_v0 = vld [vmem:[#allocation30_spill] sm:$0xff]  ;;  %v9247_v61 = vld [vmem:[#allocation11_spill] sm:$0xff]  ;;  %v9249_v5 = vld [vmem:[#allocation13_spill] sm:$0xff] }
 0x3c2   :  { %v4450_v6 = vadd.f32 %v4436_v42, %v4415_v28  ;;  %v4828_v41 = vadd.f32 %v4814_v55, %v4793_v16  ;;  %v4506_v29 = vmul.f32 %v8010_v46, %v8410_v12  ;;  %v4644_v38 = vmul.f32 %v8073_v31, %v8386_v9  ;;  %v8445_v3 = vld [vmem:[#allocation5 + $0x61] sm:$0xff] }
 0x3c3   :  { %v4679_v62 = vmul.f32 %v9226_v1, %v8410_v12  ;;  %v4623_v44 = vadd.f32 %v4609_v19, %v4588_v57  ;;  %v4654_v28 = vadd.f32 %v9246_v0, %v4619_v52  ;;  %v4710_v42 = vmul.f32 %v9228_v36, %v9247_v61  ;;  %v9251_v57 = vld [vmem:[#allocation12_spill] sm:$0xff]  ;;  %v9252_v52 = vld [vmem:[#allocation15_spill] sm:$0xff] }
 0x3c4   :  { %v4485_v60 = vadd.f32 %v4471_v56, %v4450_v6  ;;  %v4863_v16 = vadd.f32 %v4849_v51, %v4828_v41  ;;  %v4347_v55 = vadd.f32 %v4333_v25, %v4300_v21  ;;  %v4745_v50 = vmul.f32 %v9229_v49, %v9248_v43  ;;  %v9250_v56 = vld [vmem:[#allocation31_spill] sm:$0xff] }
 0x3c5   :  { %v4780_v4 = vmul.f32 %v9230_v59, %v9249_v5  ;;  %v4658_v53 = vadd.f32 %v4644_v38, %v4623_v44  ;;  %v4689_v6 = vadd.f32 %v9250_v56, %v4654_v28  ;;  %v4815_v19 = vmul.f32 %v9231_v22, %v9251_v57  ;;  %v8456_v61 = vld [vmem:[#allocation5 + $0x62] sm:$0xff] }
 0x3c6   :  { %v4850_v0 = vmul.f32 %v9232_v15, %v9252_v52  ;;  %v4898_v47 = vadd.f32 %v4884_v45, %v4863_v16  ;;  %v4885_v21 = vmul.f32 %v9233_v23, %v8358_v17  ;;  %v4147_v51 = vmul.f32 %v9234_v35, %v8443_v20  ;;  %v8470_v16 = vld [vmem:[#allocation5 + $0x63] sm:$0xff] }
 0x3c7   :  { %v4194_v25 = vmul.f32 %v9236_v63, %v8445_v3  ;;  %v4520_v41 = vadd.f32 %v4506_v29, %v4485_v60  ;;  %v4724_v38 = vadd.f32 %v4710_v42, %v4689_v6  ;;  %v4920_v44 = vmul.f32 %v9235_v48, %v8368_v58  ;;  %v8472_v56 = vld [vmem:[#allocation5 + $0x64] sm:$0xff] }
 0x3c8   :  { %v4955_v28 = vmul.f32 %v9237_v18, %v8384_v37  ;;  %v4933_v43 = vadd.f32 %v4919_v2, %v4898_v47  ;;  %v4241_v45 = vmul.f32 %v7790_v27, %v8456_v61  ;;  %v4368_v35 = vmul.f32 %v7820_v11, %v8443_v20 }
 0x3c9   :  { %v4208_v5 = vadd.f32 %v4194_v25, %v4147_v51  ;;  %v8476_v63 = vadd.f32 %v4679_v62, %v4658_v53  ;;  %v4759_v29 = vadd.f32 %v4745_v50, %v4724_v38  ;;  %v4990_v60 = vmul.f32 %v9238_v30, %v8386_v9 }
 0x3ca   :  { %v8482_v2 = vmul.f32 %v8220_v14, %v8410_v12  ;;  %v4968_v47 = vadd.f32 %v8394_v7, %v4933_v43  ;;  %v4382_v42 = vadd.f32 %v4368_v35, %v4347_v55  ;;  %v4403_v6 = vmul.f32 %v7967_v26, %v8445_v3 }
 0x3cb   :  { %v4255_v27 = vadd.f32 %v4241_v45, %v4208_v5  ;;  %v4794_v57 = vadd.f32 %v4780_v4, %v4759_v29  ;;  %v4288_v62 = vmul.f32 %v7795_v33, %v8470_v16  ;;  %v4335_v50 = vmul.f32 %v7807_v10, %v8472_v56 }
 0x3cc   :  { %v4541_v53 = vmul.f32 %v8036_v40, %v8443_v20  ;;  %v5003_v52 = vadd.f32 %v8398_v32, %v4968_v47  ;;  %v4417_v51 = vadd.f32 %v4403_v6, %v4382_v42  ;;  %v4438_v7 = vmul.f32 %v7978_v13, %v8456_v61 }
 0x3cd   :  { %v4473_v55 = vmul.f32 %v7998_v39, %v8470_v16  ;;  %v4829_v25 = vadd.f32 %v4815_v19, %v4794_v57  ;;  %v4576_v33 = vmul.f32 %v8041_v54, %v8445_v3  ;;  %v4712_v10 = vmul.f32 %v9228_v36, %v8358_v17  ;;  %v8517_v57 = vld [vmem:[#allocation5 + $0x59] sm:$0xff] }
 0x3ce   :  { %v4555_v4 = vadd.f32 %v4541_v53, %v4520_v41  ;;  %v5038_v38 = vadd.f32 %v8402_v8, %v5003_v52  ;;  %v4302_v43 = vadd.f32 %v4288_v62, %v4255_v27  ;;  %v4452_v5 = vadd.f32 %v4438_v7, %v4417_v51  ;;  %9254 = vst [vmem:[#allocation27_spill] sm:$0xff] %v8517_v57 }
 0x3cf   :  { %v4611_v32 = vmul.f32 %v8060_v24, %v8456_v61  ;;  %v4864_v45 = vadd.f32 %v4850_v0, %v4829_v25  ;;  %v4726_v29 = vadd.f32 %v4712_v10, %v8307_v34  ;;  %v4747_v19 = vmul.f32 %v9229_v49, %v8368_v58  ;;  %v8515_v34 = vld [vmem:[#allocation5 + $0x58] sm:$0xff] }
 0x3d0   :  { %v4590_v35 = vadd.f32 %v4576_v33, %v4555_v4  ;;  %v5054_v41 = vsel %vm4091_vm1, %v5038_v38, 0.0  ;;  %v4487_v47 = vadd.f32 %v4473_v55, %v4452_v5  ;;  %v4508_v17 = vmul.f32 %v8010_v46, %v8472_v56  ;;  %9253 = vst [vmem:[#allocation26_spill] sm:$0xff] %v8515_v34  ;;  %v8531_v55 = vld [vmem:[#allocation5 + $0x5a] sm:$0xff] }
 0x3d1   :  { %v4646_v8 = vmul.f32 %v8073_v31, %v8470_v16  ;;  %5055 = vadd.xlane.f32.xlu1 %v5054_v41  ;;  %v4899_v27 = vadd.f32 %v4885_v21, %v4864_v45  ;;  %v4761_v6 = vadd.f32 %v4747_v19, %v4726_v29  ;;  %v4782_v0 = vmul.f32 %v9230_v59, %v8384_v37  ;;  %v8551_v33 = vld [vmem:[#allocation5 + $0x5b] sm:$0xff] }
 0x3d2   :  { %v4625_v42 = vadd.f32 %v4611_v32, %v4590_v35  ;;  %v8519_v58 = vadd.f32 %v4335_v50, %v4302_v43  ;;  %v4681_v62 = vmul.f32 %v9226_v1, %v8472_v56  ;;  %v4817_v53 = vmul.f32 %v9231_v22, %v8386_v9  ;;  %9255 = vst [vmem:[#allocation29_spill] sm:$0xff] %v8531_v55  ;;  %v8540_v9 = vld [vmem:[%s9095_s7] ss:$0 sm:$0xff]  ;;  %v8560_v35 = vld [vmem:[%s9095_s7 + $0x2] ss:$0 sm:$0xff] }
 0x3d3   :  { %v4852_v21 = vmul.f32 %v9232_v15, %v8410_v12  ;;  %v4934_v52 = vadd.f32 %v4920_v44, %v4899_v27  ;;  %v8527_v51 = vadd.f32 %v4508_v17, %v4487_v47  ;;  %v4796_v7 = vadd.f32 %v4782_v0, %v4761_v6  ;;  %v8547_v44 = vld [vmem:[%s9095_s7 + $0x1] ss:$0 sm:$0xff]  ;;  %9256 = vst [vmem:[#allocation32_spill] sm:$0xff] %v8551_v33  ;;  %v8569_v47 = vld [vmem:[%s9095_s7 + $0x3] ss:$0 sm:$0xff] }
 0x3d4   :  { %v4887_v37 = vmul.f32 %v9233_v23, %v8443_v20  ;;  %v4922_v50 = vmul.f32 %v9235_v48, %v8445_v3  ;;  %v4957_v25 = vmul.f32 %v9237_v18, %v8456_v61  ;;  %v4146_v12 = vmul.f32 %v8540_v9, %v8515_v34 }
 0x3d5   :  { %v4193_v4 = vmul.f32 %v8547_v44, %v8517_v57  ;;  %v4969_v10 = vadd.f32 %v4955_v28, %v4934_v52  ;;  %v4660_v38 = vadd.f32 %v4646_v8, %v4625_v42  ;;  %v4831_v43 = vadd.f32 %v4817_v53, %v4796_v7  ;;  %v9257_v42 = vld [vmem:[#allocation40_spill] sm:$0xff] }
 0x3d6   :  { %v4992_v5 = vmul.f32 %v9238_v30, %v8470_v16  ;;  %v5027_v32 = vmul.f32 %v8220_v14, %v8472_v56  ;;  %v4240_v29 = vmul.f32 %v8560_v35, %v8531_v55  ;;  %v4367_v28 = vmul.f32 %v7820_v11, %v8515_v34  ;;  %v9258_v11 = vld [vmem:[#allocation41_spill] sm:$0xff] }
 0x3d7   :  { %v4207_v45 = vadd.f32 %v4193_v4, %v4146_v12  ;;  %v5004_v19 = vadd.f32 %v4990_v60, %v4969_v10  ;;  %v4866_v41 = vadd.f32 %v4852_v21, %v4831_v43  ;;  %v4287_v17 = vmul.f32 %v8569_v47, %v8551_v33  ;;  %v9259_v60 = vld [vmem:[#allocation43_spill] sm:$0xff]  ;;  %v8585_v4 = vld [vmem:[#allocation5 + $0x5c] sm:$0xff] }
 0x3d8   :  { %v4402_v8 = vmul.f32 %v7967_v26, %v8517_v57  ;;  %v4381_v6 = vadd.f32 %v4367_v28, %v9257_v42  ;;  %v4540_v0 = vmul.f32 %v8036_v40, %v8515_v34  ;;  %v4550_v53 = vadd.f32 %v9259_v60, %v9258_v11  ;;  %9261 = vst [vmem:[#allocation23_spill] sm:$0xff] %v8585_v4  ;;  %v9262_v43 = vld [vmem:[#allocation42_spill] sm:$0xff]  ;;  %v9263_v28 = vld [vmem:[#allocation44_spill] sm:$0xff] }
 0x3d9   :  { %v4254_v27 = vadd.f32 %v4240_v29, %v4207_v45  ;;  %v5039_v21 = vadd.f32 %v8482_v2, %v5004_v19  ;;  %v8581_v52 = vadd.f32 %v4681_v62, %v4660_v38  ;;  %v4901_v7 = vadd.f32 %v4887_v37, %v4866_v41  ;;  %v9264_v41 = vld [vmem:[#allocation45_spill] sm:$0xff] }
 0x3da   :  { %v4437_v12 = vmul.f32 %v7978_v13, %v8531_v55  ;;  %v4416_v10 = vadd.f32 %v4402_v8, %v4381_v6  ;;  %v4554_v45 = vadd.f32 %v4540_v0, %v9262_v43  ;;  %v4575_v29 = vmul.f32 %v8041_v54, %v8517_v57  ;;  %v8600_v0 = vld [vmem:[%s9095_s7 + $0x4] ss:$0 sm:$0xff] }
 0x3db   :  { %9260 = vst [vmem:[#allocation25_spill] sm:$0xff] %v8581_v52  ;;  %v4585_v42 = vadd.f32 %v9263_v28, %v4550_v53  ;;  %v5057_v11 = vsel %vm4091_vm1, %v5039_v21, 0.0  ;;  %v4936_v60 = vadd.f32 %v4922_v50, %v4901_v7  ;;  %v4301_v2 = vadd.f32 %v4287_v17, %v4254_v27  ;;  %v9265_v7 = vld [vmem:[#allocation46_spill] sm:$0xff] }
 0x3dc   :  { %v4472_v62 = vmul.f32 %v7998_v39, %v8551_v33  ;;  %5058 = vadd.xlane.f32.xlu0 %v5057_v11  ;;  %v4451_v37 = vadd.f32 %v4437_v12, %v4416_v10  ;;  %v4589_v38 = vadd.f32 %v4575_v29, %v4554_v45  ;;  %v4610_v19 = vmul.f32 %v8060_v24, %v8531_v55  ;;  %v8611_v10 = vld [vmem:[#allocation5 + $0x70] sm:$0xff] }
 0x3dd   :  { %v4620_v8 = vadd.f32 %v9264_v41, %v4585_v42  ;;  %v4971_v6 = vadd.f32 %v4957_v25, %v4936_v60  ;;  %v4334_v50 = vmul.f32 %v8600_v0, %v8585_v4  ;;  %v4507_v17 = vmul.f32 %v8010_v46, %v8585_v4  ;;  %v9266_v29 = vld [vmem:[#allocation36_spill] sm:$0xff]  ;;  %v9267_v42 = vld [vmem:[#allocation35_spill] sm:$0xff] }
 0x3de   :  { %v4645_v27 = vmul.f32 %v8073_v31, %v8551_v33  ;;  %v4486_v53 = vadd.f32 %v4472_v62, %v4451_v37  ;;  %v4624_v21 = vadd.f32 %v4610_v19, %v4589_v38  ;;  %v4680_v25 = vmul.f32 %v9226_v1, %v8585_v4  ;;  %v9268_v41 = vld [vmem:[#allocation20_spill] sm:$0xff]  ;;  %v9269_v37 = vld [vmem:[#allocation37_spill] sm:$0xff]  ;;  %v9270_v19 = vld [vmem:[#allocation38_spill] sm:$0xff] }
 0x3df   :  { %v4655_v12 = vadd.f32 %v9265_v7, %v4620_v8  ;;  %v5006_v43 = vadd.f32 %v4992_v5, %v4971_v6  ;;  %v8613_v45 = vadd.f32 %v4334_v50, %v4301_v2  ;;  %v4711_v28 = vmul.f32 %v9228_v36, %v9266_v29  ;;  %v4386_v7 = vld [vmem:[#allocation5 + $0x71] sm:$0xff]  ;;  %v9271_v5 = vld [vmem:[#allocation39_spill] sm:$0xff]  ;;  %v8631_v50 = vld [vmem:[%s9095_s7 + $0x5] ss:$0 sm:$0xff] }
 0x3e0   :  { %v4746_v11 = vmul.f32 %v9229_v49, %v9267_v42  ;;  %v4659_v60 = vadd.f32 %v4645_v27, %v4624_v21  ;;  %v4781_v38 = vmul.f32 %v9230_v59, %v9269_v37  ;;  %v4816_v8 = vmul.f32 %v9231_v22, %v9270_v19  ;;  %v4421_v29 = vld [vmem:[#allocation5 + $0x72] sm:$0xff] }
 0x3e1   :  { %v4690_v62 = vadd.f32 %v9268_v41, %v4655_v12  ;;  %v5041_v52 = vadd.f32 %v5027_v32, %v5006_v43  ;;  %v4851_v2 = vmul.f32 %v9232_v15, %v9271_v5  ;;  %v4886_v6 = vmul.f32 %v9233_v23, %v8515_v34  ;;  %v4456_v42 = vld [vmem:[#allocation5 + $0x73] sm:$0xff] }
 0x3e2   :  { %v4370_v27 = vmul.f32 %v8631_v50, %v8611_v10  ;;  %v8635_v21 = vadd.f32 %v4507_v17, %v4486_v53  ;;  %v4921_v32 = vmul.f32 %v9235_v48, %v8517_v57  ;;  %v4956_v43 = vmul.f32 %v9237_v18, %v8531_v55  ;;  %v4491_v53 = vld [vmem:[#allocation5 + $0x74] sm:$0xff] }
 0x3e3   :  { %v4725_v12 = vadd.f32 %v4711_v28, %v4690_v62  ;;  %v5063_v41 = vsel %vm4091_vm1, %v5041_v52, 0.0  ;;  %v8644_v37 = vmul.f32 %v9238_v30, %v8551_v33  ;;  %v4405_v17 = vmul.f32 %v7967_v26, %v4386_v7 }
 0x3e4   :  { %v4384_v19 = vadd.f32 %v4370_v27, %v8519_v58  ;;  %5064 = vadd.xlane.f32.xlu1 %v5063_v41  ;;  %v8648_v28 = vadd.f32 %v4680_v25, %v4659_v60  ;;  %v8652_v5 = vmul.f32 %v8220_v14, %v8585_v4  ;;  %v4543_v52 = vmul.f32 %v8036_v40, %v8611_v10 }
 0x3e5   :  { %v4760_v62 = vadd.f32 %v4746_v11, %v4725_v12  ;;  %v4440_v33 = vmul.f32 %v7978_v13, %v4421_v29  ;;  %v4475_v57 = vmul.f32 %v7998_v39, %v4456_v42  ;;  %v4714_v58 = vmul.f32 %v9228_v36, %v8443_v20 }
 0x3e6   :  { %9272 = vst [vmem:[#allocation28_spill] sm:$0xff] %v8648_v28  ;;  %v4419_v55 = vadd.f32 %v4405_v17, %v4384_v19  ;;  %v4510_v25 = vmul.f32 %v8010_v46, %v4491_v53  ;;  %v4557_v11 = vadd.f32 %v4543_v52, %v8527_v51  ;;  %v4578_v60 = vmul.f32 %v8041_v54, %v4386_v7 }
 0x3e7   :  { %v4795_v27 = vadd.f32 %v4781_v38, %v4760_v62  ;;  %v4613_v41 = vmul.f32 %v8060_v24, %v4421_v29  ;;  %v4728_v28 = vadd.f32 %v4714_v58, %v8476_v63  ;;  %v4749_v19 = vmul.f32 %v9229_v49, %v8445_v3  ;;  %v8683_v58 = vld [vmem:[#allocation5 + $0x69] sm:$0xff] }
 0x3e8   :  { %v4454_v12 = vadd.f32 %v4440_v33, %v4419_v55  ;;  %v4592_v4 = vadd.f32 %v4578_v60, %v4557_v11  ;;  %v4648_v34 = vmul.f32 %v8073_v31, %v4456_v42  ;;  %v4683_v20 = vmul.f32 %v9226_v1, %v4491_v53 }
 0x3e9   :  { %v4830_v17 = vadd.f32 %v4816_v8, %v4795_v27  ;;  %v8671_v51 = vmul.f32 %v9228_v36, %v8611_v10  ;;  %v4763_v62 = vadd.f32 %v4749_v19, %v4728_v28  ;;  %v4784_v55 = vmul.f32 %v9230_v59, %v8456_v61  ;;  %v8681_v8 = vld [vmem:[#allocation5 + $0x68] sm:$0xff] }
 0x3ea   :  { %v4489_v38 = vadd.f32 %v4475_v57, %v4454_v12  ;;  %v4627_v63 = vadd.f32 %v4613_v41, %v4592_v4  ;;  %v8676_v52 = vmul.f32 %v9229_v49, %v4386_v7  ;;  %v8679_v3 = vmul.f32 %v9230_v59, %v4421_v29  ;;  %v8697_v12 = vld [vmem:[#allocation5 + $0x6a] sm:$0xff] }
 0x3eb   :  { %v4865_v33 = vadd.f32 %v4851_v2, %v4830_v17  ;;  %v4798_v57 = vadd.f32 %v4784_v55, %v4763_v62  ;;  %v4819_v27 = vmul.f32 %v9231_v22, %v8470_v16  ;;  %v8688_v28 = vmul.f32 %v9231_v22, %v4456_v42 }
 0x3ec   :  { %v4854_v61 = vmul.f32 %v9232_v15, %v8472_v56  ;;  %v4662_v2 = vadd.f32 %v4648_v34, %v4627_v63  ;;  %v8693_v11 = vmul.f32 %v9232_v15, %v4491_v53  ;;  %v4889_v60 = vmul.f32 %v9233_v23, %v8611_v10 }
 0x3ed   :  { %v4900_v4 = vadd.f32 %v4886_v6, %v4865_v33  ;;  %v8699_v41 = vadd.f32 %v4510_v25, %v4489_v38  ;;  %v4833_v19 = vadd.f32 %v4819_v27, %v4798_v57  ;;  %v4148_v16 = vmul.f32 %v8540_v9, %v8681_v8  ;;  %v8710_v38 = vld [vmem:[#allocation5 + $0x6b] sm:$0xff] }
 0x3ee   :  { %v4195_v17 = vmul.f32 %v8547_v44, %v8683_v58  ;;  %v4924_v34 = vmul.f32 %v9235_v48, %v4386_v7  ;;  %v4959_v6 = vmul.f32 %v9237_v18, %v4421_v29  ;;  %v4994_v62 = vmul.f32 %v9238_v30, %v4456_v42  ;;  %v8712_v33 = vld [vmem:[#allocation5 + $0x6c] sm:$0xff] }
 0x3ef   :  { %v4935_v56 = vadd.f32 %v4921_v32, %v4900_v4  ;;  %v4868_v55 = vadd.f32 %v4854_v61, %v4833_v19  ;;  %v4242_v25 = vmul.f32 %v8560_v35, %v8697_v12  ;;  %v4369_v9 = vmul.f32 %v8631_v50, %v8681_v8 }
 0x3f0   :  { %v4209_v10 = vadd.f32 %v4195_v17, %v4148_v16  ;;  %v8716_v32 = vadd.f32 %v4683_v20, %v4662_v2  ;;  %v5029_v7 = vmul.f32 %v8220_v14, %v4491_v53  ;;  %v4404_v29 = vmul.f32 %v7967_v26, %v8683_v58 }
 0x3f1   :  { %v4970_v44 = vadd.f32 %v4956_v43, %v4935_v56  ;;  %v4903_v42 = vadd.f32 %v4889_v60, %v4868_v55  ;;  %v4383_v57 = vadd.f32 %v4369_v9, %v8613_v45  ;;  %v4542_v35 = vmul.f32 %v8036_v40, %v8681_v8  ;;  %v9275_v55 = vld [vmem:[#allocation27_spill] sm:$0xff] }
 0x3f2   :  { %v4256_v63 = vadd.f32 %v4242_v25, %v4209_v10  ;;  %v4289_v61 = vmul.f32 %v8569_v47, %v8710_v38  ;;  %v4336_v43 = vmul.f32 %v8600_v0, %v8712_v33  ;;  %v4439_v53 = vmul.f32 %v7978_v13, %v8697_v12  ;;  %v9273_v47 = vld [vmem:[#allocation26_spill] sm:$0xff] }
 0x3f3   :  { %v5005_v27 = vadd.f32 %v8644_v37, %v4970_v44  ;;  %v4938_v20 = vadd.f32 %v4924_v34, %v4903_v42  ;;  %v4418_v26 = vadd.f32 %v4404_v29, %v4383_v57  ;;  %v4556_v4 = vadd.f32 %v4542_v35, %v8635_v21  ;;  %v9274_v34 = vld [vmem:[#allocation24_spill] sm:$0xff]  ;;  %v4526_v44 = vld [vmem:[#allocation5 + $0x80] sm:$0xff] }
 0x3f4   :  { %v4577_v45 = vmul.f32 %v8041_v54, %v8683_v58  ;;  %v4303_v60 = vadd.f32 %v4289_v61, %v4256_v63  ;;  %v4474_v37 = vmul.f32 %v7998_v39, %v8710_v38  ;;  %v4713_v19 = vmul.f32 %v9228_v36, %v9273_v47  ;;  %v9276_v57 = vld [vmem:[#allocation29_spill] sm:$0xff]  ;;  %v9277_v61 = vld [vmem:[#allocation32_spill] sm:$0xff] }
 0x3f5   :  { %v5040_v2 = vadd.f32 %v8652_v5, %v5005_v27  ;;  %v4973_v0 = vadd.f32 %v4959_v6, %v4938_v20  ;;  %v4453_v16 = vadd.f32 %v4439_v53, %v4418_v26  ;;  %v4612_v13 = vmul.f32 %v8060_v24, %v8697_v12  ;;  %v4561_v26 = vld [vmem:[#allocation5 + $0x81] sm:$0xff] }
 0x3f6   :  { %v4591_v17 = vadd.f32 %v4577_v45, %v4556_v4  ;;  %v4509_v56 = vmul.f32 %v8010_v46, %v8712_v33  ;;  %v4727_v5 = vadd.f32 %v4713_v19, %v9274_v34  ;;  %v4748_v10 = vmul.f32 %v9229_v49, %v9275_v55  ;;  %v8769_v34 = vld [vmem:[#allocation5 + $0x90] sm:$0xff] }
 0x3f7   :  { %v5060_v21 = vsel %vm4091_vm1, %v5040_v2, 0.0  ;;  %v5008_v39 = vadd.f32 %v4994_v62, %v4973_v0  ;;  %v4488_v25 = vadd.f32 %v4474_v37, %v4453_v16  ;;  %v4647_v6 = vmul.f32 %v8073_v31, %v8710_v38  ;;  %v9278_v62 = vld [vmem:[#allocation23_spill] sm:$0xff] }
 0x3f8   :  { %5061 = vadd.xlane.f32.xlu0 %v5060_v21  ;;  %v4626_v9 = vadd.f32 %v4612_v13, %v4591_v17  ;;  %v4350_v29 = vadd.f32 %v4336_v43, %v4303_v60  ;;  %v4682_v42 = vmul.f32 %v9226_v1, %v8712_v33  ;;  %v4762_v63 = vadd.f32 %v4748_v10, %v4727_v5  ;;  %v4596_v60 = vld [vmem:[#allocation5 + $0x82] sm:$0xff]  ;;  %v9279_v10 = vld [vmem:[#allocation25_spill] sm:$0xff] }
 0x3f9   :  { %v4783_v46 = vmul.f32 %v9230_v59, %v9276_v57  ;;  %v5043_v35 = vadd.f32 %v5029_v7, %v5008_v39  ;;  %v4818_v53 = vmul.f32 %v9231_v22, %v9277_v61  ;;  %v4853_v20 = vmul.f32 %v9232_v15, %v9278_v62  ;;  %v4631_v13 = vld [vmem:[#allocation5 + $0x83] sm:$0xff]  ;;  %v8789_v61 = vld [vmem:[#allocation5 + $0x79] sm:$0xff] }
 0x3fa   :  { %v4661_v27 = vadd.f32 %v4647_v6, %v4626_v9  ;;  %v4888_v43 = vmul.f32 %v9233_v23, %v8681_v8  ;;  %v4923_v45 = vmul.f32 %v9235_v48, %v8683_v58  ;;  %v4545_v2 = vmul.f32 %v8036_v40, %v4526_v44  ;;  %v4666_v21 = vld [vmem:[#allocation5 + $0x84] sm:$0xff]  ;;  %v8781_v6 = vld [vmem:[#allocation5 + $0x78] sm:$0xff] }
 0x3fb   :  { %v4797_v4 = vadd.f32 %v4783_v46, %v4762_v63  ;;  %v5069_v7 = vsel %vm4091_vm1, %v5043_v35, 0.0  ;;  %v4523_v37 = vadd.f32 %v4509_v56, %v4488_v25  ;;  %v4958_v47 = vmul.f32 %v9237_v18, %v8697_v12 }
 0x3fc   :  { %v4993_v19 = vmul.f32 %v9238_v30, %v8710_v38  ;;  %5070 = vadd.xlane.f32.xlu1 %v5069_v7  ;;  %v4559_v16 = vadd.f32 %v4545_v2, %v8699_v41  ;;  %v4580_v17 = vmul.f32 %v8041_v54, %v4561_v26  ;;  %v4718_v40 = vmul.f32 %v9228_v36, %v4526_v44  ;;  %v8819_v7 = vld [vmem:[%s9095_s7 + $0xa] ss:$0 sm:$0xff] }
 0x3fd   :  { %v4832_v0 = vadd.f32 %v4818_v53, %v4797_v4  ;;  %v8772_v5 = vadd.f32 %v4682_v42, %v4661_v27  ;;  %v5028_v56 = vmul.f32 %v8220_v14, %v8712_v33  ;;  %v4615_v55 = vmul.f32 %v8060_v24, %v4596_v60 }
 0x3fe   :  { %v4730_v39 = vadd.f32 %v8671_v51, %v9279_v10  ;;  %v4594_v41 = vadd.f32 %v4580_v17, %v4559_v16  ;;  %v4732_v54 = vadd.f32 %v4718_v40, %v8716_v32  ;;  %v4753_v9 = vmul.f32 %v9229_v49, %v4561_v26  ;;  %v8831_v40 = vld [vmem:[%s9095_s7 + $0xb] ss:$0 sm:$0xff] }
 0x3ff   :  { %v4867_v25 = vadd.f32 %v4853_v20, %v4832_v0  ;;  %v4650_v63 = vmul.f32 %v8073_v31, %v4631_v13  ;;  %v4685_v42 = vmul.f32 %v9226_v1, %v4666_v21  ;;  %v4720_v57 = vmul.f32 %v9228_v36, %v8769_v34  ;;  %v8797_v20 = vld [vmem:[#allocation5 + $0x7a] sm:$0xff] }
 0x400   :  { %v4765_v24 = vadd.f32 %v8676_v52, %v4730_v39  ;;  %v4629_v35 = vadd.f32 %v4615_v55, %v4594_v41  ;;  %v4767_v51 = vadd.f32 %v4753_v9, %v4732_v54  ;;  %v4788_v27 = vmul.f32 %v9230_v59, %v4596_v60 }
 0x401   :  { %v4902_v46 = vadd.f32 %v4888_v43, %v4867_v25  ;;  %v4823_v32 = vmul.f32 %v9231_v22, %v4631_v13  ;;  %v4858_v31 = vmul.f32 %v9232_v15, %v4666_v21  ;;  %v4371_v1 = vmul.f32 %v8631_v50, %v8781_v6  ;;  %v6281_v22 = vld [vmem:[%s9095_s7 + $0x6] ss:$0 sm:$0xff] }
 0x402   :  { %v4800_v49 = vadd.f32 %v8679_v3, %v4765_v24  ;;  %v4664_v36 = vadd.f32 %v4650_v63, %v4629_v35  ;;  %v4802_v62 = vadd.f32 %v4788_v27, %v4767_v51  ;;  %v4891_v52 = vmul.f32 %v9233_v23, %v4526_v44  ;;  %v8805_v3 = vld [vmem:[#allocation5 + $0x7b] sm:$0xff]  ;;  %v8865_v27 = vld [vmem:[%s9095_s7 + $0xd] ss:$0 sm:$0xff] }
 0x403   :  { %v4937_v53 = vadd.f32 %v4923_v45, %v4902_v46  ;;  %v4926_v4 = vmul.f32 %v9235_v48, %v4561_v26  ;;  %v4385_v43 = vadd.f32 %v4371_v1, %v4350_v29  ;;  %v4406_v15 = vmul.f32 %v6281_v22, %v8789_v61  ;;  %v6282_v48 = vld [vmem:[%s9095_s7 + $0x7] ss:$0 sm:$0xff]  ;;  %v8896_v22 = vld [vmem:[%s9095_s7 + $0x12] ss:$0 sm:$0xff] }
 0x404   :  { %v4835_v59 = vadd.f32 %v8688_v28, %v4800_v49  ;;  %v4699_v45 = vadd.f32 %v4685_v42, %v4664_v36  ;;  %v4961_v2 = vmul.f32 %v9237_v18, %v4596_v60  ;;  %v4996_v23 = vmul.f32 %v9238_v30, %v4631_v13  ;;  %v8814_v26 = vld [vmem:[#allocation5 + $0x7c] sm:$0xff]  ;;  %v8885_v36 = vld [vmem:[%s9095_s7 + $0x11] ss:$0 sm:$0xff] }
 0x405   :  { %v4972_v50 = vadd.f32 %v4958_v47, %v4937_v53  ;;  %v4420_v28 = vadd.f32 %v4406_v15, %v4385_v43  ;;  %v4441_v29 = vmul.f32 %v6282_v48, %v8797_v20  ;;  %v4544_v18 = vmul.f32 %v8819_v7, %v8781_v6  ;;  %v6284_v47 = vld [vmem:[%s9095_s7 + $0x8] ss:$0 sm:$0xff] }
 0x406   :  { %v4870_v44 = vadd.f32 %v8693_v11, %v4835_v59  ;;  %v4837_v60 = vadd.f32 %v4823_v32, %v4802_v62  ;;  %v5031_v11 = vmul.f32 %v8220_v14, %v4666_v21  ;;  %v4476_v0 = vmul.f32 %v6284_v47, %v8805_v3  ;;  %v6286_v14 = vld [vmem:[%s9095_s7 + $0x9] ss:$0 sm:$0xff]  ;;  %v8872_v32 = vld [vmem:[%s9095_s7 + $0xe] ss:$0 sm:$0xff]  ;;  %v8933_v47 = vld [vmem:[%s9095_s7 + $0x16] ss:$0 sm:$0xff] }
 0x407   :  { %v5007_v30 = vadd.f32 %v4993_v19, %v4972_v50  ;;  %v4455_v17 = vadd.f32 %v4441_v29, %v4420_v28  ;;  %v4558_v13 = vadd.f32 %v4544_v18, %v4523_v37  ;;  %v4579_v19 = vmul.f32 %v8831_v40, %v8789_v61  ;;  %v8842_v37 = vld [vmem:[%s9095_s7 + $0xf] ss:$0 sm:$0xff] }
 0x408   :  { %v4905_v16 = vadd.f32 %v4891_v52, %v4870_v44  ;;  %v4734_v10 = vadd.f32 %v4720_v57, %v4699_v45  ;;  %v4511_v21 = vmul.f32 %v6286_v14, %v8814_v26  ;;  %v4715_v39 = vmul.f32 %v8842_v37, %v8681_v8  ;;  %v9280_v57 = vld [vmem:[#allocation28_spill] sm:$0xff]  ;;  %v8858_v8 = vld [vmem:[%s9095_s7 + $0x10] ss:$0 sm:$0xff] }
 0x409   :  { %v5042_v55 = vadd.f32 %v5028_v56, %v5007_v30  ;;  %v4490_v41 = vadd.f32 %v4476_v0, %v4455_v17  ;;  %v4593_v54 = vadd.f32 %v4579_v19, %v4558_v13  ;;  %v8849_v56 = vld [vmem:[%s9095_s7 + $0xc] ss:$0 sm:$0xff]  ;;  %v4872_v42 = vadd.f32 %v4858_v31, %v4837_v60  ;;  %v4736_v52 = vld [vmem:[#allocation5 + $0x91] sm:$0xff]  ;;  %v8940_v0 = vld [vmem:[%s9095_s7 + $0x17] ss:$0 sm:$0xff] }
 0x40a   :  { %v4940_v25 = vadd.f32 %v4926_v4, %v4905_v16  ;;  %v4614_v9 = vmul.f32 %v8849_v56, %v8797_v20  ;;  %v4729_v24 = vadd.f32 %v4715_v39, %v9280_v57  ;;  %v4750_v46 = vmul.f32 %v8858_v8, %v8683_v58  ;;  %v4771_v44 = vld [vmem:[#allocation5 + $0x92] sm:$0xff]  ;;  %v8944_v17 = vld [vmem:[#allocation5 + $0x88] sm:$0xff]  ;;  %v8953_v39 = vld [vmem:[%s9095_s7 + $0x18] ss:$0 sm:$0xff] }
 0x40b   :  { %v5066_v63 = vsel %vm4091_vm1, %v5042_v55, 0.0  ;;  %v4649_v49 = vmul.f32 %v8865_v27, %v8805_v3  ;;  %v4684_v31 = vmul.f32 %v8872_v32, %v8814_v26  ;;  %v4717_v58 = vmul.f32 %v8842_v37, %v8781_v6  ;;  %v4806_v30 = vld [vmem:[#allocation5 + $0x93] sm:$0xff] }
 0x40c   :  { %5067 = vadd.xlane.f32.xlu0 %v5066_v63  ;;  %v4975_v35 = vadd.f32 %v4961_v2, %v4940_v25  ;;  %v4628_v51 = vadd.f32 %v4614_v9, %v4593_v54  ;;  %v8880_v1 = vmul.f32 %v8858_v8, %v8789_v61  ;;  %v4764_v53 = vadd.f32 %v4750_v46, %v4729_v24  ;;  %v8907_v2 = vld [vmem:[%s9095_s7 + $0x13] ss:$0 sm:$0xff]  ;;  %v4841_v55 = vld [vmem:[#allocation5 + $0x94] sm:$0xff] }
 0x40d   :  { %v4785_v62 = vmul.f32 %v8885_v36, %v8697_v12  ;;  %v4525_v4 = vadd.f32 %v4511_v21, %v4490_v41  ;;  %v8891_v43 = vmul.f32 %v8885_v36, %v8797_v20  ;;  %v4820_v15 = vmul.f32 %v8896_v22, %v8710_v38  ;;  %v8918_v38 = vld [vmem:[%s9095_s7 + $0x14] ss:$0 sm:$0xff] }
 0x40e   :  { %v5010_v59 = vadd.f32 %v4996_v23, %v4975_v35  ;;  %v4663_v50 = vadd.f32 %v4649_v49, %v4628_v51  ;;  %v8902_v12 = vmul.f32 %v8896_v22, %v8805_v3  ;;  %v4855_v23 = vmul.f32 %v8907_v2, %v8712_v33  ;;  %v8926_v33 = vld [vmem:[%s9095_s7 + $0x15] ss:$0 sm:$0xff] }
 0x40f   :  { %v4799_v45 = vadd.f32 %v4785_v62, %v4764_v53  ;;  %v8913_v48 = vmul.f32 %v8907_v2, %v8814_v26  ;;  %v4890_v29 = vmul.f32 %v8918_v38, %v8781_v6  ;;  %v4755_v18 = vmul.f32 %v8858_v8, %v4736_v52  ;;  %v8963_v63 = vld [vmem:[#allocation5 + $0x8a] sm:$0xff] }
 0x410   :  { %v5045_v28 = vadd.f32 %v5031_v11, %v5010_v59  ;;  %v4925_v11 = vmul.f32 %v8926_v33, %v8789_v61  ;;  %v4960_v6 = vmul.f32 %v8933_v47, %v8797_v20  ;;  %v4995_v16 = vmul.f32 %v8940_v0, %v8805_v3 }
 0x411   :  { %v4834_v60 = vadd.f32 %v4820_v15, %v4799_v45  ;;  %v4769_v13 = vadd.f32 %v4755_v18, %v4734_v10  ;;  %v4790_v19 = vmul.f32 %v8885_v36, %v4771_v44  ;;  %v4893_v14 = vmul.f32 %v8918_v38, %v8769_v34  ;;  %v8958_v10 = vld [vmem:[#allocation5 + $0x89] sm:$0xff]  ;;  %v4702_v18 = vld [vmem:[#allocation5 + $0x98] sm:$0xff] }
 0x412   :  { %v5075_v61 = vsel %vm4091_vm1, %v5045_v28, 0.0  ;;  %v4698_v20 = vadd.f32 %v4684_v31, %v4663_v50  ;;  %v5030_v3 = vmul.f32 %v8953_v39, %v8814_v26  ;;  %v4825_v25 = vmul.f32 %v8896_v22, %v4806_v30  ;;  %v8977_v50 = vld [vmem:[#allocation5 + $0x8c] sm:$0xff] }
 0x413   :  { %5076 = vadd.xlane.f32.xlu1 %v5075_v61  ;;  %v4869_v21 = vadd.f32 %v4855_v23, %v4834_v60  ;;  %v4804_v41 = vadd.f32 %v4790_v19, %v4769_v13  ;;  %v4907_v54 = vadd.f32 %v4893_v14, %v4872_v42  ;;  %v4928_v9 = vmul.f32 %v8926_v33, %v4736_v52  ;;  %v8970_v42 = vld [vmem:[#allocation5 + $0x8b] sm:$0xff]  ;;  %v4876_v61 = vld [vmem:[#allocation5 + $0xa0] sm:$0xff] }
 0x414   :  { %v4546_v34 = vmul.f32 %v8819_v7, %v8944_v17  ;;  %v4860_v24 = vmul.f32 %v8907_v2, %v4841_v55  ;;  %v4963_v46 = vmul.f32 %v8933_v47, %v4771_v44  ;;  %v4998_v26 = vmul.f32 %v8940_v0, %v4806_v30 }
 0x415   :  { %v4904_v57 = vadd.f32 %v4890_v29, %v4869_v21  ;;  %v4942_v35 = vadd.f32 %v4928_v9, %v4907_v54  ;;  %v4581_v49 = vmul.f32 %v8831_v40, %v8958_v10  ;;  %v4719_v31 = vmul.f32 %v8842_v37, %v8944_v17  ;;  %v4911_v21 = vld [vmem:[#allocation5 + $0xa1] sm:$0xff]  ;;  %v4737_v54 = vld [vmem:[#allocation5 + $0x99] sm:$0xff] }
 0x416   :  { %v4560_v51 = vadd.f32 %v4546_v34, %v4525_v4  ;;  %v4839_v53 = vadd.f32 %v4825_v25, %v4804_v41  ;;  %v4616_v62 = vmul.f32 %v8849_v56, %v8963_v63  ;;  %v4731_v52 = vadd.f32 %v4717_v58, %v8772_v5 }
 0x417   :  { %v4939_v7 = vadd.f32 %v4925_v11, %v4904_v57  ;;  %v4977_v59 = vadd.f32 %v4963_v46, %v4942_v35  ;;  %v4733_v4 = vadd.f32 %v4719_v31, %v4698_v20  ;;  %v4754_v40 = vmul.f32 %v8858_v8, %v8958_v10 }
 0x418   :  { %v4595_v15 = vadd.f32 %v4581_v49, %v4560_v51  ;;  %v5033_v23 = vmul.f32 %v8953_v39, %v4841_v55  ;;  %v4651_v44 = vmul.f32 %v8865_v27, %v8970_v42  ;;  %v4766_v28 = vadd.f32 %v8880_v1, %v4731_v52  ;;  %v4981_v49 = vld [vmem:[#allocation5 + $0xa3] sm:$0xff] }
 0x419   :  { %v4974_v45 = vadd.f32 %v4960_v6, %v4939_v7  ;;  %v5012_v29 = vadd.f32 %v4998_v26, %v4977_v59  ;;  %v4768_v5 = vadd.f32 %v4754_v40, %v4733_v4  ;;  %v4789_v58 = vmul.f32 %v8885_v36, %v8963_v63  ;;  %v4772_v26 = vld [vmem:[#allocation5 + $0x9a] sm:$0xff]  ;;  %v5016_v59 = vld [vmem:[#allocation5 + $0xa4] sm:$0xff] }
 0x41a   :  { %v4630_v56 = vadd.f32 %v4616_v62, %v4595_v15  ;;  %v4874_v60 = vadd.f32 %v4860_v24, %v4839_v53  ;;  %v4686_v11 = vmul.f32 %v8872_v32, %v8977_v50  ;;  %v4801_v6 = vadd.f32 %v8891_v43, %v4766_v28  ;;  %v4807_v53 = vld [vmem:[#allocation5 + $0x9b] sm:$0xff] }
 0x41b   :  { %v5009_v30 = vadd.f32 %v4995_v16, %v4974_v45  ;;  %v5047_v13 = vadd.f32 %v5033_v23, %v5012_v29  ;;  %v4803_v27 = vadd.f32 %v4789_v58, %v4768_v5  ;;  %v4824_v1 = vmul.f32 %v8896_v22, %v8970_v42  ;;  %v4842_v45 = vld [vmem:[#allocation5 + $0x9c] sm:$0xff]  ;;  %v4877_v58 = vld [vmem:[#allocation5 + $0xa8] sm:$0xff] }
 0x41c   :  { %v4665_v19 = vadd.f32 %v4651_v44, %v4630_v56  ;;  %v4721_v14 = vmul.f32 %v8842_v37, %v4702_v18  ;;  %v4836_v20 = vadd.f32 %v8902_v12, %v4801_v6  ;;  %v4859_v16 = vmul.f32 %v8907_v2, %v8977_v50  ;;  %v4946_v12 = vld [vmem:[#allocation5 + $0xa2] sm:$0xff] }
 0x41d   :  { %v5044_v55 = vadd.f32 %v5030_v3, %v5009_v30  ;;  %v5081_v32 = vsel %vm4091_vm1, %v5047_v13, 0.0  ;;  %v4838_v43 = vadd.f32 %v4824_v1, %v4803_v27  ;;  %v4895_v41 = vmul.f32 %v8918_v38, %v4876_v61 }
 0x41e   :  { %v4700_v25 = vadd.f32 %v4686_v11, %v4665_v19  ;;  %5082 = vadd.xlane.f32.xlu1 %v5081_v32  ;;  %v4871_v3 = vadd.f32 %v8913_v48, %v4836_v20  ;;  %v4892_v37 = vmul.f32 %v8918_v38, %v8944_v17  ;;  %v4930_v46 = vmul.f32 %v8926_v33, %v4911_v21  ;;  %v4912_v19 = vld [vmem:[#allocation5 + $0xa9] sm:$0xff] }
 0x41f   :  { %v5072_v9 = vsel %vm4091_vm1, %v5044_v55, 0.0  ;;  %v4873_v57 = vadd.f32 %v4859_v16, %v4838_v43  ;;  %v4909_v24 = vadd.f32 %v4895_v41, %v4874_v60  ;;  %v4927_v51 = vmul.f32 %v8926_v33, %v8958_v10  ;;  %v4947_v16 = vld [vmem:[#allocation5 + $0xaa] sm:$0xff] }
 0x420   :  { %5073 = vadd.xlane.f32.xlu0 %v5072_v9  ;;  %v4735_v34 = vadd.f32 %v4721_v14, %v4700_v25  ;;  %v4906_v35 = vadd.f32 %v4892_v37, %v4871_v3  ;;  %v4756_v31 = vmul.f32 %v8858_v8, %v4737_v54  ;;  %v4965_v48 = vmul.f32 %v8933_v47, %v4946_v12  ;;  %v4982_v25 = vld [vmem:[#allocation5 + $0xab] sm:$0xff] }
 0x421   :  { %v4944_v7 = vadd.f32 %v4930_v46, %v4909_v24  ;;  %v4894_v17 = vmul.f32 %v8918_v38, %v4702_v18  ;;  %v4962_v52 = vmul.f32 %v8933_v47, %v8963_v63  ;;  %v4791_v4 = vmul.f32 %v8885_v36, %v4772_v26 }
 0x422   :  { %v4941_v62 = vadd.f32 %v4927_v51, %v4906_v35  ;;  %v4770_v15 = vadd.f32 %v4756_v31, %v4735_v34  ;;  %v5000_v10 = vmul.f32 %v8940_v0, %v4981_v49  ;;  %v4929_v8 = vmul.f32 %v8926_v33, %v4737_v54  ;;  %v5017_v54 = vld [vmem:[#allocation5 + $0xac] sm:$0xff] }
 0x423   :  { %v4979_v40 = vadd.f32 %v4965_v48, %v4944_v7  ;;  %v4908_v23 = vadd.f32 %v4894_v17, %v4873_v57  ;;  %v4997_v28 = vmul.f32 %v8940_v0, %v8970_v42  ;;  %v4826_v56 = vmul.f32 %v8896_v22, %v4807_v53 }
 0x424   :  { %v4976_v44 = vadd.f32 %v4962_v52, %v4941_v62  ;;  %v4805_v29 = vadd.f32 %v4791_v4, %v4770_v15  ;;  %v5035_v63 = vmul.f32 %v8953_v39, %v5016_v59  ;;  %v4964_v36 = vmul.f32 %v8933_v47, %v4772_v26 }
 0x425   :  { %v5014_v18 = vadd.f32 %v5000_v10, %v4979_v40  ;;  %v4943_v5 = vadd.f32 %v4929_v8, %v4908_v23  ;;  %v5032_v60 = vmul.f32 %v8953_v39, %v8977_v50  ;;  %v4861_v6 = vmul.f32 %v8907_v2, %v4842_v45 }
 0x426   :  { %v5011_v30 = vadd.f32 %v4997_v28, %v4976_v44  ;;  %v4840_v11 = vadd.f32 %v4826_v56, %v4805_v29  ;;  %v4999_v42 = vmul.f32 %v8940_v0, %v4807_v53  ;;  %v4896_v1 = vmul.f32 %v8918_v38, %v4877_v58 }
 0x427   :  { %v5049_v61 = vadd.f32 %v5035_v63, %v5014_v18  ;;  %v4978_v13 = vadd.f32 %v4964_v36, %v4943_v5  ;;  %v5034_v20 = vmul.f32 %v8953_v39, %v4842_v45  ;;  %v4931_v2 = vmul.f32 %v8926_v33, %v4912_v19  ;;  %v5425_v33 = vld [vmem:[#allocation6] ss:$0 sm:$0xff] }
 0x428   :  { %v5046_v22 = vadd.f32 %v5032_v60, %v5011_v30  ;;  %v4875_v27 = vadd.f32 %v4861_v6, %v4840_v11  ;;  %v4966_v41 = vmul.f32 %v8933_v47, %v4947_v16  ;;  %v5001_v3 = vmul.f32 %v8940_v0, %v4982_v25 }
 0x429   :  { %v5087_v55 = vsel %vm4091_vm1, %v5049_v61, 0.0  ;;  %v5013_v14 = vadd.f32 %v4999_v42, %v4978_v13  ;;  %v5036_v12 = vmul.f32 %v8953_v39, %v5017_v54 }
 0x42a   :  { %v5078_v50 = vsel %vm4091_vm1, %v5046_v22, 0.0  ;;  %5088 = vadd.xlane.f32.xlu1 %v5087_v55  ;;  %v4910_v21 = vadd.f32 %v4896_v1, %v4875_v27 }
 0x42b   :  { %5079 = vadd.xlane.f32.xlu0 %v5078_v50  ;;  %v5048_v32 = vadd.f32 %v5034_v20, %v5013_v14 }
 0x42c   :  { %v4945_v43 = vadd.f32 %v4931_v2, %v4910_v21 }
 0x42d   :  { %v5084_v38 = vsel %vm4091_vm1, %v5048_v32, 0.0 }
 0x42e   :  { %v4980_v9 = vadd.f32 %v4966_v41, %v4945_v43 }
 0x42f   :  { %5085 = vadd.xlane.f32.xlu0 %v5084_v38 }
 0x430   :  { %v5015_v37 = vadd.f32 %v5001_v3, %v4980_v9 }
 0x432   :  { %v5050_v34 = vadd.f32 %v5036_v12, %v5015_v37 }
 0x434   :  { %v5090_v57 = vsel %vm4091_vm1, %v5050_v34, 0.0 }
 0x435   :  { %5091 = vadd.xlane.f32.xlu0 %v5090_v57 }
 0x43d   :  { %v5053_v24 = vpop.xlane.xlu0 %5052 }
 0x43e   :  { %v5100_v46 = vadd.f32 %v5425_v33, %v5053_v24 }
 0x440   :  { %5115 = vst.msk [vmem:[%s9097_s9] sm:$0xff] %vm5114_vm5, %v5100_v46 }
 0x45a   :  { %v5056_v47 = vpop.xlane.xlu1 %5055 }
 0x45b   :  { %v5101_v26 = vadd.f32 %v5425_v33, %v5056_v47 }
 0x45d   :  { %5116 = vst.msk [vmem:[%s9097_s9 + $0x8] sm:$0xff] %vm5114_vm5, %v5101_v26 }
 0x465   :  { %v5059_v0 = vpop.xlane.xlu0 %5058 }
 0x466   :  { %v5102_v39 = vadd.f32 %v5425_v33, %v5059_v0 }
 0x468   :  { %5117 = vst.msk [vmem:[%s9097_s9 + $0x10] sm:$0xff] %vm5114_vm5, %v5102_v39 }
 0x46d   :  { %v5065_v35 = vpop.xlane.xlu1 %5064 }
 0x46e   :  { %v5104_v51 = vadd.f32 %v5425_v33, %v5065_v35 }
 0x470   :  { %5119 = vst.msk [vmem:[%s9097_s9 + $0x20] sm:$0xff] %vm5114_vm5, %v5104_v51 }
 0x481   :  { %v5062_v49 = vpop.xlane.xlu0 %5061 }
 0x482   :  { %v5103_v31 = vadd.f32 %v5425_v33, %v5062_v49 }
 0x484   :  { %5118 = vst.msk [vmem:[%s9097_s9 + $0x18] sm:$0xff] %vm5114_vm5, %v5103_v31 }
 0x485   :  { %v5071_v7 = vpop.xlane.xlu1 %5070 }
 0x486   :  { %v5106_v48 = vadd.f32 %v5425_v33, %v5071_v7 }
 0x488   :  { %5121 = vst.msk [vmem:[%s9097_s9 + $0x30] sm:$0xff] %vm5114_vm5, %v5106_v48 }
 0x495   :  { %v5068_v53 = vpop.xlane.xlu0 %5067 }
 0x496   :  { %v5105_v17 = vadd.f32 %v5425_v33, %v5068_v53 }
 0x498   :  { %5120 = vst.msk [vmem:[%s9097_s9 + $0x28] sm:$0xff] %vm5114_vm5, %v5105_v17 }
 0x49c   :  { %v5077_v62 = vpop.xlane.xlu1 %5076 }
 0x49d   :  { %v5108_v52 = vadd.f32 %v5425_v33, %v5077_v62 }
 0x49f   :  { %5123 = vst.msk [vmem:[%s9097_s9 + $0x40] sm:$0xff] %vm5114_vm5, %v5108_v52 }
 0x4a7   :  { %v5083_v59 = vpop.xlane.xlu1 %5082 }
 0x4a8   :  { %v5110_v4 = vadd.f32 %v5425_v33, %v5083_v59 }
 0x4a9   :  { %v5074_v15 = vpop.xlane.xlu0 %5073 }
 0x4aa   :  { %v5107_v40 = vadd.f32 %v5425_v33, %v5074_v15  ;;  %5125 = vst.msk [vmem:[%s9097_s9 + $0x50] sm:$0xff] %vm5114_vm5, %v5110_v4 }
 0x4ac   :  { %5122 = vst.msk [vmem:[%s9097_s9 + $0x38] sm:$0xff] %vm5114_vm5, %v5107_v40 }
 0x4b3   :  { %v5089_v10 = vpop.xlane.xlu1 %5088 }
 0x4b4   :  { %v5080_v45 = vpop.xlane.xlu0 %5079  ;;  %v5112_v23 = vadd.f32 %v5425_v33, %v5089_v10 }
 0x4b5   :  { %v5109_v8 = vadd.f32 %v5425_v33, %v5080_v45 }
 0x4b6   :  { %5127 = vst.msk [vmem:[%s9097_s9 + $0x60] sm:$0xff] %vm5114_vm5, %v5112_v23 }
 0x4b7   :  { %5124 = vst.msk [vmem:[%s9097_s9 + $0x48] sm:$0xff] %vm5114_vm5, %v5109_v8 }
 0x4b8   :  { %v5086_v44 = vpop.xlane.xlu0 %5085 }
 0x4b9   :  { %v5111_v28 = vadd.f32 %v5425_v33, %v5086_v44 }
 0x4bb   :  { %5126 = vst.msk [vmem:[%s9097_s9 + $0x58] sm:$0xff] %vm5114_vm5, %v5111_v28 }
 0x4be   :  { %v5092_v29 = vpop.xlane.xlu0 %5091 }
 0x4bf   :  { %v5113_v56 = vadd.f32 %v5425_v33, %v5092_v29 }
 0x4c1   :  { %5128 = vst.msk [vmem:[%s9097_s9 + $0x68] sm:$0xff] %vm5114_vm5, %v5113_v56 }
 0x4c2   :  { %5133 = vsyncpa [#allocation8], 1 }

</bundles_post_ra>
